<compile_context>
chip_gen: v7x
topology: tpu7x:2x2x1
jax: 0.10.0
libtpu: 0.0.40
codegen_flags: <defaults>
</compile_context>

<pallas_src>
import functools

import jax
import jax.numpy as jnp
import numpy as np
from jax.experimental import pallas as pl
from jax.experimental.pallas import tpu as pltpu


def _round_up(x, m):
    return (x + m - 1) // m * m


def _pad_gates(w, h, hp):
    """(..., 4*h) -> (..., 4*hp): each PyTorch gate block [i|f|g|o] zero-padded to hp."""
    if h == hp:
        return w
    lead = w.shape[:-1]
    w4 = w.reshape(lead + (4, h))
    w4 = jnp.pad(w4, [(0, 0)] * len(lead) + [(0, 0), (0, hp - h)])
    return w4.reshape(lead + (4 * hp,))


# ----------------------------------------------------------------------------
# Pallas kernel: one (direction, time-tile) grid step of a single LSTM layer.
# Gate order follows PyTorch: [i, f, g, o]; each gate occupies hp (128k) lanes.
# ----------------------------------------------------------------------------
def _lstm_layer_kernel(x_ref, w_ih_ref, w_hh_ref, b_ref, init_ref,
                       o_ref, state_ref, h_scr, c_scr, *, t_tile, hp, n_in):
    d = pl.program_id(0)          # direction (parallel axis; 2 TCs on v7x)
    tt = pl.program_id(1)         # time tile (arbitrary axis; state carried)

    @pl.when(tt == 0)
    def _():                      # load the initial (h, c) for this direction
        h_scr[...] = init_ref[0]
        c_scr[...] = init_ref[1]

    bias = b_ref[...]             # (1, 4*hp) f32, hoisted out of the loop

    def step(i, carry):
        h, c = carry
        # fwd walks local t = 0..t_tile-1, bwd walks t_tile-1..0 (the tile order
        # is already reversed in the index_map, so this is in-VMEM index math).
        t = jnp.where(d == 0, i, t_tile - 1 - i)
        # bf16 matmul operands, f32 accumulation; bias added in f32.
        gates = bias + jnp.dot(h.astype(w_hh_ref.dtype), w_hh_ref[...],
                               preferred_element_type=jnp.float32)
        for p in range(n_in):     # in-kernel input projection: no gates_x HBM trip
            gates = gates + jnp.dot(x_ref[p, t], w_ih_ref[p],
                                    preferred_element_type=jnp.float32)
        # hp is a multiple of 128 -> every gate slice is lane-tile aligned.
        i_g = jax.nn.sigmoid(gates[:, 0 * hp:1 * hp])
        f_g = jax.nn.sigmoid(gates[:, 1 * hp:2 * hp])
        g_g = jnp.tanh(gates[:, 2 * hp:3 * hp])
        o_g = jax.nn.sigmoid(gates[:, 3 * hp:4 * hp])
        c_new = f_g * c + i_g * g_g
        h_new = o_g * jnp.tanh(c_new)
        o_ref[t] = h_new.astype(o_ref.dtype)        # (B, hp) lane-dense store
        return h_new, c_new

    h_last, c_last = jax.lax.fori_loop(
        0, t_tile, step, (h_scr[...], c_scr[...]),
        unroll=True if t_tile <= 8 else 4)

    h_scr[...] = h_last           # carried to the next time tile
    c_scr[...] = c_last
    state_ref[0] = h_last         # resident across tt; becomes (h_n, c_n)
    state_ref[1] = c_last


def _vmem_bytes(p, t_tile, b, d_in, hp, out_itemsize):
    g = 4 * hp
    per_tile = p * t_tile * b * d_in * 2 + t_tile * b * hp * out_itemsize
    resident = (p * d_in * g * 2 + hp * g * 2 + g * 4
                + 2 * b * hp * 4 + 2 * b * hp * 4)
    return 2 * (per_tile + resident) + 2 * b * hp * 4   # x2: double buffering


def _choose_time_tile(seq_len, p, b, d_in, hp, out_itemsize,
                      max_time_tile, budget=40 * 2**20):
    """Largest divisor of seq_len whose double-buffered tiles fit the VMEM budget
    (budget sized for v7x's 64 MiB VMEM; v5e/v6e have 128 MiB)."""
    best = 1
    for t in range(1, min(seq_len, max_time_tile) + 1):
        if seq_len % t == 0 and _vmem_bytes(p, t, b, d_in, hp, out_itemsize) <= budget:
            best = t
    return best


def _lstm_layer(x, w_ih, w_hh, bias, init, *, out_dtype, time_tile):
    """x    : (P, T, B, Din)          bf16  time-major input slabs (P = #dirs of prev layer)
       w_ih : (num_dirs, P, Din, 4Hp) bf16
       w_hh : (num_dirs, Hp, 4Hp)     bf16
       bias : (num_dirs, 1, 4Hp)      f32
       init : (num_dirs, 2, B, Hp)    f32   stacked (h0, c0)
    Returns ((num_dirs, T, B, Hp) out_dtype, (num_dirs, 2, B, Hp) f32)."""
    P, T, B, Din = x.shape
    num_dirs, Hp, G = w_hh.shape
    assert T % time_tile == 0
    n_tt = T // time_tile

    kernel = functools.partial(_lstm_layer_kernel,
                               t_tile=time_tile, hp=Hp, n_in=P)

    def tile_idx(d, t):          # fwd: 0..n-1, bwd: n-1..0
        return (1 - d) * t + d * (n_tt - 1 - t)

    est = _vmem_bytes(P, time_tile, B, Din, Hp, jnp.dtype(out_dtype).itemsize)
    vmem_limit = int(min(48 * 2**20, max(16 * 2**20, est + (4 << 20))))

    return pl.pallas_call(
        kernel,
        out_shape=(jax.ShapeDtypeStruct((num_dirs, T, B, Hp), out_dtype),
                   jax.ShapeDtypeStruct((num_dirs, 2, B, Hp), jnp.float32)),
        grid_spec=pltpu.PrefetchScalarGridSpec(
            num_scalar_prefetch=0,
            grid=(num_dirs, n_tt),
            in_specs=[
                pl.BlockSpec((P, time_tile, B, Din),
                             lambda d, t: (0, tile_idx(d, t), 0, 0)),
                pl.BlockSpec((None, P, Din, G), lambda d, t: (d, 0, 0, 0)),
                pl.BlockSpec((None, Hp, G), lambda d, t: (d, 0, 0)),
                pl.BlockSpec((None, 1, G), lambda d, t: (d, 0, 0)),
                pl.BlockSpec((None, 2, B, Hp), lambda d, t: (d, 0, 0, 0)),
            ],
            out_specs=[
                pl.BlockSpec((None, time_tile, B, Hp),
                             lambda d, t: (d, tile_idx(d, t), 0, 0)),
                pl.BlockSpec((None, 2, B, Hp), lambda d, t: (d, 0, 0, 0)),
            ],
            scratch_shapes=[pltpu.VMEM((B, Hp), jnp.float32),
                            pltpu.VMEM((B, Hp), jnp.float32)],
        ),
        compiler_params=pltpu.CompilerParams(
            dimension_semantics=("parallel", "arbitrary"),
            vmem_limit_bytes=vmem_limit),
    )(x, w_ih, w_hh, bias, init)


# ----------------------------------------------------------------------------
# Full module forward: stacked (and optionally bidirectional) LSTM.
# initial_state=None corresponds to the module's hidden_state=None.
# ----------------------------------------------------------------------------
def lstm_forward(x_btd, params, num_layers, bidirectional,
                 initial_state=None, max_time_tile=256):
    """Returns (output (B, T, num_dirs*H),
                (h_n, c_n) each (num_layers*num_dirs, B, H)).
    The PyTorch module returns only `output` and stores (h_n, c_n) in
    self.hidden_state; both are produced here."""
    num_dirs = 2 if bidirectional else 1
    B, T, _ = x_btd.shape
    H = params[0][1].shape[1]
    Hp = _round_up(H, 128)                       # lane-aligned gate blocks

    # layer-0 input as a single time-major slab: (P=1, T, B, D)
    cur = jnp.transpose(x_btd, (1, 0, 2))[None].astype(jnp.bfloat16)
    h_n, c_n = [], []
    for layer in range(num_layers):
        w_ih, w_hh, bias = params[layer]         # (nd,Din,4H), (nd,H,4H), (nd,4H)
        if layer == 0:
            w_ih_s = w_ih[:, None]                                   # (nd,1,D,4H)
        else:
            # split the input dim into the previous layer's per-direction slabs
            w_ih_s = w_ih.reshape(num_dirs, num_dirs, H, 4 * H)
            w_ih_s = jnp.pad(w_ih_s, ((0, 0), (0, 0), (0, Hp - H), (0, 0)))
        w_ih_p = _pad_gates(w_ih_s, H, Hp).astype(jnp.bfloat16)
        w_hh_p = _pad_gates(jnp.pad(w_hh, ((0, 0), (0, Hp - H), (0, 0))),
                            H, Hp).astype(jnp.bfloat16)
        bias_p = _pad_gates(bias, H, Hp)[:, None, :]                 # (nd,1,4Hp) f32

        init = jnp.zeros((num_dirs, 2, B, Hp), jnp.float32)
        if initial_state is not None:
            h0, c0 = initial_state               # (num_layers*num_dirs, B, H) each
            for d in range(num_dirs):
                idx = layer * num_dirs + d
                init = init.at[d, 0, :, :H].set(h0[idx].astype(jnp.float32))
                init = init.at[d, 1, :, :H].set(c0[idx].astype(jnp.float32))

        out_dtype = jnp.float32 if layer == num_layers - 1 else jnp.bfloat16
        t_tile = _choose_time_tile(T, cur.shape[0], B, cur.shape[-1], Hp,
                                   jnp.dtype(out_dtype).itemsize, max_time_tile)
        cur, state = _lstm_layer(cur, w_ih_p, w_hh_p, bias_p, init,
                                 out_dtype=out_dtype, time_tile=t_tile)
        h_n.append(state[:, 0, :, :H])
        c_n.append(state[:, 1, :, :H])

    out = jnp.transpose(cur, (2, 1, 0, 3))[..., :H].reshape(B, T, num_dirs * H)
    return out, (jnp.concatenate(h_n, axis=0), jnp.concatenate(c_n, axis=0))


# ----------------------------------------------------------------------------
# Pure-JAX reference (lax.scan), matching the bf16-matmul / f32-accumulate path.
# ----------------------------------------------------------------------------
def _ref_forward(x_btd, params, num_layers, bidirectional, initial_state=None):
    num_dirs = 2 if bidirectional else 1
    B, T, _ = x_btd.shape
    cur = jnp.transpose(x_btd, (1, 0, 2))        # (T, B, D)
    h_n, c_n = [], []
    for layer in range(num_layers):
        w_ih, w_hh, bias = params[layer]
        H = w_hh.shape[1]
        outs = []
        for d in range(num_dirs):
            gx = jnp.einsum('tbd,dg->tbg', cur.astype(jnp.bfloat16),
                            w_ih[d].astype(jnp.bfloat16),
                            preferred_element_type=jnp.float32) + bias[d]
            xin = gx if d == 0 else gx[::-1]
            w_hh_d = w_hh[d].astype(jnp.bfloat16)
            if initial_state is None:
                h0 = jnp.zeros((B, H), jnp.float32)
                c0 = jnp.zeros((B, H), jnp.float32)
            else:
                h0 = initial_state[0][layer * num_dirs + d]
                c0 = initial_state[1][layer * num_dirs + d]

            def step(carry, g_t, w=w_hh_d, hh=H):
                h, c = carry
                g = g_t + jnp.dot(h.astype(jnp.bfloat16), w,
                                  preferred_element_type=jnp.float32)
                i = jax.nn.sigmoid(g[:, :hh])
                f = jax.nn.sigmoid(g[:, hh:2 * hh])
                gg = jnp.tanh(g[:, 2 * hh:3 * hh])
                o = jax.nn.sigmoid(g[:, 3 * hh:])
                c = f * c + i * gg
                h = o * jnp.tanh(c)
                return (h, c), h

            (hT, cT), hs = jax.lax.scan(step, (h0, c0), xin)
            if d == 1:
                hs = hs[::-1]
            outs.append(hs)
            h_n.append(hT)
            c_n.append(cT)
        cur = jnp.concatenate(outs, axis=-1) if num_dirs == 2 else outs[0]
    return jnp.transpose(cur, (1, 0, 2)), (jnp.stack(h_n), jnp.stack(c_n))


# ----------------------------------------------------------------------------
# Deterministic parameter construction (PyTorch nn.LSTM shapes, U(-k, k) init),
# stored per layer with a leading direction axis and transposed for x @ W.
# ----------------------------------------------------------------------------
def make_lstm_params(key, latent_dim, hidden_dim, num_layers, bidirectional):
    num_dirs = 2 if bidirectional else 1
    k = 1.0 / np.sqrt(hidden_dim)
    params = []
    for layer in range(num_layers):
        d_in = latent_dim if layer == 0 else hidden_dim * num_dirs
        w_ih_l, w_hh_l, b_l = [], [], []
        for _ in range(num_dirs):
            key, k1, k2, k3, k4 = jax.random.split(key, 5)
            w_ih = jax.random.uniform(k1, (d_in, 4 * hidden_dim), jnp.float32, -k, k)
            w_hh = jax.random.uniform(k2, (hidden_dim, 4 * hidden_dim), jnp.float32, -k, k)
            b_ih = jax.random.uniform(k3, (4 * hidden_dim,), jnp.float32, -k, k)
            b_hh = jax.random.uniform(k4, (4 * hidden_dim,), jnp.float32, -k, k)
            w_ih_l.append(w_ih); w_hh_l.append(w_hh); b_l.append(b_ih + b_hh)
        params.append((jnp.stack(w_ih_l), jnp.stack(w_hh_l), jnp.stack(b_l)))
    return params


if __name__ == "__main__":
    # Module config: LSTM(latent_dim, num_layers, hidden_dim, bidirectional)
    latent_dim, num_layers, hidden_dim = 32, 2, 32
    batch, seq = 2, 8

    key = jax.random.PRNGKey(0)
    key, kx, kh, kc = jax.random.split(key, 4)
    x = jax.random.normal(kx, (batch, seq, latent_dim), jnp.float32)

    for bidirectional in (True, False):
        num_dirs = 2 if bidirectional else 1
        params = make_lstm_params(key, latent_dim, hidden_dim, num_layers,
                                  bidirectional)
        # max_time_tile=4 forces >=2 time tiles: exercises the scratch-carried
        # state and the cross-tile reversal of the backward direction.
        fwd = jax.jit(functools.partial(lstm_forward, num_layers=num_layers,
                                        bidirectional=bidirectional,
                                        max_time_tile=4))

        # Module forward with self.hidden_state = None.
        out, (h_n, c_n) = jax.block_until_ready(fwd(x, params))
        assert out.shape == (batch, seq, hidden_dim * num_dirs), out.shape

        ref_out, (ref_h, ref_c) = _ref_forward(x, params, num_layers, bidirectional)
        np.testing.assert_allclose(np.asarray(out), np.asarray(ref_out),
                                   rtol=2e-2, atol=2e-2)
        np.testing.assert_allclose(np.asarray(h_n), np.asarray(ref_h),
                                   rtol=2e-2, atol=2e-2)
        np.testing.assert_allclose(np.asarray(c_n), np.asarray(ref_c),
                                   rtol=2e-2, atol=2e-2)

        # Module forward with a carried (non-None) self.hidden_state.
        h0 = 0.5 * jax.random.normal(kh, (num_layers * num_dirs, batch, hidden_dim),
                                     jnp.float32)
        c0 = 0.5 * jax.random.normal(kc, (num_layers * num_dirs, batch, hidden_dim),
                                     jnp.float32)
        out2, _ = jax.block_until_ready(fwd(x, params, initial_state=(h0, c0)))
        ref2, _ = _ref_forward(x, params, num_layers, bidirectional,
                               initial_state=(h0, c0))
        np.testing.assert_allclose(np.asarray(out2), np.asarray(ref2),
                                   rtol=2e-2, atol=2e-2)

    print("KERNEL_OK")
</pallas_src>

<mosaic_0001>
module attributes {stable_mosaic.version = 11 : i64} {
  func.func @_lstm_layer_kernel(%arg0: i32, %arg1: i32, %arg2: memref<1x4x2x32xbf16, #tpu.memory_space<vmem>>, %arg3: memref<1x1x32x512xbf16, #tpu.memory_space<vmem>>, %arg4: memref<1x128x512xbf16, #tpu.memory_space<vmem>>, %arg5: memref<1x1x512xf32, #tpu.memory_space<vmem>>, %arg6: memref<1x2x2x128xf32, #tpu.memory_space<vmem>>, %arg7: memref<1x4x2x128xbf16, #tpu.memory_space<vmem>>, %arg8: memref<1x2x2x128xf32, #tpu.memory_space<vmem>>, %arg9: memref<2x128xf32, #tpu.memory_space<vmem>>, %arg10: memref<2x128xf32, #tpu.memory_space<vmem>>) attributes {dimension_semantics = [#tpu.dimension_semantics<parallel>, #tpu.dimension_semantics<arbitrary>], iteration_bounds = array<i64: 2, 2>, scalar_prefetch = 0 : i64, scratch_operands = 2 : i64, tpu.core_type = #tpu.core_type<tc>, window_params = [{transform_indices = @transform_0, window_bounds = array<i64: 1, 4, 2, 32>}, {transform_indices = @transform_1, window_bounds = array<i64: 1, 1, 32, 512>}, {transform_indices = @transform_2, window_bounds = array<i64: 1, 128, 512>}, {transform_indices = @transform_3, window_bounds = array<i64: 1, 1, 512>}, {transform_indices = @transform_4, window_bounds = array<i64: 1, 2, 2, 128>}, {transform_indices = @transform_5, window_bounds = array<i64: 1, 4, 2, 128>}, {transform_indices = @transform_6, window_bounds = array<i64: 1, 2, 2, 128>}]} {
    %c0_i32 = arith.constant 0 : i32
    %0 = arith.cmpi eq, %arg1, %c0_i32 : i32
    %1 = arith.extui %0 : i1 to i32
    %c0_i32_0 = arith.constant 0 : i32
    %2 = arith.cmpi ne, %1, %c0_i32_0 : i32
    scf.if %2 {
      %c0_98 = arith.constant 0 : index
      %c0_99 = arith.constant 0 : index
      %c0_100 = arith.constant 0 : index
      %c0_101 = arith.constant 0 : index
      %199 = vector.load %arg6[%c0_98, %c0_99, %c0_100, %c0_101] : memref<1x2x2x128xf32, #tpu.memory_space<vmem>>, vector<1x1x2x128xf32>
      %200 = vector.shape_cast %199 : vector<1x1x2x128xf32> to vector<2x128xf32>
      %c0_102 = arith.constant 0 : index
      %c0_103 = arith.constant 0 : index
      %201 = vector.load %arg9[%c0_102, %c0_103] : memref<2x128xf32, #tpu.memory_space<vmem>>, vector<2x128xf32>
      tpu.vector_store %arg9[%c0_102, %c0_103], %200 {strides = array<i32>} : memref<2x128xf32, #tpu.memory_space<vmem>>, vector<2x128xf32>,
      %c0_104 = arith.constant 0 : index
      %c1_105 = arith.constant 1 : index
      %c0_106 = arith.constant 0 : index
      %c0_107 = arith.constant 0 : index
      %202 = vector.load %arg6[%c0_104, %c1_105, %c0_106, %c0_107] : memref<1x2x2x128xf32, #tpu.memory_space<vmem>>, vector<1x1x2x128xf32>
      %203 = vector.shape_cast %202 : vector<1x1x2x128xf32> to vector<2x128xf32>
      %c0_108 = arith.constant 0 : index
      %c0_109 = arith.constant 0 : index
      %204 = vector.load %arg10[%c0_108, %c0_109] : memref<2x128xf32, #tpu.memory_space<vmem>>, vector<2x128xf32>
      tpu.vector_store %arg10[%c0_108, %c0_109], %203 {strides = array<i32>} : memref<2x128xf32, #tpu.memory_space<vmem>>, vector<2x128xf32>,
    } else {
    }
    %c0 = arith.constant 0 : index
    %c0_1 = arith.constant 0 : index
    %c0_2 = arith.constant 0 : index
    %3 = vector.load %arg5[%c0, %c0_1, %c0_2] : memref<1x1x512xf32, #tpu.memory_space<vmem>>, vector<1x1x512xf32>
    %4 = vector.shape_cast %3 : vector<1x1x512xf32> to vector<1x512xf32>
    %c0_3 = arith.constant 0 : index
    %c0_4 = arith.constant 0 : index
    %5 = vector.load %arg9[%c0_3, %c0_4] : memref<2x128xf32, #tpu.memory_space<vmem>>, vector<2x128xf32>
    %c0_5 = arith.constant 0 : index
    %c0_6 = arith.constant 0 : index
    %6 = vector.load %arg10[%c0_5, %c0_6] : memref<2x128xf32, #tpu.memory_space<vmem>>, vector<2x128xf32>
    %c0_i32_7 = arith.constant 0 : i32
    %c0_i32_8 = arith.constant 0 : i32
    %7 = arith.cmpi eq, %arg0, %c0_i32_8 : i32
    %c3_i32 = arith.constant 3 : i32
    %8 = arith.subi %c3_i32, %c0_i32_7 : i32
    %9 = arith.select %7, %c0_i32_7, %8 : i32
    %10 = arith.truncf %5 : vector<2x128xf32> to vector<2x128xbf16>
    %c0_9 = arith.constant 0 : index
    %c0_10 = arith.constant 0 : index
    %c0_11 = arith.constant 0 : index
    %11 = vector.load %arg4[%c0_9, %c0_10, %c0_11] : memref<1x128x512xbf16, #tpu.memory_space<vmem>>, vector<1x128x512xbf16>
    %12 = vector.shape_cast %11 : vector<1x128x512xbf16> to vector<128x512xbf16>
    %cst = arith.constant dense<0.000000e+00> : vector<2x512xf32>
    %13 = tpu.matmul %10, %12, %cst {dimension_numbers = #tpu.dot_dimension_numbers<[1], [0], [0], [1], [0, 0, 1, 1], [], []>} : vector<2x128xbf16>, vector<128x512xbf16>, vector<2x512xf32> -> vector<2x512xf32>
    %14 = vector.broadcast %4 : vector<1x512xf32> to vector<2x512xf32>
    %15 = arith.addf %14, %13 : vector<2x512xf32>
    %c0_12 = arith.constant 0 : index
    %16 = arith.index_cast %9 : i32 to index
    %c0_13 = arith.constant 0 : index
    %c0_14 = arith.constant 0 : index
    %17 = vector.load %arg2[%c0_12, %16, %c0_13, %c0_14] : memref<1x4x2x32xbf16, #tpu.memory_space<vmem>>, vector<1x1x2x32xbf16>
    %18 = vector.shape_cast %17 : vector<1x1x2x32xbf16> to vector<2x32xbf16>
    %c0_15 = arith.constant 0 : index
    %c0_16 = arith.constant 0 : index
    %c0_17 = arith.constant 0 : index
    %c0_18 = arith.constant 0 : index
    %19 = vector.load %arg3[%c0_15, %c0_16, %c0_17, %c0_18] : memref<1x1x32x512xbf16, #tpu.memory_space<vmem>>, vector<1x1x32x512xbf16>
    %20 = vector.shape_cast %19 : vector<1x1x32x512xbf16> to vector<32x512xbf16>
    %cst_19 = arith.constant dense<0.000000e+00> : vector<2x512xf32>
    %21 = tpu.matmul %18, %20, %cst_19 {dimension_numbers = #tpu.dot_dimension_numbers<[1], [0], [0], [1], [0, 0, 1, 1], [], []>} : vector<2x32xbf16>, vector<32x512xbf16>, vector<2x512xf32> -> vector<2x512xf32>
    %22 = arith.addf %15, %21 : vector<2x512xf32>
    %23 = vector.extract_strided_slice %22 {offsets = [0, 0], sizes = [2, 128], strides = [1, 1]} : vector<2x512xf32> to vector<2x128xf32>
    %24 = arith.negf %23 : vector<2x128xf32>
    %25 = math.exp %24 : vector<2x128xf32>
    %cst_20 = arith.constant 1.000000e+00 : f32
    %26 = vector.broadcast %cst_20 : f32 to vector<2x128xf32>
    %27 = arith.addf %26, %25 : vector<2x128xf32>
    %28 = arith.divf %26, %27 : vector<2x128xf32>
    %29 = vector.extract_strided_slice %22 {offsets = [0, 128], sizes = [2, 128], strides = [1, 1]} : vector<2x512xf32> to vector<2x128xf32>
    %30 = arith.negf %29 : vector<2x128xf32>
    %31 = math.exp %30 : vector<2x128xf32>
    %cst_21 = arith.constant 1.000000e+00 : f32
    %32 = vector.broadcast %cst_21 : f32 to vector<2x128xf32>
    %33 = arith.addf %32, %31 : vector<2x128xf32>
    %34 = arith.divf %32, %33 : vector<2x128xf32>
    %35 = vector.extract_strided_slice %22 {offsets = [0, 256], sizes = [2, 128], strides = [1, 1]} : vector<2x512xf32> to vector<2x128xf32>
    %36 = math.tanh %35 : vector<2x128xf32>
    %37 = vector.extract_strided_slice %22 {offsets = [0, 384], sizes = [2, 128], strides = [1, 1]} : vector<2x512xf32> to vector<2x128xf32>
    %38 = arith.negf %37 : vector<2x128xf32>
    %39 = math.exp %38 : vector<2x128xf32>
    %cst_22 = arith.constant 1.000000e+00 : f32
    %40 = vector.broadcast %cst_22 : f32 to vector<2x128xf32>
    %41 = arith.addf %40, %39 : vector<2x128xf32>
    %42 = arith.divf %40, %41 : vector<2x128xf32>
    %43 = arith.mulf %34, %6 : vector<2x128xf32>
    %44 = arith.mulf %28, %36 : vector<2x128xf32>
    %45 = arith.addf %43, %44 : vector<2x128xf32>
    %46 = math.tanh %45 : vector<2x128xf32>
    %47 = arith.mulf %42, %46 : vector<2x128xf32>
    %48 = arith.truncf %47 : vector<2x128xf32> to vector<2x128xbf16>
    %c0_23 = arith.constant 0 : index
    %49 = arith.index_cast %9 : i32 to index
    %c0_24 = arith.constant 0 : index
    %c0_25 = arith.constant 0 : index
    %50 = vector.load %arg7[%c0_23, %49, %c0_24, %c0_25] : memref<1x4x2x128xbf16, #tpu.memory_space<vmem>>, vector<1x1x2x128xbf16>
    %51 = vector.shape_cast %50 : vector<1x1x2x128xbf16> to vector<2x128xbf16>
    %52 = vector.shape_cast %48 : vector<2x128xbf16> to vector<1x1x2x128xbf16>
    tpu.vector_store %arg7[%c0_23, %49, %c0_24, %c0_25], %52 {strides = array<i32>} : memref<1x4x2x128xbf16, #tpu.memory_space<vmem>>, vector<1x1x2x128xbf16>,
    %c1_i32 = arith.constant 1 : i32
    %c0_i32_26 = arith.constant 0 : i32
    %53 = arith.cmpi eq, %arg0, %c0_i32_26 : i32
    %c3_i32_27 = arith.constant 3 : i32
    %54 = arith.subi %c3_i32_27, %c1_i32 : i32
    %55 = arith.select %53, %c1_i32, %54 : i32
    %56 = arith.truncf %47 : vector<2x128xf32> to vector<2x128xbf16>
    %c0_28 = arith.constant 0 : index
    %c0_29 = arith.constant 0 : index
    %c0_30 = arith.constant 0 : index
    %57 = vector.load %arg4[%c0_28, %c0_29, %c0_30] : memref<1x128x512xbf16, #tpu.memory_space<vmem>>, vector<1x128x512xbf16>
    %58 = vector.shape_cast %57 : vector<1x128x512xbf16> to vector<128x512xbf16>
    %cst_31 = arith.constant dense<0.000000e+00> : vector<2x512xf32>
    %59 = tpu.matmul %56, %58, %cst_31 {dimension_numbers = #tpu.dot_dimension_numbers<[1], [0], [0], [1], [0, 0, 1, 1], [], []>} : vector<2x128xbf16>, vector<128x512xbf16>, vector<2x512xf32> -> vector<2x512xf32>
    %60 = vector.broadcast %4 : vector<1x512xf32> to vector<2x512xf32>
    %61 = arith.addf %60, %59 : vector<2x512xf32>
    %c0_32 = arith.constant 0 : index
    %62 = arith.index_cast %55 : i32 to index
    %c0_33 = arith.constant 0 : index
    %c0_34 = arith.constant 0 : index
    %63 = vector.load %arg2[%c0_32, %62, %c0_33, %c0_34] : memref<1x4x2x32xbf16, #tpu.memory_space<vmem>>, vector<1x1x2x32xbf16>
    %64 = vector.shape_cast %63 : vector<1x1x2x32xbf16> to vector<2x32xbf16>
    %c0_35 = arith.constant 0 : index
    %c0_36 = arith.constant 0 : index
    %c0_37 = arith.constant 0 : index
    %c0_38 = arith.constant 0 : index
    %65 = vector.load %arg3[%c0_35, %c0_36, %c0_37, %c0_38] : memref<1x1x32x512xbf16, #tpu.memory_space<vmem>>, vector<1x1x32x512xbf16>
    %66 = vector.shape_cast %65 : vector<1x1x32x512xbf16> to vector<32x512xbf16>
    %cst_39 = arith.constant dense<0.000000e+00> : vector<2x512xf32>
    %67 = tpu.matmul %64, %66, %cst_39 {dimension_numbers = #tpu.dot_dimension_numbers<[1], [0], [0], [1], [0, 0, 1, 1], [], []>} : vector<2x32xbf16>, vector<32x512xbf16>, vector<2x512xf32> -> vector<2x512xf32>
    %68 = arith.addf %61, %67 : vector<2x512xf32>
    %69 = vector.extract_strided_slice %68 {offsets = [0, 0], sizes = [2, 128], strides = [1, 1]} : vector<2x512xf32> to vector<2x128xf32>
    %70 = arith.negf %69 : vector<2x128xf32>
    %71 = math.exp %70 : vector<2x128xf32>
    %cst_40 = arith.constant 1.000000e+00 : f32
    %72 = vector.broadcast %cst_40 : f32 to vector<2x128xf32>
    %73 = arith.addf %72, %71 : vector<2x128xf32>
    %74 = arith.divf %72, %73 : vector<2x128xf32>
    %75 = vector.extract_strided_slice %68 {offsets = [0, 128], sizes = [2, 128], strides = [1, 1]} : vector<2x512xf32> to vector<2x128xf32>
    %76 = arith.negf %75 : vector<2x128xf32>
    %77 = math.exp %76 : vector<2x128xf32>
    %cst_41 = arith.constant 1.000000e+00 : f32
    %78 = vector.broadcast %cst_41 : f32 to vector<2x128xf32>
    %79 = arith.addf %78, %77 : vector<2x128xf32>
    %80 = arith.divf %78, %79 : vector<2x128xf32>
    %81 = vector.extract_strided_slice %68 {offsets = [0, 256], sizes = [2, 128], strides = [1, 1]} : vector<2x512xf32> to vector<2x128xf32>
    %82 = math.tanh %81 : vector<2x128xf32>
    %83 = vector.extract_strided_slice %68 {offsets = [0, 384], sizes = [2, 128], strides = [1, 1]} : vector<2x512xf32> to vector<2x128xf32>
    %84 = arith.negf %83 : vector<2x128xf32>
    %85 = math.exp %84 : vector<2x128xf32>
    %cst_42 = arith.constant 1.000000e+00 : f32
    %86 = vector.broadcast %cst_42 : f32 to vector<2x128xf32>
    %87 = arith.addf %86, %85 : vector<2x128xf32>
    %88 = arith.divf %86, %87 : vector<2x128xf32>
    %89 = arith.mulf %80, %45 : vector<2x128xf32>
    %90 = arith.mulf %74, %82 : vector<2x128xf32>
    %91 = arith.addf %89, %90 : vector<2x128xf32>
    %92 = math.tanh %91 : vector<2x128xf32>
    %93 = arith.mulf %88, %92 : vector<2x128xf32>
    %94 = arith.truncf %93 : vector<2x128xf32> to vector<2x128xbf16>
    %c0_43 = arith.constant 0 : index
    %95 = arith.index_cast %55 : i32 to index
    %c0_44 = arith.constant 0 : index
    %c0_45 = arith.constant 0 : index
    %96 = vector.load %arg7[%c0_43, %95, %c0_44, %c0_45] : memref<1x4x2x128xbf16, #tpu.memory_space<vmem>>, vector<1x1x2x128xbf16>
    %97 = vector.shape_cast %96 : vector<1x1x2x128xbf16> to vector<2x128xbf16>
    %98 = vector.shape_cast %94 : vector<2x128xbf16> to vector<1x1x2x128xbf16>
    tpu.vector_store %arg7[%c0_43, %95, %c0_44, %c0_45], %98 {strides = array<i32>} : memref<1x4x2x128xbf16, #tpu.memory_space<vmem>>, vector<1x1x2x128xbf16>,
    %c2_i32 = arith.constant 2 : i32
    %c0_i32_46 = arith.constant 0 : i32
    %99 = arith.cmpi eq, %arg0, %c0_i32_46 : i32
    %c3_i32_47 = arith.constant 3 : i32
    %100 = arith.subi %c3_i32_47, %c2_i32 : i32
    %101 = arith.select %99, %c2_i32, %100 : i32
    %102 = arith.truncf %93 : vector<2x128xf32> to vector<2x128xbf16>
    %c0_48 = arith.constant 0 : index
    %c0_49 = arith.constant 0 : index
    %c0_50 = arith.constant 0 : index
    %103 = vector.load %arg4[%c0_48, %c0_49, %c0_50] : memref<1x128x512xbf16, #tpu.memory_space<vmem>>, vector<1x128x512xbf16>
    %104 = vector.shape_cast %103 : vector<1x128x512xbf16> to vector<128x512xbf16>
    %cst_51 = arith.constant dense<0.000000e+00> : vector<2x512xf32>
    %105 = tpu.matmul %102, %104, %cst_51 {dimension_numbers = #tpu.dot_dimension_numbers<[1], [0], [0], [1], [0, 0, 1, 1], [], []>} : vector<2x128xbf16>, vector<128x512xbf16>, vector<2x512xf32> -> vector<2x512xf32>
    %106 = vector.broadcast %4 : vector<1x512xf32> to vector<2x512xf32>
    %107 = arith.addf %106, %105 : vector<2x512xf32>
    %c0_52 = arith.constant 0 : index
    %108 = arith.index_cast %101 : i32 to index
    %c0_53 = arith.constant 0 : index
    %c0_54 = arith.constant 0 : index
    %109 = vector.load %arg2[%c0_52, %108, %c0_53, %c0_54] : memref<1x4x2x32xbf16, #tpu.memory_space<vmem>>, vector<1x1x2x32xbf16>
    %110 = vector.shape_cast %109 : vector<1x1x2x32xbf16> to vector<2x32xbf16>
    %c0_55 = arith.constant 0 : index
    %c0_56 = arith.constant 0 : index
    %c0_57 = arith.constant 0 : index
    %c0_58 = arith.constant 0 : index
    %111 = vector.load %arg3[%c0_55, %c0_56, %c0_57, %c0_58] : memref<1x1x32x512xbf16, #tpu.memory_space<vmem>>, vector<1x1x32x512xbf16>
    %112 = vector.shape_cast %111 : vector<1x1x32x512xbf16> to vector<32x512xbf16>
    %cst_59 = arith.constant dense<0.000000e+00> : vector<2x512xf32>
    %113 = tpu.matmul %110, %112, %cst_59 {dimension_numbers = #tpu.dot_dimension_numbers<[1], [0], [0], [1], [0, 0, 1, 1], [], []>} : vector<2x32xbf16>, vector<32x512xbf16>, vector<2x512xf32> -> vector<2x512xf32>
    %114 = arith.addf %107, %113 : vector<2x512xf32>
    %115 = vector.extract_strided_slice %114 {offsets = [0, 0], sizes = [2, 128], strides = [1, 1]} : vector<2x512xf32> to vector<2x128xf32>
    %116 = arith.negf %115 : vector<2x128xf32>
    %117 = math.exp %116 : vector<2x128xf32>
    %cst_60 = arith.constant 1.000000e+00 : f32
    %118 = vector.broadcast %cst_60 : f32 to vector<2x128xf32>
    %119 = arith.addf %118, %117 : vector<2x128xf32>
    %120 = arith.divf %118, %119 : vector<2x128xf32>
    %121 = vector.extract_strided_slice %114 {offsets = [0, 128], sizes = [2, 128], strides = [1, 1]} : vector<2x512xf32> to vector<2x128xf32>
    %122 = arith.negf %121 : vector<2x128xf32>
    %123 = math.exp %122 : vector<2x128xf32>
    %cst_61 = arith.constant 1.000000e+00 : f32
    %124 = vector.broadcast %cst_61 : f32 to vector<2x128xf32>
    %125 = arith.addf %124, %123 : vector<2x128xf32>
    %126 = arith.divf %124, %125 : vector<2x128xf32>
    %127 = vector.extract_strided_slice %114 {offsets = [0, 256], sizes = [2, 128], strides = [1, 1]} : vector<2x512xf32> to vector<2x128xf32>
    %128 = math.tanh %127 : vector<2x128xf32>
    %129 = vector.extract_strided_slice %114 {offsets = [0, 384], sizes = [2, 128], strides = [1, 1]} : vector<2x512xf32> to vector<2x128xf32>
    %130 = arith.negf %129 : vector<2x128xf32>
    %131 = math.exp %130 : vector<2x128xf32>
    %cst_62 = arith.constant 1.000000e+00 : f32
    %132 = vector.broadcast %cst_62 : f32 to vector<2x128xf32>
    %133 = arith.addf %132, %131 : vector<2x128xf32>
    %134 = arith.divf %132, %133 : vector<2x128xf32>
    %135 = arith.mulf %126, %91 : vector<2x128xf32>
    %136 = arith.mulf %120, %128 : vector<2x128xf32>
    %137 = arith.addf %135, %136 : vector<2x128xf32>
    %138 = math.tanh %137 : vector<2x128xf32>
    %139 = arith.mulf %134, %138 : vector<2x128xf32>
    %140 = arith.truncf %139 : vector<2x128xf32> to vector<2x128xbf16>
    %c0_63 = arith.constant 0 : index
    %141 = arith.index_cast %101 : i32 to index
    %c0_64 = arith.constant 0 : index
    %c0_65 = arith.constant 0 : index
    %142 = vector.load %arg7[%c0_63, %141, %c0_64, %c0_65] : memref<1x4x2x128xbf16, #tpu.memory_space<vmem>>, vector<1x1x2x128xbf16>
    %143 = vector.shape_cast %142 : vector<1x1x2x128xbf16> to vector<2x128xbf16>
    %144 = vector.shape_cast %140 : vector<2x128xbf16> to vector<1x1x2x128xbf16>
    tpu.vector_store %arg7[%c0_63, %141, %c0_64, %c0_65], %144 {strides = array<i32>} : memref<1x4x2x128xbf16, #tpu.memory_space<vmem>>, vector<1x1x2x128xbf16>,
    %c3_i32_66 = arith.constant 3 : i32
    %c0_i32_67 = arith.constant 0 : i32
    %145 = arith.cmpi eq, %arg0, %c0_i32_67 : i32
    %c3_i32_68 = arith.constant 3 : i32
    %146 = arith.subi %c3_i32_68, %c3_i32_66 : i32
    %147 = arith.select %145, %c3_i32_66, %146 : i32
    %148 = arith.truncf %139 : vector<2x128xf32> to vector<2x128xbf16>
    %c0_69 = arith.constant 0 : index
    %c0_70 = arith.constant 0 : index
    %c0_71 = arith.constant 0 : index
    %149 = vector.load %arg4[%c0_69, %c0_70, %c0_71] : memref<1x128x512xbf16, #tpu.memory_space<vmem>>, vector<1x128x512xbf16>
    %150 = vector.shape_cast %149 : vector<1x128x512xbf16> to vector<128x512xbf16>
    %cst_72 = arith.constant dense<0.000000e+00> : vector<2x512xf32>
    %151 = tpu.matmul %148, %150, %cst_72 {dimension_numbers = #tpu.dot_dimension_numbers<[1], [0], [0], [1], [0, 0, 1, 1], [], []>} : vector<2x128xbf16>, vector<128x512xbf16>, vector<2x512xf32> -> vector<2x512xf32>
    %152 = vector.broadcast %4 : vector<1x512xf32> to vector<2x512xf32>
    %153 = arith.addf %152, %151 : vector<2x512xf32>
    %c0_73 = arith.constant 0 : index
    %154 = arith.index_cast %147 : i32 to index
    %c0_74 = arith.constant 0 : index
    %c0_75 = arith.constant 0 : index
    %155 = vector.load %arg2[%c0_73, %154, %c0_74, %c0_75] : memref<1x4x2x32xbf16, #tpu.memory_space<vmem>>, vector<1x1x2x32xbf16>
    %156 = vector.shape_cast %155 : vector<1x1x2x32xbf16> to vector<2x32xbf16>
    %c0_76 = arith.constant 0 : index
    %c0_77 = arith.constant 0 : index
    %c0_78 = arith.constant 0 : index
    %c0_79 = arith.constant 0 : index
    %157 = vector.load %arg3[%c0_76, %c0_77, %c0_78, %c0_79] : memref<1x1x32x512xbf16, #tpu.memory_space<vmem>>, vector<1x1x32x512xbf16>
    %158 = vector.shape_cast %157 : vector<1x1x32x512xbf16> to vector<32x512xbf16>
    %cst_80 = arith.constant dense<0.000000e+00> : vector<2x512xf32>
    %159 = tpu.matmul %156, %158, %cst_80 {dimension_numbers = #tpu.dot_dimension_numbers<[1], [0], [0], [1], [0, 0, 1, 1], [], []>} : vector<2x32xbf16>, vector<32x512xbf16>, vector<2x512xf32> -> vector<2x512xf32>
    %160 = arith.addf %153, %159 : vector<2x512xf32>
    %161 = vector.extract_strided_slice %160 {offsets = [0, 0], sizes = [2, 128], strides = [1, 1]} : vector<2x512xf32> to vector<2x128xf32>
    %162 = arith.negf %161 : vector<2x128xf32>
    %163 = math.exp %162 : vector<2x128xf32>
    %cst_81 = arith.constant 1.000000e+00 : f32
    %164 = vector.broadcast %cst_81 : f32 to vector<2x128xf32>
    %165 = arith.addf %164, %163 : vector<2x128xf32>
    %166 = arith.divf %164, %165 : vector<2x128xf32>
    %167 = vector.extract_strided_slice %160 {offsets = [0, 128], sizes = [2, 128], strides = [1, 1]} : vector<2x512xf32> to vector<2x128xf32>
    %168 = arith.negf %167 : vector<2x128xf32>
    %169 = math.exp %168 : vector<2x128xf32>
    %cst_82 = arith.constant 1.000000e+00 : f32
    %170 = vector.broadcast %cst_82 : f32 to vector<2x128xf32>
    %171 = arith.addf %170, %169 : vector<2x128xf32>
    %172 = arith.divf %170, %171 : vector<2x128xf32>
    %173 = vector.extract_strided_slice %160 {offsets = [0, 256], sizes = [2, 128], strides = [1, 1]} : vector<2x512xf32> to vector<2x128xf32>
    %174 = math.tanh %173 : vector<2x128xf32>
    %175 = vector.extract_strided_slice %160 {offsets = [0, 384], sizes = [2, 128], strides = [1, 1]} : vector<2x512xf32> to vector<2x128xf32>
    %176 = arith.negf %175 : vector<2x128xf32>
    %177 = math.exp %176 : vector<2x128xf32>
    %cst_83 = arith.constant 1.000000e+00 : f32
    %178 = vector.broadcast %cst_83 : f32 to vector<2x128xf32>
    %179 = arith.addf %178, %177 : vector<2x128xf32>
    %180 = arith.divf %178, %179 : vector<2x128xf32>
    %181 = arith.mulf %172, %137 : vector<2x128xf32>
    %182 = arith.mulf %166, %174 : vector<2x128xf32>
    %183 = arith.addf %181, %182 : vector<2x128xf32>
    %184 = math.tanh %183 : vector<2x128xf32>
    %185 = arith.mulf %180, %184 : vector<2x128xf32>
    %186 = arith.truncf %185 : vector<2x128xf32> to vector<2x128xbf16>
    %c0_84 = arith.constant 0 : index
    %187 = arith.index_cast %147 : i32 to index
    %c0_85 = arith.constant 0 : index
    %c0_86 = arith.constant 0 : index
    %188 = vector.load %arg7[%c0_84, %187, %c0_85, %c0_86] : memref<1x4x2x128xbf16, #tpu.memory_space<vmem>>, vector<1x1x2x128xbf16>
    %189 = vector.shape_cast %188 : vector<1x1x2x128xbf16> to vector<2x128xbf16>
    %190 = vector.shape_cast %186 : vector<2x128xbf16> to vector<1x1x2x128xbf16>
    tpu.vector_store %arg7[%c0_84, %187, %c0_85, %c0_86], %190 {strides = array<i32>} : memref<1x4x2x128xbf16, #tpu.memory_space<vmem>>, vector<1x1x2x128xbf16>,
    %c4_i32 = arith.constant 4 : i32
    %c0_87 = arith.constant 0 : index
    %c0_88 = arith.constant 0 : index
    %191 = vector.load %arg9[%c0_87, %c0_88] : memref<2x128xf32, #tpu.memory_space<vmem>>, vector<2x128xf32>
    tpu.vector_store %arg9[%c0_87, %c0_88], %185 {strides = array<i32>} : memref<2x128xf32, #tpu.memory_space<vmem>>, vector<2x128xf32>,
    %c0_89 = arith.constant 0 : index
    %c0_90 = arith.constant 0 : index
    %192 = vector.load %arg10[%c0_89, %c0_90] : memref<2x128xf32, #tpu.memory_space<vmem>>, vector<2x128xf32>
    tpu.vector_store %arg10[%c0_89, %c0_90], %183 {strides = array<i32>} : memref<2x128xf32, #tpu.memory_space<vmem>>, vector<2x128xf32>,
    %c0_91 = arith.constant 0 : index
    %c0_92 = arith.constant 0 : index
    %c0_93 = arith.constant 0 : index
    %c0_94 = arith.constant 0 : index
    %193 = vector.load %arg8[%c0_91, %c0_92, %c0_93, %c0_94] : memref<1x2x2x128xf32, #tpu.memory_space<vmem>>, vector<1x1x2x128xf32>
    %194 = vector.shape_cast %193 : vector<1x1x2x128xf32> to vector<2x128xf32>
    %195 = vector.shape_cast %185 : vector<2x128xf32> to vector<1x1x2x128xf32>
    tpu.vector_store %arg8[%c0_91, %c0_92, %c0_93, %c0_94], %195 {strides = array<i32>} : memref<1x2x2x128xf32, #tpu.memory_space<vmem>>, vector<1x1x2x128xf32>,
    %c0_95 = arith.constant 0 : index
    %c1 = arith.constant 1 : index
    %c0_96 = arith.constant 0 : index
    %c0_97 = arith.constant 0 : index
    %196 = vector.load %arg8[%c0_95, %c1, %c0_96, %c0_97] : memref<1x2x2x128xf32, #tpu.memory_space<vmem>>, vector<1x1x2x128xf32>
    %197 = vector.shape_cast %196 : vector<1x1x2x128xf32> to vector<2x128xf32>
    %198 = vector.shape_cast %183 : vector<2x128xf32> to vector<1x1x2x128xf32>
    tpu.vector_store %arg8[%c0_95, %c1, %c0_96, %c0_97], %198 {strides = array<i32>} : memref<1x2x2x128xf32, #tpu.memory_space<vmem>>, vector<1x1x2x128xf32>,
    return
  }
  func.func @transform_0(%arg0: i32, %arg1: i32) -> (i32, i32, i32, i32) {
    %c1_i32 = arith.constant 1 : i32
    %0 = arith.subi %c1_i32, %arg0 : i32
    %1 = arith.muli %0, %arg1 : i32
    %c1_i32_0 = arith.constant 1 : i32
    %2 = arith.subi %c1_i32_0, %arg1 : i32
    %3 = arith.muli %arg0, %2 : i32
    %4 = arith.addi %1, %3 : i32
    %c0_i32 = arith.constant 0 : i32
    %c0_i32_1 = arith.constant 0 : i32
    %c0_i32_2 = arith.constant 0 : i32
    %c0_i32_3 = arith.constant 0 : i32
    return %c0_i32, %4, %c0_i32_1, %c0_i32_2 : i32, i32, i32, i32
  }
  func.func @transform_1(%arg0: i32, %arg1: i32) -> (i32, i32, i32, i32) {
    %c0_i32 = arith.constant 0 : i32
    %c0_i32_0 = arith.constant 0 : i32
    %c0_i32_1 = arith.constant 0 : i32
    %c0_i32_2 = arith.constant 0 : i32
    return %arg0, %c0_i32, %c0_i32_0, %c0_i32_1 : i32, i32, i32, i32
  }
  func.func @transform_2(%arg0: i32, %arg1: i32) -> (i32, i32, i32) {
    %c0_i32 = arith.constant 0 : i32
    %c0_i32_0 = arith.constant 0 : i32
    %c0_i32_1 = arith.constant 0 : i32
    return %arg0, %c0_i32, %c0_i32_0 : i32, i32, i32
  }
  func.func @transform_3(%arg0: i32, %arg1: i32) -> (i32, i32, i32) {
    %c0_i32 = arith.constant 0 : i32
    %c0_i32_0 = arith.constant 0 : i32
    %c0_i32_1 = arith.constant 0 : i32
    return %arg0, %c0_i32, %c0_i32_0 : i32, i32, i32
  }
  func.func @transform_4(%arg0: i32, %arg1: i32) -> (i32, i32, i32, i32) {
    %c0_i32 = arith.constant 0 : i32
    %c0_i32_0 = arith.constant 0 : i32
    %c0_i32_1 = arith.constant 0 : i32
    %c0_i32_2 = arith.constant 0 : i32
    return %arg0, %c0_i32, %c0_i32_0, %c0_i32_1 : i32, i32, i32, i32
  }
  func.func @transform_5(%arg0: i32, %arg1: i32) -> (i32, i32, i32, i32) {
    %c1_i32 = arith.constant 1 : i32
    %0 = arith.subi %c1_i32, %arg0 : i32
    %1 = arith.muli %0, %arg1 : i32
    %c1_i32_0 = arith.constant 1 : i32
    %2 = arith.subi %c1_i32_0, %arg1 : i32
    %3 = arith.muli %arg0, %2 : i32
    %4 = arith.addi %1, %3 : i32
    %c0_i32 = arith.constant 0 : i32
    %c0_i32_1 = arith.constant 0 : i32
    %c0_i32_2 = arith.constant 0 : i32
    return %arg0, %4, %c0_i32, %c0_i32_1 : i32, i32, i32, i32
  }
  func.func @transform_6(%arg0: i32, %arg1: i32) -> (i32, i32, i32, i32) {
    %c0_i32 = arith.constant 0 : i32
    %c0_i32_0 = arith.constant 0 : i32
    %c0_i32_1 = arith.constant 0 : i32
    %c0_i32_2 = arith.constant 0 : i32
    return %arg0, %c0_i32, %c0_i32_0, %c0_i32_1 : i32, i32, i32, i32
  }
}

module attributes {stable_mosaic.version = 11 : i64} {
  func.func @_lstm_layer_kernel(%arg0: i32, %arg1: i32, %arg2: memref<2x4x2x128xbf16, #tpu.memory_space<vmem>>, %arg3: memref<1x2x128x512xbf16, #tpu.memory_space<vmem>>, %arg4: memref<1x128x512xbf16, #tpu.memory_space<vmem>>, %arg5: memref<1x1x512xf32, #tpu.memory_space<vmem>>, %arg6: memref<1x2x2x128xf32, #tpu.memory_space<vmem>>, %arg7: memref<1x4x2x128xf32, #tpu.memory_space<vmem>>, %arg8: memref<1x2x2x128xf32, #tpu.memory_space<vmem>>, %arg9: memref<2x128xf32, #tpu.memory_space<vmem>>, %arg10: memref<2x128xf32, #tpu.memory_space<vmem>>) attributes {dimension_semantics = [#tpu.dimension_semantics<parallel>, #tpu.dimension_semantics<arbitrary>], iteration_bounds = array<i64: 2, 2>, scalar_prefetch = 0 : i64, scratch_operands = 2 : i64, tpu.core_type = #tpu.core_type<tc>, window_params = [{transform_indices = @transform_0, window_bounds = array<i64: 2, 4, 2, 128>}, {transform_indices = @transform_1, window_bounds = array<i64: 1, 2, 128, 512>}, {transform_indices = @transform_2, window_bounds = array<i64: 1, 128, 512>}, {transform_indices = @transform_3, window_bounds = array<i64: 1, 1, 512>}, {transform_indices = @transform_4, window_bounds = array<i64: 1, 2, 2, 128>}, {transform_indices = @transform_5, window_bounds = array<i64: 1, 4, 2, 128>}, {transform_indices = @transform_6, window_bounds = array<i64: 1, 2, 2, 128>}]} {
    %c0_i32 = arith.constant 0 : i32
    %0 = arith.cmpi eq, %arg1, %c0_i32 : i32
    %1 = arith.extui %0 : i1 to i32
    %c0_i32_0 = arith.constant 0 : i32
    %2 = arith.cmpi ne, %1, %c0_i32_0 : i32
    scf.if %2 {
      %c0_130 = arith.constant 0 : index
      %c0_131 = arith.constant 0 : index
      %c0_132 = arith.constant 0 : index
      %c0_133 = arith.constant 0 : index
      %223 = vector.load %arg6[%c0_130, %c0_131, %c0_132, %c0_133] : memref<1x2x2x128xf32, #tpu.memory_space<vmem>>, vector<1x1x2x128xf32>
      %224 = vector.shape_cast %223 : vector<1x1x2x128xf32> to vector<2x128xf32>
      %c0_134 = arith.constant 0 : index
      %c0_135 = arith.constant 0 : index
      %225 = vector.load %arg9[%c0_134, %c0_135] : memref<2x128xf32, #tpu.memory_space<vmem>>, vector<2x128xf32>
      tpu.vector_store %arg9[%c0_134, %c0_135], %224 {strides = array<i32>} : memref<2x128xf32, #tpu.memory_space<vmem>>, vector<2x128xf32>,
      %c0_136 = arith.constant 0 : index
      %c1_137 = arith.constant 1 : index
      %c0_138 = arith.constant 0 : index
      %c0_139 = arith.constant 0 : index
      %226 = vector.load %arg6[%c0_136, %c1_137, %c0_138, %c0_139] : memref<1x2x2x128xf32, #tpu.memory_space<vmem>>, vector<1x1x2x128xf32>
      %227 = vector.shape_cast %226 : vector<1x1x2x128xf32> to vector<2x128xf32>
      %c0_140 = arith.constant 0 : index
      %c0_141 = arith.constant 0 : index
      %228 = vector.load %arg10[%c0_140, %c0_141] : memref<2x128xf32, #tpu.memory_space<vmem>>, vector<2x128xf32>
      tpu.vector_store %arg10[%c0_140, %c0_141], %227 {strides = array<i32>} : memref<2x128xf32, #tpu.memory_space<vmem>>, vector<2x128xf32>,
    } else {
    }
    %c0 = arith.constant 0 : index
    %c0_1 = arith.constant 0 : index
    %c0_2 = arith.constant 0 : index
    %3 = vector.load %arg5[%c0, %c0_1, %c0_2] : memref<1x1x512xf32, #tpu.memory_space<vmem>>, vector<1x1x512xf32>
    %4 = vector.shape_cast %3 : vector<1x1x512xf32> to vector<1x512xf32>
    %c0_3 = arith.constant 0 : index
    %c0_4 = arith.constant 0 : index
    %5 = vector.load %arg9[%c0_3, %c0_4] : memref<2x128xf32, #tpu.memory_space<vmem>>, vector<2x128xf32>
    %c0_5 = arith.constant 0 : index
    %c0_6 = arith.constant 0 : index
    %6 = vector.load %arg10[%c0_5, %c0_6] : memref<2x128xf32, #tpu.memory_space<vmem>>, vector<2x128xf32>
    %c0_i32_7 = arith.constant 0 : i32
    %c0_i32_8 = arith.constant 0 : i32
    %7 = arith.cmpi eq, %arg0, %c0_i32_8 : i32
    %c3_i32 = arith.constant 3 : i32
    %8 = arith.subi %c3_i32, %c0_i32_7 : i32
    %9 = arith.select %7, %c0_i32_7, %8 : i32
    %10 = arith.truncf %5 : vector<2x128xf32> to vector<2x128xbf16>
    %c0_9 = arith.constant 0 : index
    %c0_10 = arith.constant 0 : index
    %c0_11 = arith.constant 0 : index
    %11 = vector.load %arg4[%c0_9, %c0_10, %c0_11] : memref<1x128x512xbf16, #tpu.memory_space<vmem>>, vector<1x128x512xbf16>
    %12 = vector.shape_cast %11 : vector<1x128x512xbf16> to vector<128x512xbf16>
    %cst = arith.constant dense<0.000000e+00> : vector<2x512xf32>
    %13 = tpu.matmul %10, %12, %cst {dimension_numbers = #tpu.dot_dimension_numbers<[1], [0], [0], [1], [0, 0, 1, 1], [], []>} : vector<2x128xbf16>, vector<128x512xbf16>, vector<2x512xf32> -> vector<2x512xf32>
    %14 = vector.broadcast %4 : vector<1x512xf32> to vector<2x512xf32>
    %15 = arith.addf %14, %13 : vector<2x512xf32>
    %c0_12 = arith.constant 0 : index
    %16 = arith.index_cast %9 : i32 to index
    %c0_13 = arith.constant 0 : index
    %c0_14 = arith.constant 0 : index
    %17 = vector.load %arg2[%c0_12, %16, %c0_13, %c0_14] : memref<2x4x2x128xbf16, #tpu.memory_space<vmem>>, vector<1x1x2x128xbf16>
    %18 = vector.shape_cast %17 : vector<1x1x2x128xbf16> to vector<2x128xbf16>
    %c0_15 = arith.constant 0 : index
    %c0_16 = arith.constant 0 : index
    %c0_17 = arith.constant 0 : index
    %c0_18 = arith.constant 0 : index
    %19 = vector.load %arg3[%c0_15, %c0_16, %c0_17, %c0_18] : memref<1x2x128x512xbf16, #tpu.memory_space<vmem>>, vector<1x1x128x512xbf16>
    %20 = vector.shape_cast %19 : vector<1x1x128x512xbf16> to vector<128x512xbf16>
    %cst_19 = arith.constant dense<0.000000e+00> : vector<2x512xf32>
    %21 = tpu.matmul %18, %20, %cst_19 {dimension_numbers = #tpu.dot_dimension_numbers<[1], [0], [0], [1], [0, 0, 1, 1], [], []>} : vector<2x128xbf16>, vector<128x512xbf16>, vector<2x512xf32> -> vector<2x512xf32>
    %22 = arith.addf %15, %21 : vector<2x512xf32>
    %c1 = arith.constant 1 : index
    %23 = arith.index_cast %9 : i32 to index
    %c0_20 = arith.constant 0 : index
    %c0_21 = arith.constant 0 : index
    %24 = vector.load %arg2[%c1, %23, %c0_20, %c0_21] : memref<2x4x2x128xbf16, #tpu.memory_space<vmem>>, vector<1x1x2x128xbf16>
    %25 = vector.shape_cast %24 : vector<1x1x2x128xbf16> to vector<2x128xbf16>
    %c0_22 = arith.constant 0 : index
    %c1_23 = arith.constant 1 : index
    %c0_24 = arith.constant 0 : index
    %c0_25 = arith.constant 0 : index
    %26 = vector.load %arg3[%c0_22, %c1_23, %c0_24, %c0_25] : memref<1x2x128x512xbf16, #tpu.memory_space<vmem>>, vector<1x1x128x512xbf16>
    %27 = vector.shape_cast %26 : vector<1x1x128x512xbf16> to vector<128x512xbf16>
    %cst_26 = arith.constant dense<0.000000e+00> : vector<2x512xf32>
    %28 = tpu.matmul %25, %27, %cst_26 {dimension_numbers = #tpu.dot_dimension_numbers<[1], [0], [0], [1], [0, 0, 1, 1], [], []>} : vector<2x128xbf16>, vector<128x512xbf16>, vector<2x512xf32> -> vector<2x512xf32>
    %29 = arith.addf %22, %28 : vector<2x512xf32>
    %30 = vector.extract_strided_slice %29 {offsets = [0, 0], sizes = [2, 128], strides = [1, 1]} : vector<2x512xf32> to vector<2x128xf32>
    %31 = arith.negf %30 : vector<2x128xf32>
    %32 = math.exp %31 : vector<2x128xf32>
    %cst_27 = arith.constant 1.000000e+00 : f32
    %33 = vector.broadcast %cst_27 : f32 to vector<2x128xf32>
    %34 = arith.addf %33, %32 : vector<2x128xf32>
    %35 = arith.divf %33, %34 : vector<2x128xf32>
    %36 = vector.extract_strided_slice %29 {offsets = [0, 128], sizes = [2, 128], strides = [1, 1]} : vector<2x512xf32> to vector<2x128xf32>
    %37 = arith.negf %36 : vector<2x128xf32>
    %38 = math.exp %37 : vector<2x128xf32>
    %cst_28 = arith.constant 1.000000e+00 : f32
    %39 = vector.broadcast %cst_28 : f32 to vector<2x128xf32>
    %40 = arith.addf %39, %38 : vector<2x128xf32>
    %41 = arith.divf %39, %40 : vector<2x128xf32>
    %42 = vector.extract_strided_slice %29 {offsets = [0, 256], sizes = [2, 128], strides = [1, 1]} : vector<2x512xf32> to vector<2x128xf32>
    %43 = math.tanh %42 : vector<2x128xf32>
    %44 = vector.extract_strided_slice %29 {offsets = [0, 384], sizes = [2, 128], strides = [1, 1]} : vector<2x512xf32> to vector<2x128xf32>
    %45 = arith.negf %44 : vector<2x128xf32>
    %46 = math.exp %45 : vector<2x128xf32>
    %cst_29 = arith.constant 1.000000e+00 : f32
    %47 = vector.broadcast %cst_29 : f32 to vector<2x128xf32>
    %48 = arith.addf %47, %46 : vector<2x128xf32>
    %49 = arith.divf %47, %48 : vector<2x128xf32>
    %50 = arith.mulf %41, %6 : vector<2x128xf32>
    %51 = arith.mulf %35, %43 : vector<2x128xf32>
    %52 = arith.addf %50, %51 : vector<2x128xf32>
    %53 = math.tanh %52 : vector<2x128xf32>
    %54 = arith.mulf %49, %53 : vector<2x128xf32>
    %c0_30 = arith.constant 0 : index
    %55 = arith.index_cast %9 : i32 to index
    %c0_31 = arith.constant 0 : index
    %c0_32 = arith.constant 0 : index
    %56 = vector.load %arg7[%c0_30, %55, %c0_31, %c0_32] : memref<1x4x2x128xf32, #tpu.memory_space<vmem>>, vector<1x1x2x128xf32>
    %57 = vector.shape_cast %56 : vector<1x1x2x128xf32> to vector<2x128xf32>
    %58 = vector.shape_cast %54 : vector<2x128xf32> to vector<1x1x2x128xf32>
    tpu.vector_store %arg7[%c0_30, %55, %c0_31, %c0_32], %58 {strides = array<i32>} : memref<1x4x2x128xf32, #tpu.memory_space<vmem>>, vector<1x1x2x128xf32>,
    %c1_i32 = arith.constant 1 : i32
    %c0_i32_33 = arith.constant 0 : i32
    %59 = arith.cmpi eq, %arg0, %c0_i32_33 : i32
    %c3_i32_34 = arith.constant 3 : i32
    %60 = arith.subi %c3_i32_34, %c1_i32 : i32
    %61 = arith.select %59, %c1_i32, %60 : i32
    %62 = arith.truncf %54 : vector<2x128xf32> to vector<2x128xbf16>
    %c0_35 = arith.constant 0 : index
    %c0_36 = arith.constant 0 : index
    %c0_37 = arith.constant 0 : index
    %63 = vector.load %arg4[%c0_35, %c0_36, %c0_37] : memref<1x128x512xbf16, #tpu.memory_space<vmem>>, vector<1x128x512xbf16>
    %64 = vector.shape_cast %63 : vector<1x128x512xbf16> to vector<128x512xbf16>
    %cst_38 = arith.constant dense<0.000000e+00> : vector<2x512xf32>
    %65 = tpu.matmul %62, %64, %cst_38 {dimension_numbers = #tpu.dot_dimension_numbers<[1], [0], [0], [1], [0, 0, 1, 1], [], []>} : vector<2x128xbf16>, vector<128x512xbf16>, vector<2x512xf32> -> vector<2x512xf32>
    %66 = vector.broadcast %4 : vector<1x512xf32> to vector<2x512xf32>
    %67 = arith.addf %66, %65 : vector<2x512xf32>
    %c0_39 = arith.constant 0 : index
    %68 = arith.index_cast %61 : i32 to index
    %c0_40 = arith.constant 0 : index
    %c0_41 = arith.constant 0 : index
    %69 = vector.load %arg2[%c0_39, %68, %c0_40, %c0_41] : memref<2x4x2x128xbf16, #tpu.memory_space<vmem>>, vector<1x1x2x128xbf16>
    %70 = vector.shape_cast %69 : vector<1x1x2x128xbf16> to vector<2x128xbf16>
    %c0_42 = arith.constant 0 : index
    %c0_43 = arith.constant 0 : index
    %c0_44 = arith.constant 0 : index
    %c0_45 = arith.constant 0 : index
    %71 = vector.load %arg3[%c0_42, %c0_43, %c0_44, %c0_45] : memref<1x2x128x512xbf16, #tpu.memory_space<vmem>>, vector<1x1x128x512xbf16>
    %72 = vector.shape_cast %71 : vector<1x1x128x512xbf16> to vector<128x512xbf16>
    %cst_46 = arith.constant dense<0.000000e+00> : vector<2x512xf32>
    %73 = tpu.matmul %70, %72, %cst_46 {dimension_numbers = #tpu.dot_dimension_numbers<[1], [0], [0], [1], [0, 0, 1, 1], [], []>} : vector<2x128xbf16>, vector<128x512xbf16>, vector<2x512xf32> -> vector<2x512xf32>
    %74 = arith.addf %67, %73 : vector<2x512xf32>
    %c1_47 = arith.constant 1 : index
    %75 = arith.index_cast %61 : i32 to index
    %c0_48 = arith.constant 0 : index
    %c0_49 = arith.constant 0 : index
    %76 = vector.load %arg2[%c1_47, %75, %c0_48, %c0_49] : memref<2x4x2x128xbf16, #tpu.memory_space<vmem>>, vector<1x1x2x128xbf16>
    %77 = vector.shape_cast %76 : vector<1x1x2x128xbf16> to vector<2x128xbf16>
    %c0_50 = arith.constant 0 : index
    %c1_51 = arith.constant 1 : index
    %c0_52 = arith.constant 0 : index
    %c0_53 = arith.constant 0 : index
    %78 = vector.load %arg3[%c0_50, %c1_51, %c0_52, %c0_53] : memref<1x2x128x512xbf16, #tpu.memory_space<vmem>>, vector<1x1x128x512xbf16>
    %79 = vector.shape_cast %78 : vector<1x1x128x512xbf16> to vector<128x512xbf16>
    %cst_54 = arith.constant dense<0.000000e+00> : vector<2x512xf32>
    %80 = tpu.matmul %77, %79, %cst_54 {dimension_numbers = #tpu.dot_dimension_numbers<[1], [0], [0], [1], [0, 0, 1, 1], [], []>} : vector<2x128xbf16>, vector<128x512xbf16>, vector<2x512xf32> -> vector<2x512xf32>
    %81 = arith.addf %74, %80 : vector<2x512xf32>
    %82 = vector.extract_strided_slice %81 {offsets = [0, 0], sizes = [2, 128], strides = [1, 1]} : vector<2x512xf32> to vector<2x128xf32>
    %83 = arith.negf %82 : vector<2x128xf32>
    %84 = math.exp %83 : vector<2x128xf32>
    %cst_55 = arith.constant 1.000000e+00 : f32
    %85 = vector.broadcast %cst_55 : f32 to vector<2x128xf32>
    %86 = arith.addf %85, %84 : vector<2x128xf32>
    %87 = arith.divf %85, %86 : vector<2x128xf32>
    %88 = vector.extract_strided_slice %81 {offsets = [0, 128], sizes = [2, 128], strides = [1, 1]} : vector<2x512xf32> to vector<2x128xf32>
    %89 = arith.negf %88 : vector<2x128xf32>
    %90 = math.exp %89 : vector<2x128xf32>
    %cst_56 = arith.constant 1.000000e+00 : f32
    %91 = vector.broadcast %cst_56 : f32 to vector<2x128xf32>
    %92 = arith.addf %91, %90 : vector<2x128xf32>
    %93 = arith.divf %91, %92 : vector<2x128xf32>
    %94 = vector.extract_strided_slice %81 {offsets = [0, 256], sizes = [2, 128], strides = [1, 1]} : vector<2x512xf32> to vector<2x128xf32>
    %95 = math.tanh %94 : vector<2x128xf32>
    %96 = vector.extract_strided_slice %81 {offsets = [0, 384], sizes = [2, 128], strides = [1, 1]} : vector<2x512xf32> to vector<2x128xf32>
    %97 = arith.negf %96 : vector<2x128xf32>
    %98 = math.exp %97 : vector<2x128xf32>
    %cst_57 = arith.constant 1.000000e+00 : f32
    %99 = vector.broadcast %cst_57 : f32 to vector<2x128xf32>
    %100 = arith.addf %99, %98 : vector<2x128xf32>
    %101 = arith.divf %99, %100 : vector<2x128xf32>
    %102 = arith.mulf %93, %52 : vector<2x128xf32>
    %103 = arith.mulf %87, %95 : vector<2x128xf32>
    %104 = arith.addf %102, %103 : vector<2x128xf32>
    %105 = math.tanh %104 : vector<2x128xf32>
    %106 = arith.mulf %101, %105 : vector<2x128xf32>
    %c0_58 = arith.constant 0 : index
    %107 = arith.index_cast %61 : i32 to index
    %c0_59 = arith.constant 0 : index
    %c0_60 = arith.constant 0 : index
    %108 = vector.load %arg7[%c0_58, %107, %c0_59, %c0_60] : memref<1x4x2x128xf32, #tpu.memory_space<vmem>>, vector<1x1x2x128xf32>
    %109 = vector.shape_cast %108 : vector<1x1x2x128xf32> to vector<2x128xf32>
    %110 = vector.shape_cast %106 : vector<2x128xf32> to vector<1x1x2x128xf32>
    tpu.vector_store %arg7[%c0_58, %107, %c0_59, %c0_60], %110 {strides = array<i32>} : memref<1x4x2x128xf32, #tpu.memory_space<vmem>>, vector<1x1x2x128xf32>,
    %c2_i32 = arith.constant 2 : i32
    %c0_i32_61 = arith.constant 0 : i32
    %111 = arith.cmpi eq, %arg0, %c0_i32_61 : i32
    %c3_i32_62 = arith.constant 3 : i32
    %112 = arith.subi %c3_i32_62, %c2_i32 : i32
    %113 = arith.select %111, %c2_i32, %112 : i32
    %114 = arith.truncf %106 : vector<2x128xf32> to vector<2x128xbf16>
    %c0_63 = arith.constant 0 : index
    %c0_64 = arith.constant 0 : index
    %c0_65 = arith.constant 0 : index
    %115 = vector.load %arg4[%c0_63, %c0_64, %c0_65] : memref<1x128x512xbf16, #tpu.memory_space<vmem>>, vector<1x128x512xbf16>
    %116 = vector.shape_cast %115 : vector<1x128x512xbf16> to vector<128x512xbf16>
    %cst_66 = arith.constant dense<0.000000e+00> : vector<2x512xf32>
    %117 = tpu.matmul %114, %116, %cst_66 {dimension_numbers = #tpu.dot_dimension_numbers<[1], [0], [0], [1], [0, 0, 1, 1], [], []>} : vector<2x128xbf16>, vector<128x512xbf16>, vector<2x512xf32> -> vector<2x512xf32>
    %118 = vector.broadcast %4 : vector<1x512xf32> to vector<2x512xf32>
    %119 = arith.addf %118, %117 : vector<2x512xf32>
    %c0_67 = arith.constant 0 : index
    %120 = arith.index_cast %113 : i32 to index
    %c0_68 = arith.constant 0 : index
    %c0_69 = arith.constant 0 : index
    %121 = vector.load %arg2[%c0_67, %120, %c0_68, %c0_69] : memref<2x4x2x128xbf16, #tpu.memory_space<vmem>>, vector<1x1x2x128xbf16>
    %122 = vector.shape_cast %121 : vector<1x1x2x128xbf16> to vector<2x128xbf16>
    %c0_70 = arith.constant 0 : index
    %c0_71 = arith.constant 0 : index
    %c0_72 = arith.constant 0 : index
    %c0_73 = arith.constant 0 : index
    %123 = vector.load %arg3[%c0_70, %c0_71, %c0_72, %c0_73] : memref<1x2x128x512xbf16, #tpu.memory_space<vmem>>, vector<1x1x128x512xbf16>
    %124 = vector.shape_cast %123 : vector<1x1x128x512xbf16> to vector<128x512xbf16>
    %cst_74 = arith.constant dense<0.000000e+00> : vector<2x512xf32>
    %125 = tpu.matmul %122, %124, %cst_74 {dimension_numbers = #tpu.dot_dimension_numbers<[1], [0], [0], [1], [0, 0, 1, 1], [], []>} : vector<2x128xbf16>, vector<128x512xbf16>, vector<2x512xf32> -> vector<2x512xf32>
    %126 = arith.addf %119, %125 : vector<2x512xf32>
    %c1_75 = arith.constant 1 : index
    %127 = arith.index_cast %113 : i32 to index
    %c0_76 = arith.constant 0 : index
    %c0_77 = arith.constant 0 : index
    %128 = vector.load %arg2[%c1_75, %127, %c0_76, %c0_77] : memref<2x4x2x128xbf16, #tpu.memory_space<vmem>>, vector<1x1x2x128xbf16>
    %129 = vector.shape_cast %128 : vector<1x1x2x128xbf16> to vector<2x128xbf16>
    %c0_78 = arith.constant 0 : index
    %c1_79 = arith.constant 1 : index
    %c0_80 = arith.constant 0 : index
    %c0_81 = arith.constant 0 : index
    %130 = vector.load %arg3[%c0_78, %c1_79, %c0_80, %c0_81] : memref<1x2x128x512xbf16, #tpu.memory_space<vmem>>, vector<1x1x128x512xbf16>
    %131 = vector.shape_cast %130 : vector<1x1x128x512xbf16> to vector<128x512xbf16>
    %cst_82 = arith.constant dense<0.000000e+00> : vector<2x512xf32>
    %132 = tpu.matmul %129, %131, %cst_82 {dimension_numbers = #tpu.dot_dimension_numbers<[1], [0], [0], [1], [0, 0, 1, 1], [], []>} : vector<2x128xbf16>, vector<128x512xbf16>, vector<2x512xf32> -> vector<2x512xf32>
    %133 = arith.addf %126, %132 : vector<2x512xf32>
    %134 = vector.extract_strided_slice %133 {offsets = [0, 0], sizes = [2, 128], strides = [1, 1]} : vector<2x512xf32> to vector<2x128xf32>
    %135 = arith.negf %134 : vector<2x128xf32>
    %136 = math.exp %135 : vector<2x128xf32>
    %cst_83 = arith.constant 1.000000e+00 : f32
    %137 = vector.broadcast %cst_83 : f32 to vector<2x128xf32>
    %138 = arith.addf %137, %136 : vector<2x128xf32>
    %139 = arith.divf %137, %138 : vector<2x128xf32>
    %140 = vector.extract_strided_slice %133 {offsets = [0, 128], sizes = [2, 128], strides = [1, 1]} : vector<2x512xf32> to vector<2x128xf32>
    %141 = arith.negf %140 : vector<2x128xf32>
    %142 = math.exp %141 : vector<2x128xf32>
    %cst_84 = arith.constant 1.000000e+00 : f32
    %143 = vector.broadcast %cst_84 : f32 to vector<2x128xf32>
    %144 = arith.addf %143, %142 : vector<2x128xf32>
    %145 = arith.divf %143, %144 : vector<2x128xf32>
    %146 = vector.extract_strided_slice %133 {offsets = [0, 256], sizes = [2, 128], strides = [1, 1]} : vector<2x512xf32> to vector<2x128xf32>
    %147 = math.tanh %146 : vector<2x128xf32>
    %148 = vector.extract_strided_slice %133 {offsets = [0, 384], sizes = [2, 128], strides = [1, 1]} : vector<2x512xf32> to vector<2x128xf32>
    %149 = arith.negf %148 : vector<2x128xf32>
    %150 = math.exp %149 : vector<2x128xf32>
    %cst_85 = arith.constant 1.000000e+00 : f32
    %151 = vector.broadcast %cst_85 : f32 to vector<2x128xf32>
    %152 = arith.addf %151, %150 : vector<2x128xf32>
    %153 = arith.divf %151, %152 : vector<2x128xf32>
    %154 = arith.mulf %145, %104 : vector<2x128xf32>
    %155 = arith.mulf %139, %147 : vector<2x128xf32>
    %156 = arith.addf %154, %155 : vector<2x128xf32>
    %157 = math.tanh %156 : vector<2x128xf32>
    %158 = arith.mulf %153, %157 : vector<2x128xf32>
    %c0_86 = arith.constant 0 : index
    %159 = arith.index_cast %113 : i32 to index
    %c0_87 = arith.constant 0 : index
    %c0_88 = arith.constant 0 : index
    %160 = vector.load %arg7[%c0_86, %159, %c0_87, %c0_88] : memref<1x4x2x128xf32, #tpu.memory_space<vmem>>, vector<1x1x2x128xf32>
    %161 = vector.shape_cast %160 : vector<1x1x2x128xf32> to vector<2x128xf32>
    %162 = vector.shape_cast %158 : vector<2x128xf32> to vector<1x1x2x128xf32>
    tpu.vector_store %arg7[%c0_86, %159, %c0_87, %c0_88], %162 {strides = array<i32>} : memref<1x4x2x128xf32, #tpu.memory_space<vmem>>, vector<1x1x2x128xf32>,
    %c3_i32_89 = arith.constant 3 : i32
    %c0_i32_90 = arith.constant 0 : i32
    %163 = arith.cmpi eq, %arg0, %c0_i32_90 : i32
    %c3_i32_91 = arith.constant 3 : i32
    %164 = arith.subi %c3_i32_91, %c3_i32_89 : i32
    %165 = arith.select %163, %c3_i32_89, %164 : i32
    %166 = arith.truncf %158 : vector<2x128xf32> to vector<2x128xbf16>
    %c0_92 = arith.constant 0 : index
    %c0_93 = arith.constant 0 : index
    %c0_94 = arith.constant 0 : index
    %167 = vector.load %arg4[%c0_92, %c0_93, %c0_94] : memref<1x128x512xbf16, #tpu.memory_space<vmem>>, vector<1x128x512xbf16>
    %168 = vector.shape_cast %167 : vector<1x128x512xbf16> to vector<128x512xbf16>
    %cst_95 = arith.constant dense<0.000000e+00> : vector<2x512xf32>
    %169 = tpu.matmul %166, %168, %cst_95 {dimension_numbers = #tpu.dot_dimension_numbers<[1], [0], [0], [1], [0, 0, 1, 1], [], []>} : vector<2x128xbf16>, vector<128x512xbf16>, vector<2x512xf32> -> vector<2x512xf32>
    %170 = vector.broadcast %4 : vector<1x512xf32> to vector<2x512xf32>
    %171 = arith.addf %170, %169 : vector<2x512xf32>
    %c0_96 = arith.constant 0 : index
    %172 = arith.index_cast %165 : i32 to index
    %c0_97 = arith.constant 0 : index
    %c0_98 = arith.constant 0 : index
    %173 = vector.load %arg2[%c0_96, %172, %c0_97, %c0_98] : memref<2x4x2x128xbf16, #tpu.memory_space<vmem>>, vector<1x1x2x128xbf16>
    %174 = vector.shape_cast %173 : vector<1x1x2x128xbf16> to vector<2x128xbf16>
    %c0_99 = arith.constant 0 : index
    %c0_100 = arith.constant 0 : index
    %c0_101 = arith.constant 0 : index
    %c0_102 = arith.constant 0 : index
    %175 = vector.load %arg3[%c0_99, %c0_100, %c0_101, %c0_102] : memref<1x2x128x512xbf16, #tpu.memory_space<vmem>>, vector<1x1x128x512xbf16>
    %176 = vector.shape_cast %175 : vector<1x1x128x512xbf16> to vector<128x512xbf16>
    %cst_103 = arith.constant dense<0.000000e+00> : vector<2x512xf32>
    %177 = tpu.matmul %174, %176, %cst_103 {dimension_numbers = #tpu.dot_dimension_numbers<[1], [0], [0], [1], [0, 0, 1, 1], [], []>} : vector<2x128xbf16>, vector<128x512xbf16>, vector<2x512xf32> -> vector<2x512xf32>
    %178 = arith.addf %171, %177 : vector<2x512xf32>
    %c1_104 = arith.constant 1 : index
    %179 = arith.index_cast %165 : i32 to index
    %c0_105 = arith.constant 0 : index
    %c0_106 = arith.constant 0 : index
    %180 = vector.load %arg2[%c1_104, %179, %c0_105, %c0_106] : memref<2x4x2x128xbf16, #tpu.memory_space<vmem>>, vector<1x1x2x128xbf16>
    %181 = vector.shape_cast %180 : vector<1x1x2x128xbf16> to vector<2x128xbf16>
    %c0_107 = arith.constant 0 : index
    %c1_108 = arith.constant 1 : index
    %c0_109 = arith.constant 0 : index
    %c0_110 = arith.constant 0 : index
    %182 = vector.load %arg3[%c0_107, %c1_108, %c0_109, %c0_110] : memref<1x2x128x512xbf16, #tpu.memory_space<vmem>>, vector<1x1x128x512xbf16>
    %183 = vector.shape_cast %182 : vector<1x1x128x512xbf16> to vector<128x512xbf16>
    %cst_111 = arith.constant dense<0.000000e+00> : vector<2x512xf32>
    %184 = tpu.matmul %181, %183, %cst_111 {dimension_numbers = #tpu.dot_dimension_numbers<[1], [0], [0], [1], [0, 0, 1, 1], [], []>} : vector<2x128xbf16>, vector<128x512xbf16>, vector<2x512xf32> -> vector<2x512xf32>
    %185 = arith.addf %178, %184 : vector<2x512xf32>
    %186 = vector.extract_strided_slice %185 {offsets = [0, 0], sizes = [2, 128], strides = [1, 1]} : vector<2x512xf32> to vector<2x128xf32>
    %187 = arith.negf %186 : vector<2x128xf32>
    %188 = math.exp %187 : vector<2x128xf32>
    %cst_112 = arith.constant 1.000000e+00 : f32
    %189 = vector.broadcast %cst_112 : f32 to vector<2x128xf32>
    %190 = arith.addf %189, %188 : vector<2x128xf32>
    %191 = arith.divf %189, %190 : vector<2x128xf32>
    %192 = vector.extract_strided_slice %185 {offsets = [0, 128], sizes = [2, 128], strides = [1, 1]} : vector<2x512xf32> to vector<2x128xf32>
    %193 = arith.negf %192 : vector<2x128xf32>
    %194 = math.exp %193 : vector<2x128xf32>
    %cst_113 = arith.constant 1.000000e+00 : f32
    %195 = vector.broadcast %cst_113 : f32 to vector<2x128xf32>
    %196 = arith.addf %195, %194 : vector<2x128xf32>
    %197 = arith.divf %195, %196 : vector<2x128xf32>
    %198 = vector.extract_strided_slice %185 {offsets = [0, 256], sizes = [2, 128], strides = [1, 1]} : vector<2x512xf32> to vector<2x128xf32>
    %199 = math.tanh %198 : vector<2x128xf32>
    %200 = vector.extract_strided_slice %185 {offsets = [0, 384], sizes = [2, 128], strides = [1, 1]} : vector<2x512xf32> to vector<2x128xf32>
    %201 = arith.negf %200 : vector<2x128xf32>
    %202 = math.exp %201 : vector<2x128xf32>
    %cst_114 = arith.constant 1.000000e+00 : f32
    %203 = vector.broadcast %cst_114 : f32 to vector<2x128xf32>
    %204 = arith.addf %203, %202 : vector<2x128xf32>
    %205 = arith.divf %203, %204 : vector<2x128xf32>
    %206 = arith.mulf %197, %156 : vector<2x128xf32>
    %207 = arith.mulf %191, %199 : vector<2x128xf32>
    %208 = arith.addf %206, %207 : vector<2x128xf32>
    %209 = math.tanh %208 : vector<2x128xf32>
    %210 = arith.mulf %205, %209 : vector<2x128xf32>
    %c0_115 = arith.constant 0 : index
    %211 = arith.index_cast %165 : i32 to index
    %c0_116 = arith.constant 0 : index
    %c0_117 = arith.constant 0 : index
    %212 = vector.load %arg7[%c0_115, %211, %c0_116, %c0_117] : memref<1x4x2x128xf32, #tpu.memory_space<vmem>>, vector<1x1x2x128xf32>
    %213 = vector.shape_cast %212 : vector<1x1x2x128xf32> to vector<2x128xf32>
    %214 = vector.shape_cast %210 : vector<2x128xf32> to vector<1x1x2x128xf32>
    tpu.vector_store %arg7[%c0_115, %211, %c0_116, %c0_117], %214 {strides = array<i32>} : memref<1x4x2x128xf32, #tpu.memory_space<vmem>>, vector<1x1x2x128xf32>,
    %c4_i32 = arith.constant 4 : i32
    %c0_118 = arith.constant 0 : index
    %c0_119 = arith.constant 0 : index
    %215 = vector.load %arg9[%c0_118, %c0_119] : memref<2x128xf32, #tpu.memory_space<vmem>>, vector<2x128xf32>
    tpu.vector_store %arg9[%c0_118, %c0_119], %210 {strides = array<i32>} : memref<2x128xf32, #tpu.memory_space<vmem>>, vector<2x128xf32>,
    %c0_120 = arith.constant 0 : index
    %c0_121 = arith.constant 0 : index
    %216 = vector.load %arg10[%c0_120, %c0_121] : memref<2x128xf32, #tpu.memory_space<vmem>>, vector<2x128xf32>
    tpu.vector_store %arg10[%c0_120, %c0_121], %208 {strides = array<i32>} : memref<2x128xf32, #tpu.memory_space<vmem>>, vector<2x128xf32>,
    %c0_122 = arith.constant 0 : index
    %c0_123 = arith.constant 0 : index
    %c0_124 = arith.constant 0 : index
    %c0_125 = arith.constant 0 : index
    %217 = vector.load %arg8[%c0_122, %c0_123, %c0_124, %c0_125] : memref<1x2x2x128xf32, #tpu.memory_space<vmem>>, vector<1x1x2x128xf32>
    %218 = vector.shape_cast %217 : vector<1x1x2x128xf32> to vector<2x128xf32>
    %219 = vector.shape_cast %210 : vector<2x128xf32> to vector<1x1x2x128xf32>
    tpu.vector_store %arg8[%c0_122, %c0_123, %c0_124, %c0_125], %219 {strides = array<i32>} : memref<1x2x2x128xf32, #tpu.memory_space<vmem>>, vector<1x1x2x128xf32>,
    %c0_126 = arith.constant 0 : index
    %c1_127 = arith.constant 1 : index
    %c0_128 = arith.constant 0 : index
    %c0_129 = arith.constant 0 : index
    %220 = vector.load %arg8[%c0_126, %c1_127, %c0_128, %c0_129] : memref<1x2x2x128xf32, #tpu.memory_space<vmem>>, vector<1x1x2x128xf32>
    %221 = vector.shape_cast %220 : vector<1x1x2x128xf32> to vector<2x128xf32>
    %222 = vector.shape_cast %208 : vector<2x128xf32> to vector<1x1x2x128xf32>
    tpu.vector_store %arg8[%c0_126, %c1_127, %c0_128, %c0_129], %222 {strides = array<i32>} : memref<1x2x2x128xf32, #tpu.memory_space<vmem>>, vector<1x1x2x128xf32>,
    return
  }
  func.func @transform_0(%arg0: i32, %arg1: i32) -> (i32, i32, i32, i32) {
    %c1_i32 = arith.constant 1 : i32
    %0 = arith.subi %c1_i32, %arg0 : i32
    %1 = arith.muli %0, %arg1 : i32
    %c1_i32_0 = arith.constant 1 : i32
    %2 = arith.subi %c1_i32_0, %arg1 : i32
    %3 = arith.muli %arg0, %2 : i32
    %4 = arith.addi %1, %3 : i32
    %c0_i32 = arith.constant 0 : i32
    %c0_i32_1 = arith.constant 0 : i32
    %c0_i32_2 = arith.constant 0 : i32
    %c0_i32_3 = arith.constant 0 : i32
    return %c0_i32, %4, %c0_i32_1, %c0_i32_2 : i32, i32, i32, i32
  }
  func.func @transform_1(%arg0: i32, %arg1: i32) -> (i32, i32, i32, i32) {
    %c0_i32 = arith.constant 0 : i32
    %c0_i32_0 = arith.constant 0 : i32
    %c0_i32_1 = arith.constant 0 : i32
    %c0_i32_2 = arith.constant 0 : i32
    return %arg0, %c0_i32, %c0_i32_0, %c0_i32_1 : i32, i32, i32, i32
  }
  func.func @transform_2(%arg0: i32, %arg1: i32) -> (i32, i32, i32) {
    %c0_i32 = arith.constant 0 : i32
    %c0_i32_0 = arith.constant 0 : i32
    %c0_i32_1 = arith.constant 0 : i32
    return %arg0, %c0_i32, %c0_i32_0 : i32, i32, i32
  }
  func.func @transform_3(%arg0: i32, %arg1: i32) -> (i32, i32, i32) {
    %c0_i32 = arith.constant 0 : i32
    %c0_i32_0 = arith.constant 0 : i32
    %c0_i32_1 = arith.constant 0 : i32
    return %arg0, %c0_i32, %c0_i32_0 : i32, i32, i32
  }
  func.func @transform_4(%arg0: i32, %arg1: i32) -> (i32, i32, i32, i32) {
    %c0_i32 = arith.constant 0 : i32
    %c0_i32_0 = arith.constant 0 : i32
    %c0_i32_1 = arith.constant 0 : i32
    %c0_i32_2 = arith.constant 0 : i32
    return %arg0, %c0_i32, %c0_i32_0, %c0_i32_1 : i32, i32, i32, i32
  }
  func.func @transform_5(%arg0: i32, %arg1: i32) -> (i32, i32, i32, i32) {
    %c1_i32 = arith.constant 1 : i32
    %0 = arith.subi %c1_i32, %arg0 : i32
    %1 = arith.muli %0, %arg1 : i32
    %c1_i32_0 = arith.constant 1 : i32
    %2 = arith.subi %c1_i32_0, %arg1 : i32
    %3 = arith.muli %arg0, %2 : i32
    %4 = arith.addi %1, %3 : i32
    %c0_i32 = arith.constant 0 : i32
    %c0_i32_1 = arith.constant 0 : i32
    %c0_i32_2 = arith.constant 0 : i32
    return %arg0, %4, %c0_i32, %c0_i32_1 : i32, i32, i32, i32
  }
  func.func @transform_6(%arg0: i32, %arg1: i32) -> (i32, i32, i32, i32) {
    %c0_i32 = arith.constant 0 : i32
    %c0_i32_0 = arith.constant 0 : i32
    %c0_i32_1 = arith.constant 0 : i32
    %c0_i32_2 = arith.constant 0 : i32
    return %arg0, %c0_i32, %c0_i32_0, %c0_i32_1 : i32, i32, i32, i32
  }
}

</mosaic_0001>

<bundles_post_ra>
// kernel: lstm_forward.2
= control target key start
LH: loop header
LB: loop body
LE: loop exit
PB: predicated region body
PF: predicated region fallthrough
CT: control target
= control target key end

     0   :  { %s2918_s21 = smov 0   ;;  %s2920_s22 = smov 0   ;;  %s3386_s0 = inlined_call_operand.vmem [shape: bf16[1,8,2,32], index: 0, kind: input, shape index: {}]   ;;  %s3387_s1 = inlined_call_operand.vmem [shape: bf16[2,1,32,512], index: 1, kind: input, shape index: {}]   ;;  %s3388_s2 = inlined_call_operand.vmem [shape: bf16[2,128,512], index: 2, kind: input, shape index: {}]   ;;  %s3389_s3 = inlined_call_operand.vmem [shape: f32[2,1,512], index: 3, kind: input, shape index: {}]   ;;  %s3390_s4 = inlined_call_operand.vmem [shape: f32[2,2,2,128], index: 4, kind: input, shape index: {}]   ;;  %s3391_s5 = inlined_call_operand.vmem [shape: bf16[2,8,2,128], index: 5, kind: output, shape index: {0}]   ;;  %s3392_s6 = inlined_call_operand.vmem [shape: f32[2,2,2,128], index: 6, kind: output, shape index: {1}]  }
   0x1   :  { %3393 = sst [smem:[#allocation6_spill]] %s3387_s1  ;;  %s2922_s23 = smov 0  }
   0x2   :  { %3394 = sst [smem:[#allocation7_spill]] %s3388_s2  ;;  %s2924_s24 = smov 0  }
   0x3   :  { %s2926_s25 = smov 0  }
   0x4 LB: > { %s26_s26 = sadd.s32 1, %s2872_s23  ;;  %s29_s27 = sadd.s32 1, %s2876_s24  ;;  %s2880_s25 = sphi %s2926_s25, %s17_s25   ;;  %s2876_s24 = sphi %s2924_s24, %s3404_s24   ;;  %s2872_s23 = sphi %s2922_s23, %s3403_s23   ;;  %s2868_s22 = sphi %s2920_s22, %s3402_s22   ;;  %s2864_s21 = sphi %s2918_s21, %s3401_s21  }
   0x5   : > { %p27_p0 = scmp.ge.s32.totalorder %s26_s26, 2  ;;  %p2427_p1 = scmp.ge.s32.totalorder %s2880_s25, 1 }
   0x6   : > { %p298_p2 = scmp.lt.s32.totalorder %s2880_s25, 5 }
   0x7   : > { %s3406_s26 = smov (%p27_p0, %s26_s26), 0  ;;  %s3408_s27 = smov (!%p27_p0, %s29_s27), %s2876_s24 }
   0x8   : > { %3395 = sst [smem:[#allocation4_spill]] %s3406_s26  ;;  %p299_p3 = pnand %p2427_p1, %p298_p2 }
   0x9   : > { %p31_p4 = scmp.ge.s32.totalorder %s3408_s27, 2  ;;  %s364_s28 = ssub.s32 (!%p299_p3), 1, %s2868_s22 }
   0xa   : > { %302 = sbr.rel (%p299_p3) target bundleno = 1155 (0x483), region = 40  ;;  %s366_s29 = ssub.s32 (!%p299_p3), 1, %s2864_s21 }
   0xb   : > { %s3410_s27 = smov (%p31_p4, %s3408_s27), 0  ;;  %s365_s30 = smul.u32 (!%p299_p3), %s2864_s21, %s364_s28 }
   0xc   : > { %3396 = sst [smem:[#allocation5_spill]] %s3410_s27  ;;  %p379_p5 = scmp.lt.s32.totalorder (!%p299_p3), %s2868_s22, 1 }
   0xd   : > { %s367_s7 = smul.u32 (!%p299_p3), %s2868_s22, %s366_s29  ;;  %s3397_s1 = sld [smem:[#allocation6_spill]] (!%p299_p3) }
   0xe   : > { %s3398_s2 = sld [smem:[#allocation7_spill]] (!%p299_p3)  ;;  %p2440_p7 = scmp.ne.s32.totalorder (!%p299_p3), %s2864_s21, 0 }
   0xf   : > { %s368_s9 = sadd.s32 (!%p299_p3), %s367_s7, %s365_s30 }
  0x10   : > { %s2428_s10 = sshll.u32 (!%p299_p3), %s368_s9, 2 }
  0x11   : > { %s380_s8 = scalar_select %p379_p5, %s2868_s22, 1 }
  0x12   : > { %p370_p6 = scmp.lt.s32.totalorder %s2428_s10, 7 }
  0x13   : > { %s2625_s11 = sshll.u32 %s380_s8, 6  ;;  %s2626_s15 = sshll.u32 %s380_s8, 8 }
  0x14   : > { %s2961_s14 = scalar_lea.vmem %s3397_s1, %s2625_s11  ;;  %s2963_s16 = sshll.u32 %s380_s8, 2 }
  0x15   : > { %s3412_s10 = smov (!%p370_p6, %s2428_s10), 7  ;;  %s2968_s19 = scalar_lea.vmem %s3398_s2, %s2626_s15 }
  0x16   : > { %s392_s29 = scalar_lea.vmem %s3389_s3, %s2963_s16  ;;  %s2977_s9 = scalar_lea.vmem %s3386_s0, %s3412_s10 }
  0x17   : > { %s397_s13 = scalar_lea.vmem %s3390_s4, %s2963_s16  ;;  %s2437_s1 = sshll.u32 %s380_s8, 3 }
  0x18   : > { %s2987_s17 = scalar_lea.vmem %s3392_s6, %s2963_s16  ;;  %s409_s15 = sadd.s32 %s2437_s1, %s3412_s10  ;;  %v427_v0 = vld [vmem:[%s397_s13] sm:$0x3] (!%p2440_p7)  ;;  %v2441_v1 = vld [vmem:[%s397_s13 + $0x2] sm:$0x3] (!%p2440_p7) }
  0x19   : > { %s2992_s20 = scalar_lea.vmem %s3391_s5, %s409_s15  ;;  %426 = sbr.rel (%p2440_p7) target bundleno = 32 (0x20), region = 44  ;;  %428 = vst [vmem:[#allocation2] sm:$0x3] (!%p2440_p7), %v427_v0  ;;  %431 = vst [vmem:[#allocation3] sm:$0x3] (!%p2440_p7), %v2441_v1 }
  0x20 PF: > { %v2996_v2 = vld [vmem:[%s2968_s19 + $0x4] ss:$16 sps:$4 sm:$0xff]   ;;  %v2999_v3 = vld [vmem:[%s2968_s19] ss:$16 sps:$4 sm:$0xff]   ;;  %v2882_v4 = vmov 0   ;;  %p435_p8 = scmp.eq.s32.totalorder %s2868_s22, 0  ;;  %v713_v46 = vlaneseq }
  0x21   : > { %662 = vmatprep.mubr.bf16.mxu0 %v2882_v4  ;;  %703 = vmatprep.mubr.bf16.mxu1 %v2882_v4  ;;  %v3005_v5 = vld [vmem:[%s2968_s19 + $0xc] ss:$16 sps:$4 sm:$0xff]   ;;  %v3008_v6 = vld [vmem:[%s2968_s19 + $0x8] ss:$16 sps:$4 sm:$0xff]   ;;  %v3012_v7 = vld [vmem:[%s2968_s19 + $0x24] ss:$16 sps:$4 sm:$0xff]  }
  0x22   : > { %630 = vmatprep.subr.bf16.mxu0 %v2996_v2  ;;  %v3015_v8 = vld [vmem:[%s2968_s19 + $0x20] ss:$16 sps:$4 sm:$0xff]   ;;  %671 = vmatprep.subr.bf16.mxu1 %v3005_v5  ;;  %v3019_v9 = vld [vmem:[%s2968_s19 + $0x2c] ss:$16 sps:$4 sm:$0xff]   ;;  %v3024_v10 = vld [vmem:[%s2968_s19 + $0x28] ss:$16 sps:$4 sm:$0xff]  }
  0x23   : > { %631 = vmatpush1.bf16.msra.mxu0 %v2999_v3  ;;  %672 = vmatpush1.bf16.msra.mxu1 %v3008_v6  ;;  %v3028_v11 = vld [vmem:[%s2968_s19 + $0x44] ss:$16 sps:$4 sm:$0xff]   ;;  %v3032_v12 = vld [vmem:[%s2968_s19 + $0x40] ss:$16 sps:$4 sm:$0xff]   ;;  %v3035_v13 = vld [vmem:[%s2968_s19 + $0x4c] ss:$16 sps:$4 sm:$0xff]  }
  0x24   : > { %632 = vmatprep.subr.bf16.mxu0 %v3012_v7  ;;  %673 = vmatprep.subr.bf16.mxu1 %v3019_v9  ;;  %v3039_v14 = vld [vmem:[%s2968_s19 + $0x64] ss:$16 sps:$4 sm:$0xff]   ;;  %v3043_v15 = vld [vmem:[%s2968_s19 + $0x48] ss:$16 sps:$4 sm:$0xff]   ;;  %v3047_v16 = vld [vmem:[%s2968_s19 + $0x6c] ss:$16 sps:$4 sm:$0xff]  }
  0x25   : > { %v3051_v17 = vld [vmem:[%s2968_s19 + $0x60] ss:$16 sps:$4 sm:$0xff]   ;;  %v3055_v18 = vld [vmem:[%s2968_s19 + $0x84] ss:$16 sps:$4 sm:$0xff]   ;;  %v3059_v19 = vld [vmem:[%s2968_s19 + $0x68] ss:$16 sps:$4 sm:$0xff]  }
  0x26   : > { %v3063_v20 = vld [vmem:[%s2968_s19 + $0x8c] ss:$16 sps:$4 sm:$0xff]   ;;  %v3067_v21 = vld [vmem:[%s2968_s19 + $0x80] ss:$16 sps:$4 sm:$0xff]   ;;  %v3071_v22 = vld [vmem:[%s2968_s19 + $0xa4] ss:$16 sps:$4 sm:$0xff]  }
  0x27   : > { %633 = vmatpush1.bf16.msra.mxu0 %v3015_v8  ;;  %674 = vmatpush1.bf16.msra.mxu1 %v3024_v10  ;;  %v3075_v23 = vld [vmem:[%s2968_s19 + $0x88] ss:$16 sps:$4 sm:$0xff]   ;;  %v3079_v24 = vld [vmem:[%s2968_s19 + $0xac] ss:$16 sps:$4 sm:$0xff]   ;;  %v3083_v25 = vld [vmem:[%s2968_s19 + $0xa0] ss:$16 sps:$4 sm:$0xff]  }
  0x28   : > { %634 = vmatprep.subr.bf16.mxu0 %v3028_v11  ;;  %675 = vmatprep.subr.bf16.mxu1 %v3035_v13  ;;  %v3087_v26 = vld [vmem:[%s2968_s19 + $0xc4] ss:$16 sps:$4 sm:$0xff]   ;;  %v3091_v27 = vld [vmem:[%s2968_s19 + $0xa8] ss:$16 sps:$4 sm:$0xff]   ;;  %v3095_v28 = vld [vmem:[%s2968_s19 + $0xcc] ss:$16 sps:$4 sm:$0xff]  }
  0x29   : > { %v3099_v29 = vld [vmem:[%s2968_s19 + $0xc0] ss:$16 sps:$4 sm:$0xff]   ;;  %v3103_v30 = vld [vmem:[%s2968_s19 + $0xe4] ss:$16 sps:$4 sm:$0xff]   ;;  %v3107_v31 = vld [vmem:[%s2968_s19 + $0xc8] ss:$16 sps:$4 sm:$0xff]  }
  0x2a   : > { %v3111_v32 = vld [vmem:[%s2968_s19 + $0xec] ss:$16 sps:$4 sm:$0xff]   ;;  %v3115_v33 = vld [vmem:[%s2968_s19 + $0xe0] ss:$16 sps:$4 sm:$0xff]   ;;  %v3119_v35 = vld [vmem:[%s2961_s14 + $0x4] ss:$16 sps:$4 sm:$0xff]  }
  0x2b   : > { %635 = vmatpush1.bf16.msra.mxu0 %v3032_v12  ;;  %676 = vmatpush1.bf16.msra.mxu1 %v3043_v15  ;;  %v433_v34 = vld [vmem:[#allocation2] sm:$0x3]  ;;  %v3123_v36 = vld [vmem:[%s2968_s19 + $0xe8] ss:$16 sps:$4 sm:$0xff]   ;;  %v3127_v38 = vld [vmem:[%s2961_s14 + $0xc] ss:$16 sps:$4 sm:$0xff]  }
  0x2c   : > { %636 = vmatprep.subr.bf16.mxu0 %v3039_v14  ;;  %677 = vmatprep.subr.bf16.mxu1 %v3047_v16  ;;  %v437_v37 = vpack.c.bf16 %v433_v34, %v433_v34  ;;  %v3131_v39 = vld [vmem:[%s2961_s14] ss:$16 sps:$4 sm:$0xff]   ;;  %v3135_v40 = vld [vmem:[%s2961_s14 + $0x24] ss:$16 sps:$4 sm:$0xff]   ;;  %v3140_v41 = vld [vmem:[%s2961_s14 + $0x8] ss:$16 sps:$4 sm:$0xff]  }
  0x2d   : > { %v3144_v42 = vld [vmem:[%s2961_s14 + $0x2c] ss:$16 sps:$4 sm:$0xff]   ;;  %v3148_v43 = vld [vmem:[%s2961_s14 + $0x20] ss:$16 sps:$4 sm:$0xff]   ;;  %s3154_s1 = scalar_select %p435_p8, 0, 3 }
  0x2e   : > { %v3158_v44 = vld [vmem:[%s2961_s14 + $0x28] ss:$16 sps:$4 sm:$0xff]   ;;  %vm787_vm0 = vcmask 261120   ;;  %v714_v47 = vshrl.u32 %v713_v46, 7  ;;  %v432_v49 = vld [vmem:[%s392_s29] sm:$0xf] }
  0x2f   : > { %637 = vmatpush1.bf16.msra.mxu0 %v3051_v17  ;;  %678 = vmatpush1.bf16.msra.mxu1 %v3059_v19  ;;  %s737_s2 = scalar_lea.vmem %s2977_s9, %s3154_s1  ;;  %s902_s27 = scalar_lea.vmem %s2992_s20, %s3154_s1 }
  0x30   : > { %638 = vmatprep.subr.bf16.mxu0 %v3055_v18  ;;  %679 = vmatprep.subr.bf16.mxu1 %v3063_v20  ;;  %v738_v45 = vld [vmem:[%s737_s2] sm:$0x1]  ;;  %v715_v48 = vsub.s32 0, %v714_v47  ;;  %v719_v50 = vsub.s32 1, %v714_v47  ;;  %v727_v54 = vsub.s32 3, %v714_v47  ;;  %v723_v34 = vsub.s32 2, %v714_v47 }
  0x31   : > { %s3232_s8 = scalar_select %p435_p8, 1, 2 }
  0x32   : > { %v3209_v51 = vrot.slane %v432_v49, %v715_v48  ;;  %v3211_v52 = vrot.slane %v432_v49, %v719_v50  ;;  %v3215_v0 = vrot.slane %v432_v49, %v727_v54  ;;  %v3218_v46 = vrot.slane %v432_v49, %v723_v34  ;;  %s3294_s16 = scalar_select %p435_p8, 2, 1 }
  0x33   : > { %639 = vmatpush1.bf16.msra.mxu0 %v3067_v21  ;;  %680 = vmatpush1.bf16.msra.mxu1 %v3075_v23  ;;  %s1183_s10 = scalar_lea.vmem %s2977_s9, %s3232_s8  ;;  %s1347_s14 = scalar_lea.vmem %s2992_s20, %s3232_s8 }
  0x34   : > { %640 = vmatprep.subr.bf16.mxu0 %v3071_v22  ;;  %681 = vmatprep.subr.bf16.mxu1 %v3079_v24  ;;  %s1628_s19 = scalar_lea.vmem %s2977_s9, %s3294_s16  ;;  %s1792_s28 = scalar_lea.vmem %s2992_s20, %s3294_s16 }
  0x35   : > { %s3353_s29 = scalar_select %p435_p8, 3, 0 }
  0x37   : > { %641 = vmatpush1.bf16.msra.mxu0 %v3083_v25  ;;  %682 = vmatpush1.bf16.msra.mxu1 %v3091_v27  ;;  %s2073_s30 = scalar_lea.vmem %s2977_s9, %s3353_s29  ;;  %s2237_s22 = scalar_lea.vmem %s2992_s20, %s3353_s29 }
  0x38   : > { %642 = vmatprep.subr.bf16.mxu0 %v3087_v26  ;;  %683 = vmatprep.subr.bf16.mxu1 %v3095_v28 }
  0x3b   : > { %643 = vmatpush1.bf16.msra.mxu0 %v3099_v29  ;;  %684 = vmatpush1.bf16.msra.mxu1 %v3107_v31 }
  0x3c   : > { %644 = vmatprep.subr.bf16.mxu0 %v3103_v30  ;;  %685 = vmatprep.subr.bf16.mxu1 %v3111_v32 }
  0x3f   : > { %645 = vmatpush1.bf16.msra.mxu0 %v3115_v33  ;;  %686 = vmatpush1.bf16.msra.mxu1 %v3123_v36 }
  0x40   : > { %791 = vmatprep.subr.bf16.mxu0 %v3119_v35  ;;  %832 = vmatprep.subr.bf16.mxu1 %v3127_v38 }
  0x42   : > { %663 = vmatmul.mubr.bf16.vlgmr.msra.gmra.mrb[0].mxu0 %v437_v37  ;;  %704 = vmatmul.mubr.bf16.vlgmr.msra.gmra.mrb[0].mxu1 %v437_v37 }
  0x43   : > { %792 = vmatpush1.bf16.msra.mxu0 %v3131_v39  ;;  %823 = vmatprep.mubr.bf16.mxu0 %v2882_v4 }
  0x44   : > { %793 = vmatprep.subr.bf16.mxu0 %v3135_v40  ;;  %833 = vmatpush1.bf16.msra.mxu1 %v3140_v41 }
  0x45   : > { %864 = vmatprep.mubr.bf16.mxu1 %v2882_v4  ;;  %834 = vmatprep.subr.bf16.mxu1 %v3144_v42 }
  0x47   : > { %794 = vmatpush1.bf16.msra.mxu0 %v3148_v43 }
  0x48   : > { %1097 = vmatprep.subr.bf16.mxu0 %v2996_v2  ;;  %835 = vmatpush1.bf16.msra.mxu1 %v3158_v44 }
  0x49   : > { %1138 = vmatprep.subr.bf16.mxu1 %v3005_v5 }
  0x4e   : > { %2482 = vmatmul.mubr.msk.bf16.vlgmr.msra.gmra.mrb[0].mxu0 %vm787_vm0, %v738_v45  ;;  %2483 = vmatmul.mubr.msk.bf16.vlgmr.msra.gmra.mrb[0].mxu1 %vm787_vm0, %v738_v45 }
  0x4f   : > { %1098 = vmatpush1.bf16.msra.mxu0 %v2999_v3  ;;  %1129 = vmatprep.mubr.bf16.mxu0 %v2882_v4 }
  0x50   : > { %1099 = vmatprep.subr.bf16.mxu0 %v3012_v7  ;;  %1139 = vmatpush1.bf16.msra.mxu1 %v3008_v6 }
  0x51   : > { %1170 = vmatprep.mubr.bf16.mxu1 %v2882_v4  ;;  %1140 = vmatprep.subr.bf16.mxu1 %v3019_v9 }
  0x53   : > { %1100 = vmatpush1.bf16.msra.mxu0 %v3015_v8 }
  0x54   : > { %1101 = vmatprep.subr.bf16.mxu0 %v3028_v11  ;;  %1141 = vmatpush1.bf16.msra.mxu1 %v3024_v10 }
  0x55   : > { %1142 = vmatprep.subr.bf16.mxu1 %v3035_v13 }
  0x57   : > { %1102 = vmatpush1.bf16.msra.mxu0 %v3032_v12 }
  0x58   : > { %1103 = vmatprep.subr.bf16.mxu0 %v3039_v14  ;;  %1143 = vmatpush1.bf16.msra.mxu1 %v3043_v15 }
  0x59   : > { %1144 = vmatprep.subr.bf16.mxu1 %v3047_v16 }
  0x5b   : > { %1104 = vmatpush1.bf16.msra.mxu0 %v3051_v17 }
  0x5c   : > { %1105 = vmatprep.subr.bf16.mxu0 %v3055_v18  ;;  %1145 = vmatpush1.bf16.msra.mxu1 %v3059_v19 }
  0x5d   : > { %1146 = vmatprep.subr.bf16.mxu1 %v3063_v20 }
  0x5f   : > { %1106 = vmatpush1.bf16.msra.mxu0 %v3067_v21 }
  0x60   : > { %1107 = vmatprep.subr.bf16.mxu0 %v3071_v22  ;;  %1147 = vmatpush1.bf16.msra.mxu1 %v3075_v23 }
  0x61   : > { %1148 = vmatprep.subr.bf16.mxu1 %v3079_v24 }
  0x63   : > { %1108 = vmatpush1.bf16.msra.mxu0 %v3083_v25 }
  0x64   : > { %1109 = vmatprep.subr.bf16.mxu0 %v3087_v26  ;;  %1149 = vmatpush1.bf16.msra.mxu1 %v3091_v27 }
  0x65   : > { %1150 = vmatprep.subr.bf16.mxu1 %v3095_v28 }
  0x67   : > { %1110 = vmatpush1.bf16.msra.mxu0 %v3099_v29 }
  0x68   : > { %1111 = vmatprep.subr.bf16.mxu0 %v3103_v30  ;;  %1151 = vmatpush1.bf16.msra.mxu1 %v3107_v31 }
  0x69   : > { %1152 = vmatprep.subr.bf16.mxu1 %v3111_v32 }
  0x6b   : > { %1112 = vmatpush1.bf16.msra.mxu0 %v3115_v33 }
  0x6c   : > { %1236 = vmatprep.subr.bf16.mxu0 %v3119_v35  ;;  %1153 = vmatpush1.bf16.msra.mxu1 %v3123_v36 }
  0x6d   : > { %1277 = vmatprep.subr.bf16.mxu1 %v3127_v38 }
 0x121   : > { %v825_v53 = vpop.f32.mrb[0].mxu0  ;;  %v866_v58 = vpop.f32.mrb[0].mxu1 }
 0x122   : > { %v2629_v55 = vadd.f32 %v825_v53, %v3209_v51  ;;  %v827_v56 = vpop.f32.mrb[1].mxu0  ;;  %v868_v61 = vpop.f32.mrb[1].mxu1  ;;  %v2631_v50 = vadd.f32 %v866_v58, %v3218_v46 }
 0x123   : > { %v2630_v57 = vadd.f32 %v827_v56, %v3211_v52  ;;  %v829_v59 = vpop.f32.mrb[2].mxu0  ;;  %v870_v1 = vpop.f32.mrb[2].mxu1  ;;  %v2632_v45 = vadd.f32 %v868_v61, %v3215_v0 }
 0x124   : > { %v2484_v60 = vmul.f32 -1.442695, %v2629_v55  ;;  %v830_v62 = vpop.f32.mrb[3].mxu0  ;;  %v871_v37 = vpop.f32.mrb[3].mxu1 }
 0x125   : > { %v2485_v63 = vmul.f32 -1.442695, %v2630_v57  ;;  %v2486_v48 = vmul.f32 -1.442695, %v2632_v45  ;;  %v434_v57 = vld [vmem:[#allocation3] sm:$0x3] }
 0x126   : > { %2778 = vpow2.f32 %v2484_v60 }
 0x127   : > { %2780 = vpow2.f32 %v2485_v63 }
 0x128   : > { %2782 = vpow2.f32 %v2486_v48  ;;  %v1184_v48 = vld [vmem:[%s1183_s10] sm:$0x1] }
 0x129   : > { %2784 = vtanh.f32 %v2631_v50 }
 0x130   : > { %v2779_v53 = vpop.eup %2778 }
 0x131   : > { %v2781_v56 = vpop.eup %2780  ;;  %v880_v55 = vadd.f32 1.0, %v2779_v53 }
 0x132   : > { %v886_v59 = vadd.f32 1.0, %v2781_v56  ;;  %v2783_v47 = vpop.eup %2782 }
 0x133   : > { %2786 = vrcp.f32 %v880_v55  ;;  %v2785_v54 = vpop.eup %2784  ;;  %v893_v62 = vadd.f32 1.0, %v2783_v47 }
 0x134   : > { %2788 = vrcp.f32 %v886_v59 }
 0x135   : > { %2790 = vrcp.f32 %v893_v62 }
 0x13d   : > { %v2787_v60 = vpop.eup %2786 }
 0x13e   : > { %v2789_v61 = vpop.eup %2788  ;;  %v897_v49 = vmul.f32 %v2787_v60, %v2785_v54 }
 0x13f   : > { %v896_v63 = vmul.f32 %v2789_v61, %v434_v57  ;;  %v2791_v1 = vpop.eup %2790 }
 0x141   : > { %v3221_v58 = vadd.f32 %v897_v49, %v896_v63 }
 0x143   : > { %2792 = vtanh.f32 %v3221_v58 }
 0x14d   : > { %v2793_v34 = vpop.eup %2792 }
 0x14e   : > { %v900_v37 = vmul.f32 %v2793_v34, %v2791_v1 }
 0x150   : > { %v901_v45 = vpack.c.bf16 %v900_v37, %v900_v37 }
 0x152   : > { %903 = vst [vmem:[%s902_s27] sm:$0x1] %v901_v45  ;;  %1130 = vmatmul.mubr.bf16.vlgmr.msra.gmra.mrb[4].mxu0 %v901_v45  ;;  %1171 = vmatmul.mubr.bf16.vlgmr.msra.gmra.mrb[4].mxu1 %v901_v45 }
 0x153   : > { %1237 = vmatpush1.bf16.msra.mxu0 %v3131_v39  ;;  %1278 = vmatpush1.bf16.msra.mxu1 %v3140_v41 }
 0x154   : > { %1238 = vmatprep.subr.bf16.mxu0 %v3135_v40  ;;  %1279 = vmatprep.subr.bf16.mxu1 %v3144_v42 }
 0x155   : > { %1268 = vmatprep.mubr.bf16.mxu0 %v2882_v4  ;;  %1309 = vmatprep.mubr.bf16.mxu1 %v2882_v4 }
 0x157   : > { %1239 = vmatpush1.bf16.msra.mxu0 %v3148_v43  ;;  %1280 = vmatpush1.bf16.msra.mxu1 %v3158_v44 }
 0x158   : > { %1542 = vmatprep.subr.bf16.mxu0 %v2996_v2  ;;  %1583 = vmatprep.subr.bf16.mxu1 %v3005_v5 }
 0x15e   : > { %2527 = vmatmul.mubr.msk.bf16.vlgmr.msra.gmra.mrb[4].mxu0 %vm787_vm0, %v1184_v48  ;;  %2528 = vmatmul.mubr.msk.bf16.vlgmr.msra.gmra.mrb[4].mxu1 %vm787_vm0, %v1184_v48 }
 0x15f   : > { %1543 = vmatpush1.bf16.msra.mxu0 %v2999_v3  ;;  %1584 = vmatpush1.bf16.msra.mxu1 %v3008_v6 }
 0x160   : > { %1544 = vmatprep.subr.bf16.mxu0 %v3012_v7  ;;  %1585 = vmatprep.subr.bf16.mxu1 %v3019_v9 }
 0x161   : > { %1574 = vmatprep.mubr.bf16.mxu0 %v2882_v4  ;;  %1615 = vmatprep.mubr.bf16.mxu1 %v2882_v4 }
 0x163   : > { %1545 = vmatpush1.bf16.msra.mxu0 %v3015_v8  ;;  %1586 = vmatpush1.bf16.msra.mxu1 %v3024_v10 }
 0x164   : > { %1546 = vmatprep.subr.bf16.mxu0 %v3028_v11  ;;  %1587 = vmatprep.subr.bf16.mxu1 %v3035_v13 }
 0x167   : > { %1547 = vmatpush1.bf16.msra.mxu0 %v3032_v12  ;;  %1588 = vmatpush1.bf16.msra.mxu1 %v3043_v15 }
 0x168   : > { %1548 = vmatprep.subr.bf16.mxu0 %v3039_v14  ;;  %1589 = vmatprep.subr.bf16.mxu1 %v3047_v16 }
 0x16b   : > { %1549 = vmatpush1.bf16.msra.mxu0 %v3051_v17  ;;  %1590 = vmatpush1.bf16.msra.mxu1 %v3059_v19 }
 0x16c   : > { %1550 = vmatprep.subr.bf16.mxu0 %v3055_v18  ;;  %1591 = vmatprep.subr.bf16.mxu1 %v3063_v20 }
 0x16f   : > { %1551 = vmatpush1.bf16.msra.mxu0 %v3067_v21  ;;  %1592 = vmatpush1.bf16.msra.mxu1 %v3075_v23 }
 0x170   : > { %1552 = vmatprep.subr.bf16.mxu0 %v3071_v22  ;;  %1593 = vmatprep.subr.bf16.mxu1 %v3079_v24 }
 0x173   : > { %1553 = vmatpush1.bf16.msra.mxu0 %v3083_v25  ;;  %1594 = vmatpush1.bf16.msra.mxu1 %v3091_v27 }
 0x174   : > { %1554 = vmatprep.subr.bf16.mxu0 %v3087_v26  ;;  %1595 = vmatprep.subr.bf16.mxu1 %v3095_v28 }
 0x177   : > { %1555 = vmatpush1.bf16.msra.mxu0 %v3099_v29  ;;  %1596 = vmatpush1.bf16.msra.mxu1 %v3107_v31 }
 0x178   : > { %1556 = vmatprep.subr.bf16.mxu0 %v3103_v30  ;;  %1597 = vmatprep.subr.bf16.mxu1 %v3111_v32 }
 0x17b   : > { %1557 = vmatpush1.bf16.msra.mxu0 %v3115_v33  ;;  %1598 = vmatpush1.bf16.msra.mxu1 %v3123_v36 }
 0x17c   : > { %1681 = vmatprep.subr.bf16.mxu0 %v3119_v35  ;;  %1722 = vmatprep.subr.bf16.mxu1 %v3127_v38 }
 0x231   : > { %v1270_v50 = vpop.f32.mrb[4].mxu0  ;;  %v1311_v53 = vpop.f32.mrb[4].mxu1 }
 0x232   : > { %v2633_v56 = vadd.f32 %v1270_v50, %v3209_v51  ;;  %v1272_v55 = vpop.f32.mrb[5].mxu0  ;;  %v1313_v59 = vpop.f32.mrb[5].mxu1  ;;  %v2635_v34 = vadd.f32 %v1311_v53, %v3218_v46 }
 0x233   : > { %v2634_v47 = vadd.f32 %v1272_v55, %v3211_v52  ;;  %v1274_v54 = vpop.f32.mrb[6].mxu0  ;;  %v1315_v57 = vpop.f32.mrb[6].mxu1  ;;  %v2636_v63 = vadd.f32 %v1313_v59, %v3215_v0 }
 0x234   : > { %v2529_v60 = vmul.f32 -1.442695, %v2633_v56  ;;  %v1275_v61 = vpop.f32.mrb[7].mxu0  ;;  %v1316_v49 = vpop.f32.mrb[7].mxu1 }
 0x235   : > { %v2530_v62 = vmul.f32 -1.442695, %v2634_v47  ;;  %v2531_v1 = vmul.f32 -1.442695, %v2636_v63 }
 0x236   : > { %2794 = vpow2.f32 %v2529_v60 }
 0x237   : > { %2796 = vpow2.f32 %v2530_v62 }
 0x238   : > { %2798 = vpow2.f32 %v2531_v1 }
 0x239   : > { %2800 = vtanh.f32 %v2635_v34 }
 0x240   : > { %v2795_v37 = vpop.eup %2794 }
 0x241   : > { %v2797_v45 = vpop.eup %2796  ;;  %v1325_v48 = vadd.f32 1.0, %v2795_v37 }
 0x242   : > { %v1331_v50 = vadd.f32 1.0, %v2797_v45  ;;  %v2799_v56 = vpop.eup %2798 }
 0x243   : > { %2802 = vrcp.f32 %v1325_v48  ;;  %v2801_v55 = vpop.eup %2800  ;;  %v1338_v60 = vadd.f32 1.0, %v2799_v56 }
 0x244   : > { %2804 = vrcp.f32 %v1331_v50 }
 0x245   : > { %2806 = vrcp.f32 %v1338_v60 }
 0x24d   : > { %v2803_v47 = vpop.eup %2802 }
 0x24e   : > { %v2805_v54 = vpop.eup %2804  ;;  %v1342_v57 = vmul.f32 %v2803_v47, %v2801_v55 }
 0x24f   : > { %v1341_v59 = vmul.f32 %v2805_v54, %v3221_v58  ;;  %v2807_v61 = vpop.eup %2806  ;;  %v1629_v58 = vld [vmem:[%s1628_s19] sm:$0x1] }
 0x251   : > { %v3283_v53 = vadd.f32 %v1342_v57, %v1341_v59 }
 0x253   : > { %2808 = vtanh.f32 %v3283_v53 }
 0x25d   : > { %v2809_v49 = vpop.eup %2808 }
 0x25e   : > { %v1345_v62 = vmul.f32 %v2809_v49, %v2807_v61 }
 0x260   : > { %v1346_v63 = vpack.c.bf16 %v1345_v62, %v1345_v62 }
 0x262   : > { %1348 = vst [vmem:[%s1347_s14] sm:$0x1] %v1346_v63  ;;  %1575 = vmatmul.mubr.bf16.vlgmr.msra.gmra.mrb[8].mxu0 %v1346_v63  ;;  %1616 = vmatmul.mubr.bf16.vlgmr.msra.gmra.mrb[8].mxu1 %v1346_v63 }
 0x263   : > { %1682 = vmatpush1.bf16.msra.mxu0 %v3131_v39  ;;  %1723 = vmatpush1.bf16.msra.mxu1 %v3140_v41 }
 0x264   : > { %1683 = vmatprep.subr.bf16.mxu0 %v3135_v40  ;;  %1724 = vmatprep.subr.bf16.mxu1 %v3144_v42 }
 0x265   : > { %1713 = vmatprep.mubr.bf16.mxu0 %v2882_v4  ;;  %1754 = vmatprep.mubr.bf16.mxu1 %v2882_v4 }
 0x267   : > { %1684 = vmatpush1.bf16.msra.mxu0 %v3148_v43  ;;  %1725 = vmatpush1.bf16.msra.mxu1 %v3158_v44 }
 0x268   : > { %1987 = vmatprep.subr.bf16.mxu0 %v2996_v2  ;;  %2028 = vmatprep.subr.bf16.mxu1 %v3005_v5 }
 0x26e   : > { %2572 = vmatmul.mubr.msk.bf16.vlgmr.msra.gmra.mrb[8].mxu0 %vm787_vm0, %v1629_v58  ;;  %2573 = vmatmul.mubr.msk.bf16.vlgmr.msra.gmra.mrb[8].mxu1 %vm787_vm0, %v1629_v58 }
 0x26f   : > { %1988 = vmatpush1.bf16.msra.mxu0 %v2999_v3  ;;  %2029 = vmatpush1.bf16.msra.mxu1 %v3008_v6 }
 0x270   : > { %1989 = vmatprep.subr.bf16.mxu0 %v3012_v7  ;;  %2030 = vmatprep.subr.bf16.mxu1 %v3019_v9 }
 0x271   : > { %2019 = vmatprep.mubr.bf16.mxu0 %v2882_v4  ;;  %2060 = vmatprep.mubr.bf16.mxu1 %v2882_v4 }
 0x273   : > { %1990 = vmatpush1.bf16.msra.mxu0 %v3015_v8  ;;  %2031 = vmatpush1.bf16.msra.mxu1 %v3024_v10 }
 0x274   : > { %1991 = vmatprep.subr.bf16.mxu0 %v3028_v11  ;;  %2032 = vmatprep.subr.bf16.mxu1 %v3035_v13 }
 0x277   : > { %1992 = vmatpush1.bf16.msra.mxu0 %v3032_v12  ;;  %2033 = vmatpush1.bf16.msra.mxu1 %v3043_v15 }
 0x278   : > { %1993 = vmatprep.subr.bf16.mxu0 %v3039_v14  ;;  %2034 = vmatprep.subr.bf16.mxu1 %v3047_v16 }
 0x27b   : > { %1994 = vmatpush1.bf16.msra.mxu0 %v3051_v17  ;;  %2035 = vmatpush1.bf16.msra.mxu1 %v3059_v19 }
 0x27c   : > { %1995 = vmatprep.subr.bf16.mxu0 %v3055_v18  ;;  %2036 = vmatprep.subr.bf16.mxu1 %v3063_v20 }
 0x27f   : > { %1996 = vmatpush1.bf16.msra.mxu0 %v3067_v21  ;;  %2037 = vmatpush1.bf16.msra.mxu1 %v3075_v23 }
 0x280   : > { %1997 = vmatprep.subr.bf16.mxu0 %v3071_v22  ;;  %2038 = vmatprep.subr.bf16.mxu1 %v3079_v24 }
 0x283   : > { %1998 = vmatpush1.bf16.msra.mxu0 %v3083_v25  ;;  %2039 = vmatpush1.bf16.msra.mxu1 %v3091_v27 }
 0x284   : > { %1999 = vmatprep.subr.bf16.mxu0 %v3087_v26  ;;  %2040 = vmatprep.subr.bf16.mxu1 %v3095_v28 }
 0x287   : > { %2000 = vmatpush1.bf16.msra.mxu0 %v3099_v29  ;;  %2041 = vmatpush1.bf16.msra.mxu1 %v3107_v31 }
 0x288   : > { %2001 = vmatprep.subr.bf16.mxu0 %v3103_v30  ;;  %2042 = vmatprep.subr.bf16.mxu1 %v3111_v32 }
 0x28b   : > { %2002 = vmatpush1.bf16.msra.mxu0 %v3115_v33  ;;  %2043 = vmatpush1.bf16.msra.mxu1 %v3123_v36 }
 0x28c   : > { %2126 = vmatprep.subr.bf16.mxu0 %v3119_v35  ;;  %2167 = vmatprep.subr.bf16.mxu1 %v3127_v38  ;;  %v2074_v35 = vld [vmem:[%s2073_s30] sm:$0x1] }
 0x341   : > { %v1715_v2 = vpop.f32.mrb[8].mxu0  ;;  %v1756_v3 = vpop.f32.mrb[8].mxu1 }
 0x342   : > { %v2637_v5 = vadd.f32 %v1715_v2, %v3209_v51  ;;  %v1717_v6 = vpop.f32.mrb[9].mxu0  ;;  %v1758_v7 = vpop.f32.mrb[9].mxu1  ;;  %v2639_v17 = vadd.f32 %v1756_v3, %v3218_v46 }
 0x343   : > { %v2638_v8 = vadd.f32 %v1717_v6, %v3211_v52  ;;  %v1719_v9 = vpop.f32.mrb[10].mxu0  ;;  %v1760_v10 = vpop.f32.mrb[10].mxu1  ;;  %v2640_v15 = vadd.f32 %v1758_v7, %v3215_v0 }
 0x344   : > { %v2574_v11 = vmul.f32 -1.442695, %v2637_v5  ;;  %v1720_v12 = vpop.f32.mrb[11].mxu0  ;;  %v1761_v13 = vpop.f32.mrb[11].mxu1 }
 0x345   : > { %v2575_v14 = vmul.f32 -1.442695, %v2638_v8  ;;  %v2576_v16 = vmul.f32 -1.442695, %v2640_v15 }
 0x346   : > { %2810 = vpow2.f32 %v2574_v11 }
 0x347   : > { %2812 = vpow2.f32 %v2575_v14 }
 0x348   : > { %2814 = vpow2.f32 %v2576_v16 }
 0x349   : > { %2816 = vtanh.f32 %v2639_v17 }
 0x350   : > { %v2811_v18 = vpop.eup %2810 }
 0x351   : > { %v2813_v19 = vpop.eup %2812  ;;  %v1770_v20 = vadd.f32 1.0, %v2811_v18 }
 0x352   : > { %v1776_v21 = vadd.f32 1.0, %v2813_v19  ;;  %v2815_v22 = vpop.eup %2814 }
 0x353   : > { %2818 = vrcp.f32 %v1770_v20  ;;  %v2817_v23 = vpop.eup %2816  ;;  %v1783_v27 = vadd.f32 1.0, %v2815_v22 }
 0x354   : > { %2820 = vrcp.f32 %v1776_v21 }
 0x355   : > { %2822 = vrcp.f32 %v1783_v27 }
 0x35d   : > { %v2819_v24 = vpop.eup %2818 }
 0x35e   : > { %v2821_v25 = vpop.eup %2820  ;;  %v1787_v26 = vmul.f32 %v2819_v24, %v2817_v23 }
 0x35f   : > { %v1786_v28 = vmul.f32 %v2821_v25, %v3283_v53  ;;  %v2823_v30 = vpop.eup %2822 }
 0x361   : > { %v1788_v29 = vadd.f32 %v1787_v26, %v1786_v28 }
 0x363   : > { %2824 = vtanh.f32 %v1788_v29 }
 0x36d   : > { %v2825_v31 = vpop.eup %2824 }
 0x36e   : > { %v1790_v32 = vmul.f32 %v2825_v31, %v2823_v30 }
 0x370   : > { %v1791_v33 = vpack.c.bf16 %v1790_v32, %v1790_v32 }
 0x372   : > { %1793 = vst [vmem:[%s1792_s28] sm:$0x1] %v1791_v33  ;;  %2020 = vmatmul.mubr.bf16.vlgmr.msra.gmra.mrb[12].mxu0 %v1791_v33  ;;  %2061 = vmatmul.mubr.bf16.vlgmr.msra.gmra.mrb[12].mxu1 %v1791_v33 }
 0x373   : > { %2127 = vmatpush1.bf16.msra.mxu0 %v3131_v39  ;;  %2168 = vmatpush1.bf16.msra.mxu1 %v3140_v41 }
 0x374   : > { %2128 = vmatprep.subr.bf16.mxu0 %v3135_v40  ;;  %2169 = vmatprep.subr.bf16.mxu1 %v3144_v42 }
 0x375   : > { %2158 = vmatprep.mubr.bf16.mxu0 %v2882_v4  ;;  %2199 = vmatprep.mubr.bf16.mxu1 %v2882_v4 }
 0x377   : > { %2129 = vmatpush1.bf16.msra.mxu0 %v3148_v43  ;;  %2170 = vmatpush1.bf16.msra.mxu1 %v3158_v44 }
 0x37e   : > { %2617 = vmatmul.mubr.msk.bf16.vlgmr.msra.gmra.mrb[12].mxu0 %vm787_vm0, %v2074_v35  ;;  %2618 = vmatmul.mubr.msk.bf16.vlgmr.msra.gmra.mrb[12].mxu1 %vm787_vm0, %v2074_v35 }
 0x451   : > { %v2160_v36 = vpop.f32.mrb[12].mxu0  ;;  %v2201_v38 = vpop.f32.mrb[12].mxu1 }
 0x452   : > { %v2641_v39 = vadd.f32 %v2160_v36, %v3209_v51  ;;  %v2162_v40 = vpop.f32.mrb[13].mxu0  ;;  %v2203_v41 = vpop.f32.mrb[13].mxu1  ;;  %v2643_v50 = vadd.f32 %v2201_v38, %v3218_v46 }
 0x453   : > { %v2642_v42 = vadd.f32 %v2162_v40, %v3211_v52  ;;  %v2164_v1 = vpop.f32.mrb[14].mxu0  ;;  %v2205_v4 = vpop.f32.mrb[14].mxu1  ;;  %v2644_v45 = vadd.f32 %v2203_v41, %v3215_v0 }
 0x454   : > { %v2619_v34 = vmul.f32 -1.442695, %v2641_v39  ;;  %v2165_v43 = vpop.f32.mrb[15].mxu0  ;;  %v2206_v37 = vpop.f32.mrb[15].mxu1 }
 0x455   : > { %v2620_v44 = vmul.f32 -1.442695, %v2642_v42  ;;  %v2621_v48 = vmul.f32 -1.442695, %v2644_v45 }
 0x456   : > { %2826 = vpow2.f32 %v2619_v34 }
 0x457   : > { %2828 = vpow2.f32 %v2620_v44 }
 0x458   : > { %2830 = vpow2.f32 %v2621_v48 }
 0x459   : > { %2832 = vtanh.f32 %v2643_v50 }
 0x460   : > { %v2827_v56 = vpop.eup %2826 }
 0x461   : > { %v2829_v55 = vpop.eup %2828  ;;  %v2215_v51 = vadd.f32 1.0, %v2827_v56 }
 0x462   : > { %v2221_v52 = vadd.f32 1.0, %v2829_v55  ;;  %v2831_v47 = vpop.eup %2830 }
 0x463   : > { %2834 = vrcp.f32 %v2215_v51  ;;  %v2833_v54 = vpop.eup %2832  ;;  %v2228_v59 = vadd.f32 1.0, %v2831_v47 }
 0x464   : > { %2836 = vrcp.f32 %v2221_v52 }
 0x465   : > { %2838 = vrcp.f32 %v2228_v59 }
 0x46d   : > { %v2835_v57 = vpop.eup %2834 }
 0x46e   : > { %v2837_v60 = vpop.eup %2836  ;;  %v2232_v0 = vmul.f32 %v2835_v57, %v2833_v54 }
 0x46f   : > { %v2231_v53 = vmul.f32 %v2837_v60, %v1788_v29  ;;  %v2839_v61 = vpop.eup %2838 }
 0x471   : > { %v2233_v46 = vadd.f32 %v2232_v0, %v2231_v53 }
 0x473   : > { %2840 = vtanh.f32 %v2233_v46  ;;  %2240 = vst [vmem:[#allocation3] sm:$0x3] %v2233_v46  ;;  %2622 = vst [vmem:[%s2987_s17 + $0x2] sm:$0x3] %v2233_v46 }
 0x47d   : > { %v2841_v49 = vpop.eup %2840 }
 0x47e   : > { %v2235_v62 = vmul.f32 %v2841_v49, %v2839_v61 }
 0x480   : > { %v2236_v63 = vpack.c.bf16 %v2235_v62, %v2235_v62  ;;  %2239 = vst [vmem:[#allocation2] sm:$0x3] %v2235_v62  ;;  %2241 = vst [vmem:[%s2987_s17] sm:$0x3] %v2235_v62 }
 0x482   : > { %2238 = vst [vmem:[%s2237_s22] sm:$0x1] %v2236_v63 }
 0x483 PF: > { %s17_s25 = sadd.s32 1, %s2880_s25   ;;  %s3399_s7 = sld [smem:[#allocation4_spill]] }
 0x484   : > { %p14_p9 = scmp.ge.s32.totalorder %s17_s25, 6   ;;  %s3400_s9 = sld [smem:[#allocation5_spill]] }
 0x485   : > { %s3401_s21 = smov %s2872_s23  ;;  %s3402_s22 = smov %s2876_s24 }
 0x486   :  { %16 = sbr.rel (!%p14_p9) target bundleno = 4 (0x4), region = 108 }
 0x489   : > { %s3403_s23 = smov %s3399_s7 }
 0x48a   : > { %s3404_s24 = smov %s3400_s9 }

// kernel: lstm_forward.3
= control target key start
LH: loop header
LB: loop body
LE: loop exit
PB: predicated region body
PF: predicated region fallthrough
CT: control target
= control target key end

     0   :  { %s6520_s0 = inlined_call_operand.vmem [shape: bf16[2,8,2,128], index: 0, kind: input, shape index: {}]   ;;  %s6521_s1 = inlined_call_operand.vmem [shape: bf16[2,2,128,512], index: 1, kind: input, shape index: {}]   ;;  %s6522_s2 = inlined_call_operand.vmem [shape: bf16[2,128,512], index: 2, kind: input, shape index: {}]   ;;  %s6523_s3 = inlined_call_operand.vmem [shape: f32[2,1,512], index: 3, kind: input, shape index: {}]   ;;  %s6524_s4 = inlined_call_operand.vmem [shape: f32[2,2,2,128], index: 4, kind: input, shape index: {}]   ;;  %s6525_s5 = inlined_call_operand.vmem [shape: f32[2,8,2,128], index: 5, kind: output, shape index: {0}]   ;;  %s6526_s6 = inlined_call_operand.vmem [shape: f32[2,2,2,128], index: 6, kind: output, shape index: {1}]  }
   0x1   :  { %6606 = sst [smem:[#allocation49_spill]] %s6520_s0 }
   0x2   :  { %6607 = sst [smem:[#allocation50_spill]] %s6521_s1 }
   0x3   :  { %6608 = sst [smem:[#allocation51_spill]] %s6522_s2 }
   0x4   :  { %s5318_s21 = smov 0   ;;  %s5320_s22 = smov 0  }
   0x5   :  { %s5322_s23 = smov 0   ;;  %s5324_s24 = smov 0  }
   0x6   :  { %s5326_s25 = smov 0   ;;  %s5328_s26 = smov 0  }
   0x7   :  { %s5330_s27 = smov 0  }
   0x8 LB: > { %6609 = sst [smem:[#allocation5_spill]] %s5272_s25  ;;  %s26_s28 = sadd.s32 1, %s5272_s25  ;;  %s5280_s27 = sphi %s5330_s27, %s17_s27   ;;  %s5276_s26 = sphi %s5328_s26, %s6768_s26   ;;  %s5272_s25 = sphi %s5326_s25, %s6767_s25   ;;  %s5268_s24 = sphi %s5324_s24, %s6766_s24   ;;  %s5264_s23 = sphi %s5322_s23, %s6765_s23   ;;  %s5260_s22 = sphi %s5320_s22, %s6770_s22   ;;  %s5256_s21 = sphi %s5318_s21, %s6769_s21  }
   0x9   : > { %6610 = sst [smem:[#allocation6_spill]] %s5276_s26  ;;  %s29_s29 = sadd.s32 1, %s5276_s26 }
   0xa   : > { %p27_p0 = scmp.ge.s32.totalorder %s26_s28, 2  ;;  %s33_s30 = ssub.s32 1, %s5276_s26 }
   0xb   : > { %s34_s7 = smul.u32 %s5272_s25, %s33_s30  ;;  %s35_s8 = ssub.s32 1, %s5272_s25 }
   0xc   : > { %s6772_s28 = smov (%p27_p0, %s26_s28), 0  ;;  %s6774_s29 = smov (!%p27_p0, %s29_s29), %s5276_s26 }
   0xd   : > { %6611 = sst [smem:[#allocation7_spill]] %s6772_s28  ;;  %s36_s9 = smul.u32 %s5276_s26, %s35_s8 }
   0xe   : > { %p31_p1 = scmp.ge.s32.totalorder %s6774_s29, 2  ;;  %s40_s10 = ssub.s32 1, %s6772_s28 }
   0xf   : > { %p53_p2 = scmp.ne.s32.totalorder %s5260_s22, %s5256_s21  ;;  %s37_s11 = sadd.s32 %s36_s9, %s34_s7 }
  0x10   : > { %s6776_s29 = smov (%p31_p1, %s6774_s29), 0  ;;  %p54_p3 = scmp.eq.s32.totalorder %s5280_s27, 0 }
  0x11   : > { %6612 = sst [smem:[#allocation8_spill]] %s6776_s29  ;;  %s38_s12 = ssub.s32 1, %s6776_s29 }
  0x12   : > { %s41_s13 = smul.u32 %s40_s10, %s6776_s29  ;;  %p55_p4 = por %p54_p3, %p53_p2 }
  0x13   : > { %s39_s14 = smul.u32 %s38_s12, %s6772_s28  ;;  %s46_s17 = sadd.s32 1, %s5260_s22 }
  0x14   : > { %p4179_p6 = scmp.ge.s32.totalorder %s5280_s27, 4 }
  0x15   : > { %s42_s15 = sadd.s32 %s41_s13, %s39_s14 }
  0x16   : > { %s43_s16 = ssub.s32 %s37_s11, %s42_s15  ;;  %247 = sbr.rel (%p4179_p6) target bundleno = 40 (0x28), region = 16 }
  0x17   : > { %p44_p5 = scmp.eq.s32.totalorder %s43_s16, 0 }
  0x19   : > { %s5373_s18 = scalar_select %p44_p5, %s5260_s22, %s46_s17  }
  0x1b   : > { %6613 = sst [smem:[#allocation9_spill]] %s5373_s18 }
  0x1d   : > { %250 = sbr.rel (!%p55_p4) target bundleno = 40 (0x28), region = 20  ;;  %s252_s19 = sand.u32 (%p55_p4), 1, %s5260_s22  }
  0x1e   : > { %s4181_s20 = sshll.u32 (%p55_p4), %s37_s11, 2  ;;  %s4180_s30 = sshll.u32 (%p55_p4), %s252_s19, 3 }
  0x1f   : > { %s6614_s0 = sld [smem:[#allocation49_spill]] (%p55_p4)  ;;  %s254_s10 = scalar_lea.vmem (%p55_p4), [#allocation4], %s4180_s30 }
  0x25   : > { %s261_s9 = scalar_lea.vmem %s6614_s0, %s4181_s20 }
  0x26   : > { %v277_v0 = vld [vmem:[%s261_s9] sm:$0xf]  ;;  %v279_v1 = vld [vmem:[%s261_s9 + $0x8] sm:$0xf] }
  0x27   : > { %278 = vst [vmem:[%s254_s10] sm:$0xf] %v277_v0  ;;  %280 = vst [vmem:[%s254_s10 + $0x4] sm:$0xf] %v279_v1 }
  0x28 PF: > { %p4182_p7 = scmp.ge.s32.totalorder %s5280_s27, 1  ;;  %p337_p8 = scmp.lt.s32.totalorder %s5280_s27, 5 }
  0x2a   : > { %p338_p9 = pnand %p4182_p7, %p337_p8 }
  0x2c   : > { %341 = sbr.rel (%p338_p9) target bundleno = 1401 (0x579), region = 77 }
  0x33   : > { %s344_s11 = sand.u32 1, %s5256_s21   ;;  %p412_p10 = scmp.lt.s32.totalorder %s5268_s24, 1 }
  0x34   : > { %s4183_s12 = sshll.u32 %s344_s11, 3  ;;  %s431_s13 = ssub.s32 1, %s5268_s24 }
  0x35   : > { %s413_s14 = scalar_select %p412_p10, %s5268_s24, 1 }
  0x36   : > { %s432_s15 = smul.u32 %s5264_s23, %s431_s13  ;;  %s433_s16 = ssub.s32 1, %s5264_s23 }
  0x37   : > { %s4733_s17 = sshll.u32 %s413_s14, 9  ;;  %s4734_s19 = sshll.u32 %s413_s14, 8 }
  0x38   : > { %s6615_s1 = sld [smem:[#allocation50_spill]]  ;;  %s6616_s2 = sld [smem:[#allocation51_spill]] }
  0x39   : > { %s5398_s0 = sshll.u32 %s413_s14, 2  ;;  %s434_s21 = smul.u32 %s5268_s24, %s433_s16 }
  0x3a   : > { %s425_s29 = scalar_lea.vmem %s6523_s3, %s5398_s0  ;;  %s4192_s9 = sshll.u32 %s413_s14, 3 }
  0x3b   : > { %s435_s20 = sadd.s32 %s434_s21, %s432_s15  ;;  %s5420_s13 = scalar_lea.vmem [#allocation4], %s4183_s12 }
  0x3c   : > { %s4191_s30 = sshll.u32 %s435_s20, 2  ;;  %p4196_p12 = scmp.ne.s32.totalorder %s5264_s23, 0 }
  0x3d   : > { %p439_p11 = scmp.lt.s32.totalorder %s4191_s30, 7 }
  0x3e   : > { %s5391_s7 = scalar_lea.vmem %s6615_s1, %s4733_s17  ;;  %s5396_s10 = scalar_lea.vmem %s6616_s2, %s4734_s19 }
  0x3f   : > { %s430_s17 = scalar_lea.vmem %s6524_s4, %s5398_s0  ;;  %s5413_s19 = scalar_lea.vmem %s6526_s6, %s5398_s0 }
  0x40   : > { %s6778_s30 = smov (!%p439_p11, %s4191_s30), 7  ;;  %460 = sbr.rel (%p4196_p12) target bundleno = 71 (0x47), region = 85 }
  0x41   : > { %s442_s2 = sadd.s32 %s4192_s9, %s6778_s30  ;;  %v461_v2 = vld [vmem:[%s430_s17] sm:$0x3] (!%p4196_p12)  ;;  %v4197_v3 = vld [vmem:[%s430_s17 + $0x2] sm:$0x3] (!%p4196_p12) }
  0x42   : > { %s4193_s16 = sshll.u32 %s442_s2, 1  ;;  %462 = vst [vmem:[#allocation2] sm:$0x3] (!%p4196_p12), %v461_v2  ;;  %465 = vst [vmem:[#allocation3] sm:$0x3] (!%p4196_p12), %v4197_v3 }
  0x43   : > { %s5418_s11 = scalar_lea.vmem %s6525_s5, %s4193_s16 }
  0x47 PF: > { %v5424_v4 = vld [vmem:[%s5396_s10 + $0x4] ss:$16 sps:$4 sm:$0xff]   ;;  %v5427_v5 = vld [vmem:[%s5396_s10 + $0xc] ss:$16 sps:$4 sm:$0xff]   ;;  %v6531_v6 = vmov 0   ;;  %p469_p13 = scmp.eq.s32.totalorder %s5268_s24, 0 }
  0x48   : > { %696 = vmatprep.mubr.bf16.mxu0 %v6531_v6  ;;  %737 = vmatprep.mubr.bf16.mxu1 %v6531_v6  ;;  %v5433_v7 = vld [vmem:[%s5396_s10] ss:$16 sps:$4 sm:$0xff]   ;;  %v5436_v8 = vld [vmem:[%s5396_s10 + $0x8] ss:$16 sps:$4 sm:$0xff]   ;;  %v5440_v9 = vld [vmem:[%s5396_s10 + $0x24] ss:$16 sps:$4 sm:$0xff]  }
  0x49   : > { %664 = vmatprep.subr.bf16.mxu0 %v5424_v4  ;;  %705 = vmatprep.subr.bf16.mxu1 %v5427_v5  ;;  %v5445_v10 = vld [vmem:[%s5396_s10 + $0x2c] ss:$16 sps:$4 sm:$0xff]   ;;  %v5448_v11 = vld [vmem:[%s5396_s10 + $0x20] ss:$16 sps:$4 sm:$0xff]   ;;  %v5452_v12 = vld [vmem:[%s5396_s10 + $0x28] ss:$16 sps:$4 sm:$0xff]  }
  0x4a   : > { %665 = vmatpush1.bf16.msra.mxu0 %v5433_v7  ;;  %706 = vmatpush1.bf16.msra.mxu1 %v5436_v8  ;;  %v5456_v13 = vld [vmem:[%s5396_s10 + $0x44] ss:$16 sps:$4 sm:$0xff]   ;;  %v5459_v14 = vld [vmem:[%s5396_s10 + $0x4c] ss:$16 sps:$4 sm:$0xff]   ;;  %v5462_v15 = vld [vmem:[%s5396_s10 + $0x40] ss:$16 sps:$4 sm:$0xff]  }
  0x4b   : > { %666 = vmatprep.subr.bf16.mxu0 %v5440_v9  ;;  %707 = vmatprep.subr.bf16.mxu1 %v5445_v10  ;;  %v5465_v16 = vld [vmem:[%s5396_s10 + $0x48] ss:$16 sps:$4 sm:$0xff]   ;;  %v5470_v17 = vld [vmem:[%s5396_s10 + $0x64] ss:$16 sps:$4 sm:$0xff]   ;;  %v5475_v18 = vld [vmem:[%s5396_s10 + $0x6c] ss:$16 sps:$4 sm:$0xff]  }
  0x4c   : > { %v5478_v19 = vld [vmem:[%s5396_s10 + $0x60] ss:$16 sps:$4 sm:$0xff]   ;;  %v5483_v20 = vld [vmem:[%s5396_s10 + $0x68] ss:$16 sps:$4 sm:$0xff]   ;;  %v5486_v21 = vld [vmem:[%s5396_s10 + $0x84] ss:$16 sps:$4 sm:$0xff]  }
  0x4d   : > { %v5491_v22 = vld [vmem:[%s5396_s10 + $0x8c] ss:$16 sps:$4 sm:$0xff]   ;;  %v5494_v23 = vld [vmem:[%s5396_s10 + $0x80] ss:$16 sps:$4 sm:$0xff]   ;;  %v5497_v24 = vld [vmem:[%s5396_s10 + $0x88] ss:$16 sps:$4 sm:$0xff]  }
  0x4e   : > { %667 = vmatpush1.bf16.msra.mxu0 %v5448_v11  ;;  %708 = vmatpush1.bf16.msra.mxu1 %v5452_v12  ;;  %v5502_v25 = vld [vmem:[%s5396_s10 + $0xa4] ss:$16 sps:$4 sm:$0xff]   ;;  %v5507_v26 = vld [vmem:[%s5396_s10 + $0xac] ss:$16 sps:$4 sm:$0xff]   ;;  %v5510_v27 = vld [vmem:[%s5396_s10 + $0xa0] ss:$16 sps:$4 sm:$0xff]  }
  0x4f   : > { %668 = vmatprep.subr.bf16.mxu0 %v5456_v13  ;;  %709 = vmatprep.subr.bf16.mxu1 %v5459_v14  ;;  %v5515_v28 = vld [vmem:[%s5396_s10 + $0xa8] ss:$16 sps:$4 sm:$0xff]   ;;  %v5518_v29 = vld [vmem:[%s5396_s10 + $0xc4] ss:$16 sps:$4 sm:$0xff]   ;;  %v5523_v30 = vld [vmem:[%s5396_s10 + $0xcc] ss:$16 sps:$4 sm:$0xff]  }
  0x50   : > { %v5526_v31 = vld [vmem:[%s5396_s10 + $0xc0] ss:$16 sps:$4 sm:$0xff]   ;;  %v5531_v32 = vld [vmem:[%s5396_s10 + $0xc8] ss:$16 sps:$4 sm:$0xff]   ;;  %v5536_v33 = vld [vmem:[%s5396_s10 + $0xe4] ss:$16 sps:$4 sm:$0xff]  }
  0x51   : > { %v5539_v34 = vld [vmem:[%s5396_s10 + $0xec] ss:$16 sps:$4 sm:$0xff]   ;;  %v5542_v35 = vld [vmem:[%s5396_s10 + $0xe0] ss:$16 sps:$4 sm:$0xff]   ;;  %v5545_v36 = vld [vmem:[%s5396_s10 + $0xe8] ss:$16 sps:$4 sm:$0xff]  }
  0x52   : > { %669 = vmatpush1.bf16.msra.mxu0 %v5462_v15  ;;  %710 = vmatpush1.bf16.msra.mxu1 %v5465_v16  ;;  %v467_v37 = vld [vmem:[#allocation2] sm:$0x3]  ;;  %v5552_v38 = vld [vmem:[%s5391_s7 + $0x4] ss:$16 sps:$4 sm:$0xff]   ;;  %v5555_v39 = vld [vmem:[%s5391_s7 + $0xc] ss:$16 sps:$4 sm:$0xff]  }
  0x53   : > { %670 = vmatprep.subr.bf16.mxu0 %v5470_v17  ;;  %711 = vmatprep.subr.bf16.mxu1 %v5475_v18  ;;  %v5558_v40 = vld [vmem:[%s5391_s7] ss:$16 sps:$4 sm:$0xff]   ;;  %v471_v41 = vpack.c.bf16 %v467_v37, %v467_v37  ;;  %v5563_v42 = vld [vmem:[%s5391_s7 + $0x8] ss:$16 sps:$4 sm:$0xff]   ;;  %v5568_v43 = vld [vmem:[%s5391_s7 + $0x24] ss:$16 sps:$4 sm:$0xff]  }
  0x54   : > { %v5571_v44 = vld [vmem:[%s5391_s7 + $0x2c] ss:$16 sps:$4 sm:$0xff]   ;;  %v5574_v45 = vld [vmem:[%s5391_s7 + $0x20] ss:$16 sps:$4 sm:$0xff]   ;;  %v5579_v46 = vld [vmem:[%s5391_s7 + $0x28] ss:$16 sps:$4 sm:$0xff]  }
  0x55   : > { %v5584_v47 = vld [vmem:[%s5391_s7 + $0x44] ss:$16 sps:$4 sm:$0xff]   ;;  %v5587_v48 = vld [vmem:[%s5391_s7 + $0x4c] ss:$16 sps:$4 sm:$0xff]   ;;  %v5592_v49 = vld [vmem:[%s5391_s7 + $0x40] ss:$16 sps:$4 sm:$0xff]  }
  0x56   : > { %671 = vmatpush1.bf16.msra.mxu0 %v5478_v19  ;;  %712 = vmatpush1.bf16.msra.mxu1 %v5483_v20  ;;  %v5597_v50 = vld [vmem:[%s5391_s7 + $0x48] ss:$16 sps:$4 sm:$0xff]   ;;  %v5602_v51 = vld [vmem:[%s5391_s7 + $0x64] ss:$16 sps:$4 sm:$0xff]   ;;  %v5605_v52 = vld [vmem:[%s5391_s7 + $0x6c] ss:$16 sps:$4 sm:$0xff]  }
  0x57   : > { %672 = vmatprep.subr.bf16.mxu0 %v5486_v21  ;;  %713 = vmatprep.subr.bf16.mxu1 %v5491_v22  ;;  %v5608_v53 = vld [vmem:[%s5391_s7 + $0x60] ss:$16 sps:$4 sm:$0xff]   ;;  %v5613_v54 = vld [vmem:[%s5391_s7 + $0x68] ss:$16 sps:$4 sm:$0xff]   ;;  %v5618_v55 = vld [vmem:[%s5391_s7 + $0x84] ss:$16 sps:$4 sm:$0xff]  }
  0x58   : > { %v5621_v56 = vld [vmem:[%s5391_s7 + $0x8c] ss:$16 sps:$4 sm:$0xff]   ;;  %v5626_v57 = vld [vmem:[%s5391_s7 + $0x80] ss:$16 sps:$4 sm:$0xff]   ;;  %v5629_v58 = vld [vmem:[%s5391_s7 + $0x88] ss:$16 sps:$4 sm:$0xff]  }
  0x59   : > { %6617 = vst [vmem:[#allocation10_spill] sm:$0xff] %v5629_v58  ;;  %v5634_v59 = vld [vmem:[%s5391_s7 + $0xa4] ss:$16 sps:$4 sm:$0xff]   ;;  %v5637_v60 = vld [vmem:[%s5391_s7 + $0xac] ss:$16 sps:$4 sm:$0xff]  }
  0x5a   : > { %673 = vmatpush1.bf16.msra.mxu0 %v5494_v23  ;;  %714 = vmatpush1.bf16.msra.mxu1 %v5497_v24  ;;  %6618 = vst [vmem:[#allocation11_spill] sm:$0xff] %v5634_v59  ;;  %6619 = vst [vmem:[#allocation12_spill] sm:$0xff] %v5637_v60  ;;  %v5643_v61 = vld [vmem:[%s5391_s7 + $0xa0] ss:$16 sps:$4 sm:$0xff]   ;;  %v5646_v62 = vld [vmem:[%s5391_s7 + $0xa8] ss:$16 sps:$4 sm:$0xff]  }
  0x5b   : > { %674 = vmatprep.subr.bf16.mxu0 %v5502_v25  ;;  %715 = vmatprep.subr.bf16.mxu1 %v5507_v26  ;;  %6620 = vst [vmem:[#allocation13_spill] sm:$0xff] %v5643_v61  ;;  %6621 = vst [vmem:[#allocation14_spill] sm:$0xff] %v5646_v62  ;;  %v5651_v63 = vld [vmem:[%s5391_s7 + $0xc4] ss:$16 sps:$4 sm:$0xff]   ;;  %v5654_v0 = vld [vmem:[%s5391_s7 + $0xcc] ss:$16 sps:$4 sm:$0xff]  }
  0x5c   : > { %6622 = vst [vmem:[#allocation15_spill] sm:$0xff] %v5651_v63  ;;  %6623 = vst [vmem:[#allocation16_spill] sm:$0xff] %v5654_v0  ;;  %s5658_s1 = scalar_select %p469_p13, 0, 3  ;;  %v5663_v1 = vld [vmem:[%s5391_s7 + $0xc0] ss:$16 sps:$4 sm:$0xff]  }
  0x5d   : > { %6624 = vst [vmem:[#allocation17_spill] sm:$0xff] %v5663_v1  ;;  %v5666_v2 = vld [vmem:[%s5391_s7 + $0xc8] ss:$16 sps:$4 sm:$0xff]   ;;  %v5671_v3 = vld [vmem:[%s5391_s7 + $0xe4] ss:$16 sps:$4 sm:$0xff]  }
  0x5e   : > { %675 = vmatpush1.bf16.msra.mxu0 %v5510_v27  ;;  %716 = vmatpush1.bf16.msra.mxu1 %v5515_v28  ;;  %6625 = vst [vmem:[#allocation18_spill] sm:$0xff] %v5666_v2  ;;  %6626 = vst [vmem:[#allocation19_spill] sm:$0xff] %v5671_v3  ;;  %v5674_v37 = vld [vmem:[%s5391_s7 + $0xec] ss:$16 sps:$4 sm:$0xff]   ;;  %s5694_s2 = scalar_lea.vmem %s5420_s13, %s5658_s1 [#allocation4]  ;;  %s4330_s0 = sshll.u32 %s5658_s1, 1 }
  0x5f   : > { %676 = vmatprep.subr.bf16.mxu0 %v5518_v29  ;;  %717 = vmatprep.subr.bf16.mxu1 %v5523_v30  ;;  %6627 = vst [vmem:[#allocation20_spill] sm:$0xff] %v5674_v37  ;;  %s1358_s26 = scalar_lea.vmem %s5418_s11, %s4330_s0 }
  0x60   : > { %s5910_s28 = scalar_select %p469_p13, 1, 2 }
  0x61   : > { %s6218_s14 = scalar_select %p469_p13, 2, 1 }
  0x62   : > { %677 = vmatpush1.bf16.msra.mxu0 %v5526_v31  ;;  %718 = vmatpush1.bf16.msra.mxu1 %v5531_v32  ;;  %s4463_s18 = sshll.u32 %s5910_s28, 1 }
  0x63   : > { %678 = vmatprep.subr.bf16.mxu0 %v5536_v33  ;;  %719 = vmatprep.subr.bf16.mxu1 %v5539_v34  ;;  %s2226_s12 = scalar_lea.vmem %s5418_s11, %s4463_s18  ;;  %s6238_s15 = scalar_lea.vmem %s5420_s13, %s6218_s14 [#allocation4] }
  0x64   : > { %s6442_s21 = scalar_select %p469_p13, 3, 0 }
  0x66   : > { %679 = vmatpush1.bf16.msra.mxu0 %v5542_v35  ;;  %720 = vmatpush1.bf16.msra.mxu1 %v5545_v36  ;;  %s6450_s17 = scalar_lea.vmem %s5420_s13, %s6442_s21 [#allocation4]  ;;  %s4729_s24 = sshll.u32 %s6442_s21, 1 }
  0x67   : > { %965 = vmatprep.subr.bf16.mxu0 %v5552_v38  ;;  %1006 = vmatprep.subr.bf16.mxu1 %v5555_v39  ;;  %s3962_s20 = scalar_lea.vmem %s5418_s11, %s4729_s24 }
  0x69   : > { %697 = vmatmul.mubr.bf16.vlgmr.msra.gmra.mrb[0].mxu0 %v471_v41  ;;  %738 = vmatmul.mubr.bf16.vlgmr.msra.gmra.mrb[0].mxu1 %v471_v41  ;;  %v5679_v41 = vld [vmem:[%s5391_s7 + $0xe0] ss:$16 sps:$4 sm:$0xff]  }
  0x6a   : > { %966 = vmatpush1.bf16.msra.mxu0 %v5558_v40  ;;  %1007 = vmatpush1.bf16.msra.mxu1 %v5563_v42  ;;  %6628 = vst [vmem:[#allocation21_spill] sm:$0xff] %v5679_v41 }
  0x6b   : > { %967 = vmatprep.subr.bf16.mxu0 %v5568_v43  ;;  %1008 = vmatprep.subr.bf16.mxu1 %v5571_v44 }
  0x6c   : > { %997 = vmatprep.mubr.bf16.mxu0 %v6531_v6  ;;  %1038 = vmatprep.mubr.bf16.mxu1 %v6531_v6  ;;  %v5682_v6 = vld [vmem:[%s5391_s7 + $0xe8] ss:$16 sps:$4 sm:$0xff]  }
  0x6d   : > { %6629 = vst [vmem:[#allocation22_spill] sm:$0xff] %v5682_v6 }
  0x6e   : > { %968 = vmatpush1.bf16.msra.mxu0 %v5574_v45  ;;  %1009 = vmatpush1.bf16.msra.mxu1 %v5579_v46 }
  0x6f   : > { %969 = vmatprep.subr.bf16.mxu0 %v5584_v47  ;;  %1010 = vmatprep.subr.bf16.mxu1 %v5587_v48 }
  0x72   : > { %970 = vmatpush1.bf16.msra.mxu0 %v5592_v49  ;;  %1011 = vmatpush1.bf16.msra.mxu1 %v5597_v50 }
  0x73   : > { %971 = vmatprep.subr.bf16.mxu0 %v5602_v51  ;;  %1012 = vmatprep.subr.bf16.mxu1 %v5605_v52 }
  0x76   : > { %972 = vmatpush1.bf16.msra.mxu0 %v5608_v53  ;;  %1013 = vmatpush1.bf16.msra.mxu1 %v5613_v54 }
  0x77   : > { %973 = vmatprep.subr.bf16.mxu0 %v5618_v55  ;;  %1014 = vmatprep.subr.bf16.mxu1 %v5621_v56 }
  0x7a   : > { %974 = vmatpush1.bf16.msra.mxu0 %v5626_v57  ;;  %1015 = vmatpush1.bf16.msra.mxu1 %v5629_v58  ;;  %v5757_v58 = vld [vmem:[%s5391_s7 + $0x18c] ss:$16 sps:$4 sm:$0xff]  }
  0x7b   : > { %975 = vmatprep.subr.bf16.mxu0 %v5634_v59  ;;  %1016 = vmatprep.subr.bf16.mxu1 %v5637_v60  ;;  %v5723_v60 = vld [vmem:[%s5391_s7 + $0x14c] ss:$16 sps:$4 sm:$0xff]   ;;  %v5738_v59 = vld [vmem:[%s5391_s7 + $0x164] ss:$16 sps:$4 sm:$0xff]   ;;  %6648 = vst [vmem:[#allocation40_spill] sm:$0xff] %v5757_v58 }
  0x7c   : > { %6639 = vst [vmem:[#allocation32_spill] sm:$0xff] %v5723_v60  ;;  %6643 = vst [vmem:[#allocation35_spill] sm:$0xff] %v5738_v59 }
  0x7e   : > { %976 = vmatpush1.bf16.msra.mxu0 %v5643_v61  ;;  %1017 = vmatpush1.bf16.msra.mxu1 %v5646_v62  ;;  %v5711_v62 = vld [vmem:[%s5391_s7 + $0x12c] ss:$16 sps:$4 sm:$0xff]   ;;  %v5714_v61 = vld [vmem:[%s5391_s7 + $0x120] ss:$16 sps:$4 sm:$0xff]  }
  0x7f   : > { %977 = vmatprep.subr.bf16.mxu0 %v5651_v63  ;;  %1018 = vmatprep.subr.bf16.mxu1 %v5654_v0  ;;  %v5687_v0 = vld [vmem:[%s5391_s7 + $0x104] ss:$16 sps:$4 sm:$0xff]   ;;  %v5690_v63 = vld [vmem:[%s5391_s7 + $0x10c] ss:$16 sps:$4 sm:$0xff]   ;;  %6635 = vst [vmem:[#allocation28_spill] sm:$0xff] %v5711_v62  ;;  %6636 = vst [vmem:[#allocation29_spill] sm:$0xff] %v5714_v61 }
  0x80   : > { %6630 = vst [vmem:[#allocation23_spill] sm:$0xff] %v5687_v0  ;;  %6631 = vst [vmem:[#allocation24_spill] sm:$0xff] %v5690_v63 }
  0x82   : > { %978 = vmatpush1.bf16.msra.mxu0 %v5663_v1  ;;  %1019 = vmatpush1.bf16.msra.mxu1 %v5666_v2  ;;  %v5697_v2 = vld [vmem:[%s5391_s7 + $0x100] ss:$16 sps:$4 sm:$0xff]   ;;  %v5702_v1 = vld [vmem:[%s5391_s7 + $0x108] ss:$16 sps:$4 sm:$0xff]  }
  0x83   : > { %979 = vmatprep.subr.bf16.mxu0 %v5671_v3  ;;  %1020 = vmatprep.subr.bf16.mxu1 %v5674_v37  ;;  %6632 = vst [vmem:[#allocation25_spill] sm:$0xff] %v5697_v2  ;;  %6633 = vst [vmem:[#allocation26_spill] sm:$0xff] %v5702_v1  ;;  %v772_v3 = vld [vmem:[%s5694_s2] sm:$0x1]  ;;  %v5706_v37 = vld [vmem:[%s5391_s7 + $0x124] ss:$16 sps:$4 sm:$0xff]  }
  0x84   : > { %6634 = vst [vmem:[#allocation27_spill] sm:$0xff] %v5706_v37 }
  0x86   : > { %980 = vmatpush1.bf16.msra.mxu0 %v5679_v41  ;;  %1021 = vmatpush1.bf16.msra.mxu1 %v5682_v6  ;;  %v5717_v41 = vld [vmem:[%s5391_s7 + $0x128] ss:$16 sps:$4 sm:$0xff]   ;;  %v5720_v6 = vld [vmem:[%s5391_s7 + $0x144] ss:$16 sps:$4 sm:$0xff]  }
  0x87   : > { %1247 = vmatprep.subr.bf16.mxu0 %v5687_v0  ;;  %1288 = vmatprep.subr.bf16.mxu1 %v5690_v63  ;;  %6637 = vst [vmem:[#allocation30_spill] sm:$0xff] %v5717_v41  ;;  %6638 = vst [vmem:[#allocation31_spill] sm:$0xff] %v5720_v6  ;;  %v5730_v63 = vld [vmem:[%s5391_s7 + $0x140] ss:$16 sps:$4 sm:$0xff]   ;;  %v5733_v0 = vld [vmem:[%s5391_s7 + $0x148] ss:$16 sps:$4 sm:$0xff]  }
  0x88   : > { %6640 = vst [vmem:[#allocation33_spill] sm:$0xff] %v5730_v63  ;;  %6641 = vst [vmem:[#allocation34_spill] sm:$0xff] %v5733_v0 }
  0x89   : > { %998 = vmatmul.mubr.bf16.vlgmr.msra.gmra.mrb[0].mxu0 %v772_v3  ;;  %1039 = vmatmul.mubr.bf16.vlgmr.msra.gmra.mrb[0].mxu1 %v772_v3  ;;  %v6642_v3 = vmov 0  }
  0x8a   : > { %1248 = vmatpush1.bf16.msra.mxu0 %v5697_v2  ;;  %1289 = vmatpush1.bf16.msra.mxu1 %v5702_v1  ;;  %v5741_v2 = vld [vmem:[%s5391_s7 + $0x16c] ss:$16 sps:$4 sm:$0xff]   ;;  %v5754_v1 = vld [vmem:[%s5391_s7 + $0x184] ss:$16 sps:$4 sm:$0xff]  }
  0x8b   : > { %1249 = vmatprep.subr.bf16.mxu0 %v5706_v37  ;;  %1290 = vmatprep.subr.bf16.mxu1 %v5711_v62  ;;  %6644 = vst [vmem:[#allocation36_spill] sm:$0xff] %v5741_v2  ;;  %v5748_v62 = vld [vmem:[%s5391_s7 + $0x160] ss:$16 sps:$4 sm:$0xff]   ;;  %v5751_v37 = vld [vmem:[%s5391_s7 + $0x168] ss:$16 sps:$4 sm:$0xff]   ;;  %6647 = vst [vmem:[#allocation39_spill] sm:$0xff] %v5754_v1 }
  0x8c   : > { %1279 = vmatprep.mubr.bf16.mxu0 %v6642_v3  ;;  %1320 = vmatprep.mubr.bf16.mxu1 %v6642_v3  ;;  %6645 = vst [vmem:[#allocation37_spill] sm:$0xff] %v5748_v62  ;;  %6646 = vst [vmem:[#allocation38_spill] sm:$0xff] %v5751_v37 }
  0x8e   : > { %1250 = vmatpush1.bf16.msra.mxu0 %v5714_v61  ;;  %1291 = vmatpush1.bf16.msra.mxu1 %v5717_v41  ;;  %v5770_v41 = vld [vmem:[%s5391_s7 + $0x1a4] ss:$16 sps:$4 sm:$0xff]   ;;  %v5773_v61 = vld [vmem:[%s5391_s7 + $0x1ac] ss:$16 sps:$4 sm:$0xff]  }
  0x8f   : > { %1251 = vmatprep.subr.bf16.mxu0 %v5720_v6  ;;  %1292 = vmatprep.subr.bf16.mxu1 %v5723_v60  ;;  %v5764_v60 = vld [vmem:[%s5391_s7 + $0x180] ss:$16 sps:$4 sm:$0xff]   ;;  %v5767_v6 = vld [vmem:[%s5391_s7 + $0x188] ss:$16 sps:$4 sm:$0xff]   ;;  %6650 = vst [vmem:[#allocation42_spill] sm:$0xff] %v5770_v41  ;;  %6651 = vst [vmem:[#allocation43_spill] sm:$0xff] %v5773_v61 }
  0x90   : > { %6649 = vst [vmem:[#allocation41_spill] sm:$0xff] %v5767_v6 }
  0x92   : > { %1252 = vmatpush1.bf16.msra.mxu0 %v5730_v63  ;;  %1293 = vmatpush1.bf16.msra.mxu1 %v5733_v0  ;;  %v5786_v0 = vld [vmem:[%s5391_s7 + $0x1c4] ss:$16 sps:$4 sm:$0xff]   ;;  %v5789_v63 = vld [vmem:[%s5391_s7 + $0x1cc] ss:$16 sps:$4 sm:$0xff]  }
  0x93   : > { %1253 = vmatprep.subr.bf16.mxu0 %v5738_v59  ;;  %1294 = vmatprep.subr.bf16.mxu1 %v5741_v2  ;;  %v5780_v2 = vld [vmem:[%s5391_s7 + $0x1a0] ss:$16 sps:$4 sm:$0xff]   ;;  %v5783_v59 = vld [vmem:[%s5391_s7 + $0x1a8] ss:$16 sps:$4 sm:$0xff]  }
  0x96   : > { %1254 = vmatpush1.bf16.msra.mxu0 %v5748_v62  ;;  %1295 = vmatpush1.bf16.msra.mxu1 %v5751_v37  ;;  %v5802_v37 = vld [vmem:[%s5391_s7 + $0x1e4] ss:$16 sps:$4 sm:$0xff]   ;;  %v5805_v62 = vld [vmem:[%s5391_s7 + $0x1ec] ss:$16 sps:$4 sm:$0xff]  }
  0x97   : > { %1255 = vmatprep.subr.bf16.mxu0 %v5754_v1  ;;  %1296 = vmatprep.subr.bf16.mxu1 %v5757_v58  ;;  %v5796_v58 = vld [vmem:[%s5391_s7 + $0x1c0] ss:$16 sps:$4 sm:$0xff]   ;;  %v5799_v1 = vld [vmem:[%s5391_s7 + $0x1c8] ss:$16 sps:$4 sm:$0xff]  }
  0x9a   : > { %1256 = vmatpush1.bf16.msra.mxu0 %v5764_v60  ;;  %1297 = vmatpush1.bf16.msra.mxu1 %v5767_v6  ;;  %v5815_v6 = vld [vmem:[%s5391_s7 + $0x1e8] ss:$16 sps:$4 sm:$0xff]  }
  0x9b   : > { %1257 = vmatprep.subr.bf16.mxu0 %v5770_v41  ;;  %1298 = vmatprep.subr.bf16.mxu1 %v5773_v61  ;;  %v5812_v41 = vld [vmem:[%s5391_s7 + $0x1e0] ss:$16 sps:$4 sm:$0xff]   ;;  %v4262_v61 = vld [vmem:[%s5694_s2 + $0x4] sm:$0x1] }
  0x9e   : > { %1258 = vmatpush1.bf16.msra.mxu0 %v5780_v2  ;;  %1299 = vmatpush1.bf16.msra.mxu1 %v5783_v59 }
  0x9f   : > { %1259 = vmatprep.subr.bf16.mxu0 %v5786_v0  ;;  %1300 = vmatprep.subr.bf16.mxu1 %v5789_v63 }
  0xa2   : > { %1260 = vmatpush1.bf16.msra.mxu0 %v5796_v58  ;;  %1301 = vmatpush1.bf16.msra.mxu1 %v5799_v1 }
  0xa3   : > { %1261 = vmatprep.subr.bf16.mxu0 %v5802_v37  ;;  %1302 = vmatprep.subr.bf16.mxu1 %v5805_v62 }
  0xa6   : > { %1262 = vmatpush1.bf16.msra.mxu0 %v5812_v41  ;;  %1303 = vmatpush1.bf16.msra.mxu1 %v5815_v6 }
  0xa7   : > { %1554 = vmatprep.subr.bf16.mxu0 %v5424_v4  ;;  %1595 = vmatprep.subr.bf16.mxu1 %v5427_v5  ;;  %v747_v4 = vlaneseq }
  0xa9   : > { %1280 = vmatmul.mubr.bf16.vlgmr.msra.gmra.mrb[0].mxu0 %v4262_v61  ;;  %1321 = vmatmul.mubr.bf16.vlgmr.msra.gmra.mrb[0].mxu1 %v4262_v61  ;;  %v748_v5 = vshrl.u32 %v747_v4, 7 }
  0xaa   : > { %1555 = vmatpush1.bf16.msra.mxu0 %v5433_v7  ;;  %1596 = vmatpush1.bf16.msra.mxu1 %v5436_v8  ;;  %v466_v8 = vld [vmem:[%s425_s29] sm:$0xf]  ;;  %s5918_s29 = scalar_lea.vmem %s5420_s13, %s5910_s28 [#allocation4] }
  0xab   : > { %1556 = vmatprep.subr.bf16.mxu0 %v5440_v9  ;;  %1597 = vmatprep.subr.bf16.mxu1 %v5445_v10  ;;  %v749_v7 = vsub.s32 0, %v748_v5  ;;  %v753_v9 = vsub.s32 1, %v748_v5 }
  0xac   : > { %1586 = vmatprep.mubr.bf16.mxu0 %v6642_v3  ;;  %1627 = vmatprep.mubr.bf16.mxu1 %v6642_v3 }
  0xad   : > { %v5865_v10 = vrot.slane %v466_v8, %v749_v7 }
  0xae   : > { %1557 = vmatpush1.bf16.msra.mxu0 %v5448_v11  ;;  %1598 = vmatpush1.bf16.msra.mxu1 %v5452_v12  ;;  %v5867_v11 = vrot.slane %v466_v8, %v753_v9 }
  0xaf   : > { %1558 = vmatprep.subr.bf16.mxu0 %v5456_v13  ;;  %1599 = vmatprep.subr.bf16.mxu1 %v5459_v14  ;;  %v761_v14 = vsub.s32 3, %v748_v5 }
  0xb2   : > { %1559 = vmatpush1.bf16.msra.mxu0 %v5462_v15  ;;  %1600 = vmatpush1.bf16.msra.mxu1 %v5465_v16 }
  0xb3   : > { %1560 = vmatprep.subr.bf16.mxu0 %v5470_v17  ;;  %1601 = vmatprep.subr.bf16.mxu1 %v5475_v18 }
  0xb6   : > { %1561 = vmatpush1.bf16.msra.mxu0 %v5478_v19  ;;  %1602 = vmatpush1.bf16.msra.mxu1 %v5483_v20 }
  0xb7   : > { %1562 = vmatprep.subr.bf16.mxu0 %v5486_v21  ;;  %1603 = vmatprep.subr.bf16.mxu1 %v5491_v22 }
  0xba   : > { %1563 = vmatpush1.bf16.msra.mxu0 %v5494_v23  ;;  %1604 = vmatpush1.bf16.msra.mxu1 %v5497_v24 }
  0xbb   : > { %1564 = vmatprep.subr.bf16.mxu0 %v5502_v25  ;;  %1605 = vmatprep.subr.bf16.mxu1 %v5507_v26  ;;  %v5871_v25 = vrot.slane %v466_v8, %v761_v14  ;;  %v757_v26 = vsub.s32 2, %v748_v5 }
  0xbe   : > { %1565 = vmatpush1.bf16.msra.mxu0 %v5510_v27  ;;  %1606 = vmatpush1.bf16.msra.mxu1 %v5515_v28  ;;  %v5874_v28 = vrot.slane %v466_v8, %v757_v26  ;;  %v6678_v26 = vld [vmem:[#allocation36_spill] sm:$0xff] }
  0xbf   : > { %1566 = vmatprep.subr.bf16.mxu0 %v5518_v29  ;;  %1607 = vmatprep.subr.bf16.mxu1 %v5523_v30 }
  0xc2   : > { %1567 = vmatpush1.bf16.msra.mxu0 %v5526_v31  ;;  %1608 = vmatpush1.bf16.msra.mxu1 %v5531_v32 }
  0xc3   : > { %1568 = vmatprep.subr.bf16.mxu0 %v5536_v33  ;;  %1609 = vmatprep.subr.bf16.mxu1 %v5539_v34 }
  0xc6   : > { %1569 = vmatpush1.bf16.msra.mxu0 %v5542_v35  ;;  %1610 = vmatpush1.bf16.msra.mxu1 %v5545_v36 }
  0xc7   : > { %1834 = vmatprep.subr.bf16.mxu0 %v5552_v38  ;;  %1875 = vmatprep.subr.bf16.mxu1 %v5555_v39  ;;  %v468_v38 = vld [vmem:[#allocation3] sm:$0x3] }
 0x17c   : > { %v1281_v12 = vpop.f32.mrb[0].mxu0  ;;  %v1322_v13 = vpop.f32.mrb[0].mxu1 }
 0x17d   : > { %v4737_v15 = vadd.f32 %v1281_v12, %v5865_v10  ;;  %v1283_v16 = vpop.f32.mrb[1].mxu0  ;;  %v1324_v17 = vpop.f32.mrb[1].mxu1  ;;  %v4739_v30 = vadd.f32 %v1322_v13, %v5874_v28 }
 0x17e   : > { %v4738_v18 = vadd.f32 %v1283_v16, %v5867_v11  ;;  %v1285_v19 = vpop.f32.mrb[2].mxu0  ;;  %v1326_v20 = vpop.f32.mrb[2].mxu1  ;;  %v4740_v27 = vadd.f32 %v1324_v17, %v5871_v25  ;;  %v6669_v16 = vld [vmem:[#allocation27_spill] sm:$0xff]  ;;  %v6670_v17 = vld [vmem:[#allocation28_spill] sm:$0xff] }
 0x17f   : > { %v4327_v21 = vmul.f32 -1.442695, %v4737_v15  ;;  %v1286_v22 = vpop.f32.mrb[3].mxu0  ;;  %v1327_v23 = vpop.f32.mrb[3].mxu1  ;;  %v6668_v15 = vld [vmem:[#allocation26_spill] sm:$0xff]  ;;  %v6673_v20 = vld [vmem:[#allocation31_spill] sm:$0xff] }
 0x180   : > { %v4328_v24 = vmul.f32 -1.442695, %v4738_v18  ;;  %v4329_v29 = vmul.f32 -1.442695, %v4740_v27  ;;  %v6671_v18 = vld [vmem:[#allocation29_spill] sm:$0xff]  ;;  %v6672_v19 = vld [vmem:[#allocation30_spill] sm:$0xff] }
 0x181   : > { %5162 = vpow2.f32 %v4327_v21  ;;  %v6674_v21 = vld [vmem:[#allocation32_spill] sm:$0xff]  ;;  %v6675_v22 = vld [vmem:[#allocation33_spill] sm:$0xff]  ;;  %v6676_v23 = vld [vmem:[#allocation34_spill] sm:$0xff] }
 0x182   : > { %5164 = vpow2.f32 %v4328_v24  ;;  %v6677_v24 = vld [vmem:[#allocation35_spill] sm:$0xff]  ;;  %v6679_v27 = vld [vmem:[#allocation37_spill] sm:$0xff] }
 0x183   : > { %5166 = vpow2.f32 %v4329_v29  ;;  %v6680_v29 = vld [vmem:[#allocation38_spill] sm:$0xff] }
 0x184   : > { %5168 = vtanh.f32 %v4739_v30  ;;  %v6681_v30 = vld [vmem:[#allocation39_spill] sm:$0xff] }
 0x18b   : > { %v5163_v31 = vpop.eup %5162 }
 0x18c   : > { %v5165_v32 = vpop.eup %5164  ;;  %v1336_v33 = vadd.f32 1.0, %v5163_v31  ;;  %v6682_v31 = vld [vmem:[#allocation40_spill] sm:$0xff] }
 0x18d   : > { %v1342_v34 = vadd.f32 1.0, %v5165_v32  ;;  %v5167_v35 = vpop.eup %5166  ;;  %v6683_v32 = vld [vmem:[#allocation41_spill] sm:$0xff] }
 0x18e   : > { %5170 = vrcp.f32 %v1336_v33  ;;  %v5169_v36 = vpop.eup %5168  ;;  %v1349_v5 = vadd.f32 1.0, %v5167_v35  ;;  %v6684_v33 = vld [vmem:[#allocation42_spill] sm:$0xff]  ;;  %v5999_v35 = vld [vmem:[%s5396_s10 + $0x40] ss:$16 sps:$4 sm:$0xff]  }
 0x18f   : > { %5172 = vrcp.f32 %v1342_v34  ;;  %v6685_v34 = vld [vmem:[#allocation43_spill] sm:$0xff] }
 0x190   : > { %5174 = vrcp.f32 %v1349_v5  ;;  %v6025_v5 = vld [vmem:[%s5396_s10 + $0x84] ss:$16 sps:$4 sm:$0xff]  }
 0x198   : > { %v5171_v39 = vpop.eup %5170 }
 0x199   : > { %v5173_v61 = vpop.eup %5172  ;;  %v1353_v4 = vmul.f32 %v5171_v39, %v5169_v36  ;;  %v6002_v36 = vld [vmem:[%s5396_s10 + $0x48] ss:$16 sps:$4 sm:$0xff]   ;;  %v6012_v39 = vld [vmem:[%s5396_s10 + $0x6c] ss:$16 sps:$4 sm:$0xff]  }
 0x19a   : > { %v1352_v7 = vmul.f32 %v5173_v61, %v468_v38  ;;  %v5175_v9 = vpop.eup %5174  ;;  %v6009_v38 = vld [vmem:[%s5396_s10 + $0x64] ss:$16 sps:$4 sm:$0xff]   ;;  %v6015_v61 = vld [vmem:[%s5396_s10 + $0x60] ss:$16 sps:$4 sm:$0xff]  }
 0x19c   : > { %v5877_v8 = vadd.f32 %v1353_v4, %v1352_v7  ;;  %v6018_v4 = vld [vmem:[%s5396_s10 + $0x68] ss:$16 sps:$4 sm:$0xff]   ;;  %v6028_v7 = vld [vmem:[%s5396_s10 + $0x8c] ss:$16 sps:$4 sm:$0xff]  }
 0x19e   : > { %5176 = vtanh.f32 %v5877_v8 }
 0x1a8   : > { %v5177_v12 = vpop.eup %5176 }
 0x1a9   : > { %v1356_v13 = vmul.f32 %v5177_v12, %v5175_v9  ;;  %v6031_v9 = vld [vmem:[%s5396_s10 + $0x80] ss:$16 sps:$4 sm:$0xff]   ;;  %v6034_v12 = vld [vmem:[%s5396_s10 + $0x88] ss:$16 sps:$4 sm:$0xff]  }
 0x1ab   : > { %1359 = vst [vmem:[%s1358_s26] sm:$0x3] %v1356_v13  ;;  %v1361_v14 = vpack.c.bf16 %v1356_v13, %v1356_v13  ;;  %v6041_v13 = vld [vmem:[%s5396_s10 + $0xa0] ss:$16 sps:$4 sm:$0xff]  }
 0x1ad   : > { %1587 = vmatmul.mubr.bf16.vlgmr.msra.gmra.mrb[4].mxu0 %v1361_v14  ;;  %1628 = vmatmul.mubr.bf16.vlgmr.msra.gmra.mrb[4].mxu1 %v1361_v14  ;;  %v6044_v14 = vld [vmem:[%s5396_s10 + $0xa4] ss:$16 sps:$4 sm:$0xff]  }
 0x1ae   : > { %1835 = vmatpush1.bf16.msra.mxu0 %v5558_v40  ;;  %1876 = vmatpush1.bf16.msra.mxu1 %v5563_v42  ;;  %v6652_v40 = vld [vmem:[#allocation10_spill] sm:$0xff]  ;;  %v6653_v42 = vld [vmem:[#allocation11_spill] sm:$0xff] }
 0x1af   : > { %1836 = vmatprep.subr.bf16.mxu0 %v5568_v43  ;;  %1877 = vmatprep.subr.bf16.mxu1 %v5571_v44  ;;  %v6654_v43 = vld [vmem:[#allocation12_spill] sm:$0xff]  ;;  %v6655_v44 = vld [vmem:[#allocation13_spill] sm:$0xff] }
 0x1b0   : > { %1866 = vmatprep.mubr.bf16.mxu0 %v6642_v3  ;;  %1907 = vmatprep.mubr.bf16.mxu1 %v6642_v3 }
 0x1b2   : > { %1837 = vmatpush1.bf16.msra.mxu0 %v5574_v45  ;;  %1878 = vmatpush1.bf16.msra.mxu1 %v5579_v46  ;;  %v6656_v45 = vld [vmem:[#allocation14_spill] sm:$0xff]  ;;  %v6657_v46 = vld [vmem:[#allocation15_spill] sm:$0xff] }
 0x1b3   : > { %1838 = vmatprep.subr.bf16.mxu0 %v5584_v47  ;;  %1879 = vmatprep.subr.bf16.mxu1 %v5587_v48  ;;  %v6658_v47 = vld [vmem:[#allocation16_spill] sm:$0xff]  ;;  %v6659_v48 = vld [vmem:[#allocation17_spill] sm:$0xff] }
 0x1b6   : > { %1839 = vmatpush1.bf16.msra.mxu0 %v5592_v49  ;;  %1880 = vmatpush1.bf16.msra.mxu1 %v5597_v50  ;;  %v6660_v49 = vld [vmem:[#allocation18_spill] sm:$0xff]  ;;  %v6661_v50 = vld [vmem:[#allocation19_spill] sm:$0xff] }
 0x1b7   : > { %1840 = vmatprep.subr.bf16.mxu0 %v5602_v51  ;;  %1881 = vmatprep.subr.bf16.mxu1 %v5605_v52  ;;  %v6662_v51 = vld [vmem:[#allocation20_spill] sm:$0xff]  ;;  %v6663_v52 = vld [vmem:[#allocation21_spill] sm:$0xff] }
 0x1ba   : > { %1841 = vmatpush1.bf16.msra.mxu0 %v5608_v53  ;;  %1882 = vmatpush1.bf16.msra.mxu1 %v5613_v54  ;;  %v6664_v53 = vld [vmem:[#allocation22_spill] sm:$0xff]  ;;  %v1641_v54 = vld [vmem:[%s5918_s29] sm:$0x1] }
 0x1bb   : > { %1842 = vmatprep.subr.bf16.mxu0 %v5618_v55  ;;  %1883 = vmatprep.subr.bf16.mxu1 %v5621_v56  ;;  %v6665_v55 = vld [vmem:[#allocation23_spill] sm:$0xff]  ;;  %v6666_v56 = vld [vmem:[#allocation24_spill] sm:$0xff] }
 0x1be   : > { %1843 = vmatpush1.bf16.msra.mxu0 %v5626_v57  ;;  %1884 = vmatpush1.bf16.msra.mxu1 %v6652_v40  ;;  %v6667_v57 = vld [vmem:[#allocation25_spill] sm:$0xff]  ;;  %v6047_v40 = vld [vmem:[%s5396_s10 + $0xa8] ss:$16 sps:$4 sm:$0xff]  }
 0x1bf   : > { %1844 = vmatprep.subr.bf16.mxu0 %v6653_v42  ;;  %1885 = vmatprep.subr.bf16.mxu1 %v6654_v43  ;;  %v6050_v42 = vld [vmem:[%s5396_s10 + $0xac] ss:$16 sps:$4 sm:$0xff]   ;;  %v6053_v43 = vld [vmem:[%s5396_s10 + $0xc4] ss:$16 sps:$4 sm:$0xff]  }
 0x1c2   : > { %1845 = vmatpush1.bf16.msra.mxu0 %v6655_v44  ;;  %1886 = vmatpush1.bf16.msra.mxu1 %v6656_v45  ;;  %v6057_v44 = vld [vmem:[%s5396_s10 + $0xcc] ss:$16 sps:$4 sm:$0xff]   ;;  %v6063_v45 = vld [vmem:[%s5396_s10 + $0xc0] ss:$16 sps:$4 sm:$0xff]  }
 0x1c3   : > { %1846 = vmatprep.subr.bf16.mxu0 %v6657_v46  ;;  %1887 = vmatprep.subr.bf16.mxu1 %v6658_v47  ;;  %v6066_v46 = vld [vmem:[%s5396_s10 + $0xc8] ss:$16 sps:$4 sm:$0xff]   ;;  %v6071_v47 = vld [vmem:[%s5396_s10 + $0xe4] ss:$16 sps:$4 sm:$0xff]  }
 0x1c6   : > { %1847 = vmatpush1.bf16.msra.mxu0 %v6659_v48  ;;  %1888 = vmatpush1.bf16.msra.mxu1 %v6660_v49  ;;  %v6074_v48 = vld [vmem:[%s5396_s10 + $0xec] ss:$16 sps:$4 sm:$0xff]   ;;  %v6079_v49 = vld [vmem:[%s5396_s10 + $0xe0] ss:$16 sps:$4 sm:$0xff]  }
 0x1c7   : > { %1848 = vmatprep.subr.bf16.mxu0 %v6661_v50  ;;  %1889 = vmatprep.subr.bf16.mxu1 %v6662_v51  ;;  %v6082_v50 = vld [vmem:[%s5396_s10 + $0xe8] ss:$16 sps:$4 sm:$0xff]   ;;  %v6087_v51 = vld [vmem:[%s5391_s7 + $0x4] ss:$16 sps:$4 sm:$0xff]  }
 0x1ca   : > { %1849 = vmatpush1.bf16.msra.mxu0 %v6663_v52  ;;  %1890 = vmatpush1.bf16.msra.mxu1 %v6664_v53  ;;  %v6090_v52 = vld [vmem:[%s5391_s7 + $0xc] ss:$16 sps:$4 sm:$0xff]  }
 0x1cb   : > { %2115 = vmatprep.subr.bf16.mxu0 %v6665_v55  ;;  %2156 = vmatprep.subr.bf16.mxu1 %v6666_v56 }
 0x1cd   : > { %1867 = vmatmul.mubr.bf16.vlgmr.msra.gmra.mrb[4].mxu0 %v1641_v54  ;;  %1908 = vmatmul.mubr.bf16.vlgmr.msra.gmra.mrb[4].mxu1 %v1641_v54 }
 0x1ce   : > { %2116 = vmatpush1.bf16.msra.mxu0 %v6667_v57  ;;  %2157 = vmatpush1.bf16.msra.mxu1 %v6668_v15 }
 0x1cf   : > { %2117 = vmatprep.subr.bf16.mxu0 %v6669_v16  ;;  %2158 = vmatprep.subr.bf16.mxu1 %v6670_v17 }
 0x1d0   : > { %2147 = vmatprep.mubr.bf16.mxu0 %v6642_v3  ;;  %2188 = vmatprep.mubr.bf16.mxu1 %v6642_v3 }
 0x1d2   : > { %2118 = vmatpush1.bf16.msra.mxu0 %v6671_v18  ;;  %2159 = vmatpush1.bf16.msra.mxu1 %v6672_v19 }
 0x1d3   : > { %2119 = vmatprep.subr.bf16.mxu0 %v6673_v20  ;;  %2160 = vmatprep.subr.bf16.mxu1 %v6674_v21 }
 0x1d6   : > { %2120 = vmatpush1.bf16.msra.mxu0 %v6675_v22  ;;  %2161 = vmatpush1.bf16.msra.mxu1 %v6676_v23 }
 0x1d7   : > { %2121 = vmatprep.subr.bf16.mxu0 %v6677_v24  ;;  %2162 = vmatprep.subr.bf16.mxu1 %v6678_v26 }
 0x1da   : > { %2122 = vmatpush1.bf16.msra.mxu0 %v6679_v27  ;;  %2163 = vmatpush1.bf16.msra.mxu1 %v6680_v29 }
 0x1db   : > { %2123 = vmatprep.subr.bf16.mxu0 %v6681_v30  ;;  %2164 = vmatprep.subr.bf16.mxu1 %v6682_v31 }
 0x1de   : > { %2124 = vmatpush1.bf16.msra.mxu0 %v5764_v60  ;;  %2165 = vmatpush1.bf16.msra.mxu1 %v6683_v32  ;;  %v5964_v60 = vld [vmem:[%s5396_s10 + $0xc] ss:$16 sps:$4 sm:$0xff]  }
 0x1df   : > { %2125 = vmatprep.subr.bf16.mxu0 %v6684_v33  ;;  %2166 = vmatprep.subr.bf16.mxu1 %v6685_v34 }
 0x1e2   : > { %2126 = vmatpush1.bf16.msra.mxu0 %v5780_v2  ;;  %2167 = vmatpush1.bf16.msra.mxu1 %v5783_v59  ;;  %v4395_v59 = vld [vmem:[%s5918_s29 + $0x4] sm:$0x1]  ;;  %v5986_v2 = vld [vmem:[%s5396_s10 + $0x28] ss:$16 sps:$4 sm:$0xff]  }
 0x1e3   : > { %2127 = vmatprep.subr.bf16.mxu0 %v5786_v0  ;;  %2168 = vmatprep.subr.bf16.mxu1 %v5789_v63  ;;  %v5970_v63 = vld [vmem:[%s5396_s10 + $0x8] ss:$16 sps:$4 sm:$0xff]   ;;  %v5980_v0 = vld [vmem:[%s5396_s10 + $0x2c] ss:$16 sps:$4 sm:$0xff]  }
 0x1e6   : > { %2128 = vmatpush1.bf16.msra.mxu0 %v5796_v58  ;;  %2169 = vmatpush1.bf16.msra.mxu1 %v5799_v1  ;;  %v5961_v58 = vld [vmem:[%s5396_s10 + $0x4] ss:$16 sps:$4 sm:$0xff]   ;;  %v5983_v1 = vld [vmem:[%s5396_s10 + $0x20] ss:$16 sps:$4 sm:$0xff]  }
 0x1e7   : > { %2129 = vmatprep.subr.bf16.mxu0 %v5802_v37  ;;  %2170 = vmatprep.subr.bf16.mxu1 %v5805_v62  ;;  %v5967_v62 = vld [vmem:[%s5396_s10] ss:$16 sps:$4 sm:$0xff]   ;;  %v5993_v37 = vld [vmem:[%s5396_s10 + $0x44] ss:$16 sps:$4 sm:$0xff]  }
 0x1ea   : > { %2130 = vmatpush1.bf16.msra.mxu0 %v5812_v41  ;;  %2171 = vmatpush1.bf16.msra.mxu1 %v5815_v6  ;;  %v5977_v6 = vld [vmem:[%s5396_s10 + $0x24] ss:$16 sps:$4 sm:$0xff]   ;;  %v5996_v41 = vld [vmem:[%s5396_s10 + $0x4c] ss:$16 sps:$4 sm:$0xff]  }
 0x1eb   : > { %2422 = vmatprep.subr.bf16.mxu0 %v5961_v58  ;;  %2463 = vmatprep.subr.bf16.mxu1 %v5964_v60 }
 0x1ed   : > { %2148 = vmatmul.mubr.bf16.vlgmr.msra.gmra.mrb[4].mxu0 %v4395_v59  ;;  %2189 = vmatmul.mubr.bf16.vlgmr.msra.gmra.mrb[4].mxu1 %v4395_v59 }
 0x1ee   : > { %2454 = vmatprep.mubr.bf16.mxu0 %v6642_v3  ;;  %2495 = vmatprep.mubr.bf16.mxu1 %v6642_v3 }
 0x1ef   : > { %2423 = vmatpush1.bf16.msra.mxu0 %v5967_v62  ;;  %2464 = vmatpush1.bf16.msra.mxu1 %v5970_v63 }
 0x1f0   : > { %2424 = vmatprep.subr.bf16.mxu0 %v5977_v6  ;;  %2465 = vmatprep.subr.bf16.mxu1 %v5980_v0 }
 0x1f3   : > { %2425 = vmatpush1.bf16.msra.mxu0 %v5983_v1  ;;  %2466 = vmatpush1.bf16.msra.mxu1 %v5986_v2 }
 0x1f4   : > { %2426 = vmatprep.subr.bf16.mxu0 %v5993_v37  ;;  %2467 = vmatprep.subr.bf16.mxu1 %v5996_v41 }
 0x1f7   : > { %2427 = vmatpush1.bf16.msra.mxu0 %v5999_v35  ;;  %2468 = vmatpush1.bf16.msra.mxu1 %v6002_v36 }
 0x1f8   : > { %2428 = vmatprep.subr.bf16.mxu0 %v6009_v38  ;;  %2469 = vmatprep.subr.bf16.mxu1 %v6012_v39 }
 0x1fb   : > { %2429 = vmatpush1.bf16.msra.mxu0 %v6015_v61  ;;  %2470 = vmatpush1.bf16.msra.mxu1 %v6018_v4 }
 0x1fc   : > { %2430 = vmatprep.subr.bf16.mxu0 %v6025_v5  ;;  %2471 = vmatprep.subr.bf16.mxu1 %v6028_v7 }
 0x1ff   : > { %2431 = vmatpush1.bf16.msra.mxu0 %v6031_v9  ;;  %2472 = vmatpush1.bf16.msra.mxu1 %v6034_v12 }
 0x200   : > { %2432 = vmatprep.subr.bf16.mxu0 %v6044_v14  ;;  %2473 = vmatprep.subr.bf16.mxu1 %v6050_v42 }
 0x203   : > { %2433 = vmatpush1.bf16.msra.mxu0 %v6041_v13  ;;  %2474 = vmatpush1.bf16.msra.mxu1 %v6047_v40 }
 0x204   : > { %2434 = vmatprep.subr.bf16.mxu0 %v6053_v43  ;;  %2475 = vmatprep.subr.bf16.mxu1 %v6057_v44 }
 0x207   : > { %2435 = vmatpush1.bf16.msra.mxu0 %v6063_v45  ;;  %2476 = vmatpush1.bf16.msra.mxu1 %v6066_v46 }
 0x208   : > { %2436 = vmatprep.subr.bf16.mxu0 %v6071_v47  ;;  %2477 = vmatprep.subr.bf16.mxu1 %v6074_v48 }
 0x20b   : > { %2437 = vmatpush1.bf16.msra.mxu0 %v6079_v49  ;;  %2478 = vmatpush1.bf16.msra.mxu1 %v6082_v50 }
 0x20c   : > { %2702 = vmatprep.subr.bf16.mxu0 %v6087_v51  ;;  %2743 = vmatprep.subr.bf16.mxu1 %v6090_v52 }
 0x2c0   : > { %v2149_v53 = vpop.f32.mrb[4].mxu0  ;;  %v2190_v54 = vpop.f32.mrb[4].mxu1 }
 0x2c1   : > { %v4741_v55 = vadd.f32 %v2149_v53, %v5865_v10  ;;  %v2151_v56 = vpop.f32.mrb[5].mxu0  ;;  %v2192_v57 = vpop.f32.mrb[5].mxu1  ;;  %v4743_v24 = vadd.f32 %v2190_v54, %v5874_v28 }
 0x2c2   : > { %v4742_v15 = vadd.f32 %v2151_v56, %v5867_v11  ;;  %v2153_v16 = vpop.f32.mrb[6].mxu0  ;;  %v2194_v17 = vpop.f32.mrb[6].mxu1  ;;  %v4744_v22 = vadd.f32 %v2192_v57, %v5871_v25 }
 0x2c3   : > { %v4460_v18 = vmul.f32 -1.442695, %v4741_v55  ;;  %v2154_v19 = vpop.f32.mrb[7].mxu0  ;;  %v2195_v20 = vpop.f32.mrb[7].mxu1  ;;  %v6107_v16 = vld [vmem:[%s5391_s7] ss:$16 sps:$4 sm:$0xff]  }
 0x2c4   : > { %v4461_v21 = vmul.f32 -1.442695, %v4742_v15  ;;  %v4462_v23 = vmul.f32 -1.442695, %v4744_v22  ;;  %v6110_v17 = vld [vmem:[%s5391_s7 + $0x8] ss:$16 sps:$4 sm:$0xff]  }
 0x2c5   : > { %5178 = vpow2.f32 %v4460_v18  ;;  %v6113_v18 = vld [vmem:[%s5391_s7 + $0x24] ss:$16 sps:$4 sm:$0xff]   ;;  %v6116_v19 = vld [vmem:[%s5391_s7 + $0x2c] ss:$16 sps:$4 sm:$0xff]   ;;  %v6121_v20 = vld [vmem:[%s5391_s7 + $0x20] ss:$16 sps:$4 sm:$0xff]  }
 0x2c6   : > { %5180 = vpow2.f32 %v4461_v21  ;;  %v6124_v21 = vld [vmem:[%s5391_s7 + $0x28] ss:$16 sps:$4 sm:$0xff]   ;;  %v6129_v22 = vld [vmem:[%s5391_s7 + $0x44] ss:$16 sps:$4 sm:$0xff]  }
 0x2c7   : > { %5182 = vpow2.f32 %v4462_v23  ;;  %v6132_v23 = vld [vmem:[%s5391_s7 + $0x4c] ss:$16 sps:$4 sm:$0xff]  }
 0x2c8   : > { %5184 = vtanh.f32 %v4743_v24  ;;  %v6139_v24 = vld [vmem:[%s5391_s7 + $0x40] ss:$16 sps:$4 sm:$0xff]  }
 0x2cf   : > { %v5179_v26 = vpop.eup %5178 }
 0x2d0   : > { %v5181_v27 = vpop.eup %5180  ;;  %v2204_v29 = vadd.f32 1.0, %v5179_v26  ;;  %v6142_v26 = vld [vmem:[%s5391_s7 + $0x48] ss:$16 sps:$4 sm:$0xff]  }
 0x2d1   : > { %v2210_v30 = vadd.f32 1.0, %v5181_v27  ;;  %v5183_v31 = vpop.eup %5182  ;;  %v6147_v27 = vld [vmem:[%s5391_s7 + $0x64] ss:$16 sps:$4 sm:$0xff]  }
 0x2d2   : > { %5186 = vrcp.f32 %v2204_v29  ;;  %v5185_v32 = vpop.eup %5184  ;;  %v2217_v53 = vadd.f32 1.0, %v5183_v31  ;;  %v6150_v29 = vld [vmem:[%s5391_s7 + $0x6c] ss:$16 sps:$4 sm:$0xff]   ;;  %v6158_v31 = vld [vmem:[%s5391_s7 + $0x68] ss:$16 sps:$4 sm:$0xff]  }
 0x2d3   : > { %5188 = vrcp.f32 %v2210_v30  ;;  %v6155_v30 = vld [vmem:[%s5391_s7 + $0x60] ss:$16 sps:$4 sm:$0xff]  }
 0x2d4   : > { %5190 = vrcp.f32 %v2217_v53  ;;  %v6179_v53 = vld [vmem:[%s5391_s7 + $0xa4] ss:$16 sps:$4 sm:$0xff]  }
 0x2d5   : > { %6689 = vst [vmem:[#allocation13_spill] sm:$0xff] %v6179_v53 }
 0x2dc   : > { %v5187_v33 = vpop.eup %5186 }
 0x2dd   : > { %v5189_v34 = vpop.eup %5188  ;;  %v2221_v59 = vmul.f32 %v5187_v33, %v5185_v32  ;;  %v6163_v32 = vld [vmem:[%s5391_s7 + $0x84] ss:$16 sps:$4 sm:$0xff]   ;;  %v6166_v33 = vld [vmem:[%s5391_s7 + $0x8c] ss:$16 sps:$4 sm:$0xff]  }
 0x2de   : > { %v2220_v54 = vmul.f32 %v5189_v34, %v5877_v8  ;;  %v5191_v56 = vpop.eup %5190  ;;  %6686 = vst [vmem:[#allocation10_spill] sm:$0xff] %v6166_v33  ;;  %v6171_v34 = vld [vmem:[%s5391_s7 + $0x80] ss:$16 sps:$4 sm:$0xff]  }
 0x2df   : > { %6687 = vst [vmem:[#allocation11_spill] sm:$0xff] %v6171_v34 }
 0x2e0   : > { %v6101_v55 = vadd.f32 %v2221_v59, %v2220_v54  ;;  %v6174_v59 = vld [vmem:[%s5391_s7 + $0x88] ss:$16 sps:$4 sm:$0xff]   ;;  %v6182_v54 = vld [vmem:[%s5391_s7 + $0xac] ss:$16 sps:$4 sm:$0xff]  }
 0x2e1   : > { %6688 = vst [vmem:[#allocation12_spill] sm:$0xff] %v6174_v59  ;;  %6690 = vst [vmem:[#allocation14_spill] sm:$0xff] %v6182_v54 }
 0x2e2   : > { %5192 = vtanh.f32 %v6101_v55 }
 0x2ec   : > { %v5193_v57 = vpop.eup %5192 }
 0x2ed   : > { %v2224_v15 = vmul.f32 %v5193_v57, %v5191_v56  ;;  %v6187_v56 = vld [vmem:[%s5391_s7 + $0xa0] ss:$16 sps:$4 sm:$0xff]   ;;  %v6190_v57 = vld [vmem:[%s5391_s7 + $0xa8] ss:$16 sps:$4 sm:$0xff]  }
 0x2ee   : > { %6691 = vst [vmem:[#allocation15_spill] sm:$0xff] %v6187_v56  ;;  %6692 = vst [vmem:[#allocation16_spill] sm:$0xff] %v6190_v57 }
 0x2ef   : > { %2227 = vst [vmem:[%s2226_s12] sm:$0x3] %v2224_v15  ;;  %v2229_v8 = vpack.c.bf16 %v2224_v15, %v2224_v15  ;;  %v6195_v15 = vld [vmem:[%s5391_s7 + $0xc4] ss:$16 sps:$4 sm:$0xff]  }
 0x2f0   : > { %6693 = vst [vmem:[#allocation17_spill] sm:$0xff] %v6195_v15 }
 0x2f1   : > { %2455 = vmatmul.mubr.bf16.vlgmr.msra.gmra.mrb[8].mxu0 %v2229_v8  ;;  %2496 = vmatmul.mubr.bf16.vlgmr.msra.gmra.mrb[8].mxu1 %v2229_v8  ;;  %v6198_v8 = vld [vmem:[%s5391_s7 + $0xcc] ss:$16 sps:$4 sm:$0xff]  }
 0x2f2   : > { %2703 = vmatpush1.bf16.msra.mxu0 %v6107_v16  ;;  %2744 = vmatpush1.bf16.msra.mxu1 %v6110_v17  ;;  %6694 = vst [vmem:[#allocation18_spill] sm:$0xff] %v6198_v8 }
 0x2f3   : > { %2704 = vmatprep.subr.bf16.mxu0 %v6113_v18  ;;  %2745 = vmatprep.subr.bf16.mxu1 %v6116_v19 }
 0x2f4   : > { %2734 = vmatprep.mubr.bf16.mxu0 %v6642_v3  ;;  %2775 = vmatprep.mubr.bf16.mxu1 %v6642_v3 }
 0x2f6   : > { %2705 = vmatpush1.bf16.msra.mxu0 %v6121_v20  ;;  %2746 = vmatpush1.bf16.msra.mxu1 %v6124_v21 }
 0x2f7   : > { %2706 = vmatprep.subr.bf16.mxu0 %v6129_v22  ;;  %2747 = vmatprep.subr.bf16.mxu1 %v6132_v23 }
 0x2fa   : > { %2707 = vmatpush1.bf16.msra.mxu0 %v6139_v24  ;;  %2748 = vmatpush1.bf16.msra.mxu1 %v6142_v26 }
 0x2fb   : > { %2708 = vmatprep.subr.bf16.mxu0 %v6147_v27  ;;  %2749 = vmatprep.subr.bf16.mxu1 %v6150_v29 }
 0x2fe   : > { %2709 = vmatpush1.bf16.msra.mxu0 %v6155_v30  ;;  %2750 = vmatpush1.bf16.msra.mxu1 %v6158_v31 }
 0x2ff   : > { %2710 = vmatprep.subr.bf16.mxu0 %v6163_v32  ;;  %2751 = vmatprep.subr.bf16.mxu1 %v6166_v33  ;;  %v6255_v33 = vld [vmem:[%s5391_s7 + $0x12c] ss:$16 sps:$4 sm:$0xff]  }
 0x300   : > { %6706 = vst [vmem:[#allocation30_spill] sm:$0xff] %v6255_v33 }
 0x302   : > { %2711 = vmatpush1.bf16.msra.mxu0 %v6171_v34  ;;  %2752 = vmatpush1.bf16.msra.mxu1 %v6174_v59  ;;  %v6203_v59 = vld [vmem:[%s5391_s7 + $0xc0] ss:$16 sps:$4 sm:$0xff]   ;;  %v6206_v34 = vld [vmem:[%s5391_s7 + $0xc8] ss:$16 sps:$4 sm:$0xff]  }
 0x303   : > { %2712 = vmatprep.subr.bf16.mxu0 %v6179_v53  ;;  %2753 = vmatprep.subr.bf16.mxu1 %v6182_v54  ;;  %6695 = vst [vmem:[#allocation19_spill] sm:$0xff] %v6203_v59  ;;  %6696 = vst [vmem:[#allocation20_spill] sm:$0xff] %v6206_v34  ;;  %v6211_v54 = vld [vmem:[%s5391_s7 + $0xe4] ss:$16 sps:$4 sm:$0xff]   ;;  %v6214_v53 = vld [vmem:[%s5391_s7 + $0xec] ss:$16 sps:$4 sm:$0xff]  }
 0x304   : > { %6697 = vst [vmem:[#allocation21_spill] sm:$0xff] %v6211_v54  ;;  %6698 = vst [vmem:[#allocation22_spill] sm:$0xff] %v6214_v53 }
 0x306   : > { %2713 = vmatpush1.bf16.msra.mxu0 %v6187_v56  ;;  %2754 = vmatpush1.bf16.msra.mxu1 %v6190_v57  ;;  %v6223_v57 = vld [vmem:[%s5391_s7 + $0xe0] ss:$16 sps:$4 sm:$0xff]   ;;  %v6234_v56 = vld [vmem:[%s5391_s7 + $0x10c] ss:$16 sps:$4 sm:$0xff]  }
 0x307   : > { %2714 = vmatprep.subr.bf16.mxu0 %v6195_v15  ;;  %2755 = vmatprep.subr.bf16.mxu1 %v6198_v8  ;;  %6699 = vst [vmem:[#allocation23_spill] sm:$0xff] %v6223_v57  ;;  %v6226_v15 = vld [vmem:[%s5391_s7 + $0xe8] ss:$16 sps:$4 sm:$0xff]   ;;  %v6231_v8 = vld [vmem:[%s5391_s7 + $0x104] ss:$16 sps:$4 sm:$0xff]   ;;  %6702 = vst [vmem:[#allocation26_spill] sm:$0xff] %v6234_v56 }
 0x308   : > { %6700 = vst [vmem:[#allocation24_spill] sm:$0xff] %v6226_v15  ;;  %6701 = vst [vmem:[#allocation25_spill] sm:$0xff] %v6231_v8 }
 0x30a   : > { %2715 = vmatpush1.bf16.msra.mxu0 %v6203_v59  ;;  %2756 = vmatpush1.bf16.msra.mxu1 %v6206_v34  ;;  %v6243_v34 = vld [vmem:[%s5391_s7 + $0x100] ss:$16 sps:$4 sm:$0xff]   ;;  %v6252_v59 = vld [vmem:[%s5391_s7 + $0x124] ss:$16 sps:$4 sm:$0xff]  }
 0x30b   : > { %2716 = vmatprep.subr.bf16.mxu0 %v6211_v54  ;;  %2757 = vmatprep.subr.bf16.mxu1 %v6214_v53  ;;  %6703 = vst [vmem:[#allocation27_spill] sm:$0xff] %v6243_v34  ;;  %v6246_v54 = vld [vmem:[%s5391_s7 + $0x108] ss:$16 sps:$4 sm:$0xff]   ;;  %v2509_v53 = vld [vmem:[%s6238_s15] sm:$0x1]  ;;  %6705 = vst [vmem:[#allocation29_spill] sm:$0xff] %v6252_v59 }
 0x30c   : > { %6704 = vst [vmem:[#allocation28_spill] sm:$0xff] %v6246_v54 }
 0x30e   : > { %2717 = vmatpush1.bf16.msra.mxu0 %v6223_v57  ;;  %2758 = vmatpush1.bf16.msra.mxu1 %v6226_v15  ;;  %v6260_v15 = vld [vmem:[%s5391_s7 + $0x120] ss:$16 sps:$4 sm:$0xff]   ;;  %v6263_v57 = vld [vmem:[%s5391_s7 + $0x128] ss:$16 sps:$4 sm:$0xff]  }
 0x30f   : > { %2983 = vmatprep.subr.bf16.mxu0 %v6231_v8  ;;  %3024 = vmatprep.subr.bf16.mxu1 %v6234_v56  ;;  %6707 = vst [vmem:[#allocation31_spill] sm:$0xff] %v6260_v15  ;;  %6708 = vst [vmem:[#allocation32_spill] sm:$0xff] %v6263_v57  ;;  %v6268_v56 = vld [vmem:[%s5391_s7 + $0x144] ss:$16 sps:$4 sm:$0xff]   ;;  %v6271_v8 = vld [vmem:[%s5391_s7 + $0x14c] ss:$16 sps:$4 sm:$0xff]  }
 0x310   : > { %6709 = vst [vmem:[#allocation33_spill] sm:$0xff] %v6268_v56  ;;  %6710 = vst [vmem:[#allocation34_spill] sm:$0xff] %v6271_v8 }
 0x311   : > { %2735 = vmatmul.mubr.bf16.vlgmr.msra.gmra.mrb[8].mxu0 %v2509_v53  ;;  %2776 = vmatmul.mubr.bf16.vlgmr.msra.gmra.mrb[8].mxu1 %v2509_v53  ;;  %v6278_v53 = vld [vmem:[%s5391_s7 + $0x140] ss:$16 sps:$4 sm:$0xff]  }
 0x312   : > { %2984 = vmatpush1.bf16.msra.mxu0 %v6243_v34  ;;  %3025 = vmatpush1.bf16.msra.mxu1 %v6246_v54  ;;  %6711 = vst [vmem:[#allocation35_spill] sm:$0xff] %v6278_v53  ;;  %v6289_v54 = vld [vmem:[%s5391_s7 + $0x16c] ss:$16 sps:$4 sm:$0xff]   ;;  %v6361_v34 = vld [vmem:[%s5391_s7 + $0x1e8] ss:$16 sps:$4 sm:$0xff]  }
 0x313   : > { %2985 = vmatprep.subr.bf16.mxu0 %v6252_v59  ;;  %3026 = vmatprep.subr.bf16.mxu1 %v6255_v33  ;;  %v6281_v59 = vld [vmem:[%s5391_s7 + $0x148] ss:$16 sps:$4 sm:$0xff]   ;;  %v6286_v33 = vld [vmem:[%s5391_s7 + $0x164] ss:$16 sps:$4 sm:$0xff]   ;;  %6714 = vst [vmem:[#allocation38_spill] sm:$0xff] %v6289_v54 }
 0x314   : > { %3015 = vmatprep.mubr.bf16.mxu0 %v6642_v3  ;;  %3056 = vmatprep.mubr.bf16.mxu1 %v6642_v3  ;;  %6712 = vst [vmem:[#allocation36_spill] sm:$0xff] %v6281_v59  ;;  %6713 = vst [vmem:[#allocation37_spill] sm:$0xff] %v6286_v33 }
 0x316   : > { %2986 = vmatpush1.bf16.msra.mxu0 %v6260_v15  ;;  %3027 = vmatpush1.bf16.msra.mxu1 %v6263_v57  ;;  %v6294_v57 = vld [vmem:[%s5391_s7 + $0x160] ss:$16 sps:$4 sm:$0xff]   ;;  %v6297_v15 = vld [vmem:[%s5391_s7 + $0x168] ss:$16 sps:$4 sm:$0xff]  }
 0x317   : > { %2987 = vmatprep.subr.bf16.mxu0 %v6268_v56  ;;  %3028 = vmatprep.subr.bf16.mxu1 %v6271_v8  ;;  %6715 = vst [vmem:[#allocation39_spill] sm:$0xff] %v6294_v57  ;;  %6716 = vst [vmem:[#allocation40_spill] sm:$0xff] %v6297_v15  ;;  %v6302_v8 = vld [vmem:[%s5391_s7 + $0x184] ss:$16 sps:$4 sm:$0xff]   ;;  %v6305_v56 = vld [vmem:[%s5391_s7 + $0x18c] ss:$16 sps:$4 sm:$0xff]  }
 0x318   : > { %6717 = vst [vmem:[#allocation41_spill] sm:$0xff] %v6302_v8  ;;  %6718 = vst [vmem:[#allocation42_spill] sm:$0xff] %v6305_v56 }
 0x31a   : > { %2988 = vmatpush1.bf16.msra.mxu0 %v6278_v53  ;;  %3029 = vmatpush1.bf16.msra.mxu1 %v6281_v59  ;;  %v6310_v59 = vld [vmem:[%s5391_s7 + $0x180] ss:$16 sps:$4 sm:$0xff]   ;;  %v6313_v53 = vld [vmem:[%s5391_s7 + $0x188] ss:$16 sps:$4 sm:$0xff]  }
 0x31b   : > { %2989 = vmatprep.subr.bf16.mxu0 %v6286_v33  ;;  %3030 = vmatprep.subr.bf16.mxu1 %v6289_v54  ;;  %6719 = vst [vmem:[#allocation43_spill] sm:$0xff] %v6310_v59  ;;  %6720 = vst [vmem:[#allocation44_spill] sm:$0xff] %v6313_v53  ;;  %v6318_v54 = vld [vmem:[%s5391_s7 + $0x1a4] ss:$16 sps:$4 sm:$0xff]   ;;  %v6321_v33 = vld [vmem:[%s5391_s7 + $0x1ac] ss:$16 sps:$4 sm:$0xff]  }
 0x31c   : > { %6721 = vst [vmem:[#allocation45_spill] sm:$0xff] %v6318_v54  ;;  %6722 = vst [vmem:[#allocation46_spill] sm:$0xff] %v6321_v33 }
 0x31e   : > { %2990 = vmatpush1.bf16.msra.mxu0 %v6294_v57  ;;  %3031 = vmatpush1.bf16.msra.mxu1 %v6297_v15  ;;  %v6326_v15 = vld [vmem:[%s5391_s7 + $0x1a0] ss:$16 sps:$4 sm:$0xff]   ;;  %v6329_v57 = vld [vmem:[%s5391_s7 + $0x1a8] ss:$16 sps:$4 sm:$0xff]  }
 0x31f   : > { %2991 = vmatprep.subr.bf16.mxu0 %v6302_v8  ;;  %3032 = vmatprep.subr.bf16.mxu1 %v6305_v56  ;;  %6723 = vst [vmem:[#allocation47_spill] sm:$0xff] %v6326_v15  ;;  %v6334_v56 = vld [vmem:[%s5391_s7 + $0x1c4] ss:$16 sps:$4 sm:$0xff]   ;;  %v6337_v8 = vld [vmem:[%s5391_s7 + $0x1cc] ss:$16 sps:$4 sm:$0xff]  }
 0x320   : > { %6724 = vst [vmem:[#allocation48_spill] sm:$0xff] %v6337_v8 }
 0x322   : > { %2992 = vmatpush1.bf16.msra.mxu0 %v6310_v59  ;;  %3033 = vmatpush1.bf16.msra.mxu1 %v6313_v53  ;;  %v6342_v53 = vld [vmem:[%s5391_s7 + $0x1c0] ss:$16 sps:$4 sm:$0xff]   ;;  %v6345_v59 = vld [vmem:[%s5391_s7 + $0x1c8] ss:$16 sps:$4 sm:$0xff]  }
 0x323   : > { %2993 = vmatprep.subr.bf16.mxu0 %v6318_v54  ;;  %3034 = vmatprep.subr.bf16.mxu1 %v6321_v33  ;;  %v6350_v54 = vld [vmem:[%s5391_s7 + $0x1e4] ss:$16 sps:$4 sm:$0xff]   ;;  %v6353_v33 = vld [vmem:[%s5391_s7 + $0x1ec] ss:$16 sps:$4 sm:$0xff]  }
 0x326   : > { %2994 = vmatpush1.bf16.msra.mxu0 %v6326_v15  ;;  %3035 = vmatpush1.bf16.msra.mxu1 %v6329_v57  ;;  %v6358_v15 = vld [vmem:[%s5391_s7 + $0x1e0] ss:$16 sps:$4 sm:$0xff]   ;;  %s4596_s7 = sshll.u32 %s6218_s14, 1 }
 0x327   : > { %2995 = vmatprep.subr.bf16.mxu0 %v6334_v56  ;;  %3036 = vmatprep.subr.bf16.mxu1 %v6337_v8  ;;  %v4528_v8 = vld [vmem:[%s6238_s15 + $0x4] sm:$0x1]  ;;  %s3094_s10 = scalar_lea.vmem %s5418_s11, %s4596_s7 }
 0x32a   : > { %2996 = vmatpush1.bf16.msra.mxu0 %v6342_v53  ;;  %3037 = vmatpush1.bf16.msra.mxu1 %v6345_v59 }
 0x32b   : > { %2997 = vmatprep.subr.bf16.mxu0 %v6350_v54  ;;  %3038 = vmatprep.subr.bf16.mxu1 %v6353_v33 }
 0x32e   : > { %2998 = vmatpush1.bf16.msra.mxu0 %v6358_v15  ;;  %3039 = vmatpush1.bf16.msra.mxu1 %v6361_v34 }
 0x32f   : > { %3290 = vmatprep.subr.bf16.mxu0 %v5961_v58  ;;  %3331 = vmatprep.subr.bf16.mxu1 %v5964_v60 }
 0x331   : > { %3016 = vmatmul.mubr.bf16.vlgmr.msra.gmra.mrb[8].mxu0 %v4528_v8  ;;  %3057 = vmatmul.mubr.bf16.vlgmr.msra.gmra.mrb[8].mxu1 %v4528_v8  ;;  %v6743_v8 = vld [vmem:[#allocation28_spill] sm:$0xff] }
 0x332   : > { %3291 = vmatpush1.bf16.msra.mxu0 %v5967_v62  ;;  %3332 = vmatpush1.bf16.msra.mxu1 %v5970_v63 }
 0x333   : > { %3292 = vmatprep.subr.bf16.mxu0 %v5977_v6  ;;  %3333 = vmatprep.subr.bf16.mxu1 %v5980_v0 }
 0x334   : > { %3322 = vmatprep.mubr.bf16.mxu0 %v6642_v3  ;;  %3363 = vmatprep.mubr.bf16.mxu1 %v6642_v3 }
 0x336   : > { %3293 = vmatpush1.bf16.msra.mxu0 %v5983_v1  ;;  %3334 = vmatpush1.bf16.msra.mxu1 %v5986_v2 }
 0x337   : > { %3294 = vmatprep.subr.bf16.mxu0 %v5993_v37  ;;  %3335 = vmatprep.subr.bf16.mxu1 %v5996_v41 }
 0x33a   : > { %3295 = vmatpush1.bf16.msra.mxu0 %v5999_v35  ;;  %3336 = vmatpush1.bf16.msra.mxu1 %v6002_v36 }
 0x33b   : > { %3296 = vmatprep.subr.bf16.mxu0 %v6009_v38  ;;  %3337 = vmatprep.subr.bf16.mxu1 %v6012_v39 }
 0x33e   : > { %3297 = vmatpush1.bf16.msra.mxu0 %v6015_v61  ;;  %3338 = vmatpush1.bf16.msra.mxu1 %v6018_v4 }
 0x33f   : > { %3298 = vmatprep.subr.bf16.mxu0 %v6025_v5  ;;  %3339 = vmatprep.subr.bf16.mxu1 %v6028_v7 }
 0x342   : > { %3299 = vmatpush1.bf16.msra.mxu0 %v6031_v9  ;;  %3340 = vmatpush1.bf16.msra.mxu1 %v6034_v12 }
 0x343   : > { %3300 = vmatprep.subr.bf16.mxu0 %v6044_v14  ;;  %3341 = vmatprep.subr.bf16.mxu1 %v6050_v42 }
 0x346   : > { %3301 = vmatpush1.bf16.msra.mxu0 %v6041_v13  ;;  %3342 = vmatpush1.bf16.msra.mxu1 %v6047_v40 }
 0x347   : > { %3302 = vmatprep.subr.bf16.mxu0 %v6053_v43  ;;  %3343 = vmatprep.subr.bf16.mxu1 %v6057_v44 }
 0x34a   : > { %3303 = vmatpush1.bf16.msra.mxu0 %v6063_v45  ;;  %3344 = vmatpush1.bf16.msra.mxu1 %v6066_v46 }
 0x34b   : > { %3304 = vmatprep.subr.bf16.mxu0 %v6071_v47  ;;  %3345 = vmatprep.subr.bf16.mxu1 %v6074_v48 }
 0x34e   : > { %3305 = vmatpush1.bf16.msra.mxu0 %v6079_v49  ;;  %3346 = vmatpush1.bf16.msra.mxu1 %v6082_v50  ;;  %v6725_v50 = vld [vmem:[#allocation10_spill] sm:$0xff] }
 0x34f   : > { %3570 = vmatprep.subr.bf16.mxu0 %v6087_v51  ;;  %3611 = vmatprep.subr.bf16.mxu1 %v6090_v52  ;;  %v6726_v51 = vld [vmem:[#allocation11_spill] sm:$0xff]  ;;  %v6727_v52 = vld [vmem:[#allocation12_spill] sm:$0xff] }
 0x404   : > { %v3017_v58 = vpop.f32.mrb[8].mxu0  ;;  %v3058_v60 = vpop.f32.mrb[8].mxu1 }
 0x405   : > { %v4745_v62 = vadd.f32 %v3017_v58, %v5865_v10  ;;  %v3019_v63 = vpop.f32.mrb[9].mxu0  ;;  %v3060_v6 = vpop.f32.mrb[9].mxu1  ;;  %v4747_v61 = vadd.f32 %v3058_v60, %v5874_v28  ;;  %v6744_v58 = vld [vmem:[#allocation29_spill] sm:$0xff]  ;;  %v6745_v60 = vld [vmem:[#allocation30_spill] sm:$0xff] }
 0x406   : > { %v4746_v0 = vadd.f32 %v3019_v63, %v5867_v11  ;;  %v3021_v1 = vpop.f32.mrb[10].mxu0  ;;  %v3062_v2 = vpop.f32.mrb[10].mxu1  ;;  %v4748_v38 = vadd.f32 %v3060_v6, %v5871_v25  ;;  %v6747_v63 = vld [vmem:[#allocation32_spill] sm:$0xff]  ;;  %v6748_v6 = vld [vmem:[#allocation33_spill] sm:$0xff] }
 0x407   : > { %v4593_v37 = vmul.f32 -1.442695, %v4745_v62  ;;  %v3022_v41 = vpop.f32.mrb[11].mxu0  ;;  %v3063_v35 = vpop.f32.mrb[11].mxu1  ;;  %v6746_v62 = vld [vmem:[#allocation31_spill] sm:$0xff]  ;;  %v6751_v2 = vld [vmem:[#allocation36_spill] sm:$0xff] }
 0x408   : > { %v4594_v36 = vmul.f32 -1.442695, %v4746_v0  ;;  %v4595_v39 = vmul.f32 -1.442695, %v4748_v38  ;;  %v6749_v0 = vld [vmem:[#allocation34_spill] sm:$0xff]  ;;  %v6750_v1 = vld [vmem:[#allocation35_spill] sm:$0xff] }
 0x409   : > { %5194 = vpow2.f32 %v4593_v37  ;;  %v6752_v37 = vld [vmem:[#allocation37_spill] sm:$0xff]  ;;  %v6753_v41 = vld [vmem:[#allocation38_spill] sm:$0xff]  ;;  %v6754_v35 = vld [vmem:[#allocation39_spill] sm:$0xff] }
 0x40a   : > { %5196 = vpow2.f32 %v4594_v36  ;;  %v6755_v36 = vld [vmem:[#allocation40_spill] sm:$0xff]  ;;  %v6757_v38 = vld [vmem:[#allocation42_spill] sm:$0xff] }
 0x40b   : > { %5198 = vpow2.f32 %v4595_v39  ;;  %v6758_v39 = vld [vmem:[#allocation43_spill] sm:$0xff] }
 0x40c   : > { %5200 = vtanh.f32 %v4747_v61  ;;  %v6759_v61 = vld [vmem:[#allocation44_spill] sm:$0xff] }
 0x413   : > { %v5195_v4 = vpop.eup %5194 }
 0x414   : > { %v5197_v5 = vpop.eup %5196  ;;  %v3072_v7 = vadd.f32 1.0, %v5195_v4  ;;  %v6760_v4 = vld [vmem:[#allocation45_spill] sm:$0xff] }
 0x415   : > { %v3078_v9 = vadd.f32 1.0, %v5197_v5  ;;  %v5199_v12 = vpop.eup %5198  ;;  %v6761_v5 = vld [vmem:[#allocation46_spill] sm:$0xff] }
 0x416   : > { %5202 = vrcp.f32 %v3072_v7  ;;  %v5201_v13 = vpop.eup %5200  ;;  %v3085_v43 = vadd.f32 1.0, %v5199_v12  ;;  %v6762_v7 = vld [vmem:[#allocation47_spill] sm:$0xff]  ;;  %v4661_v12 = vld [vmem:[%s6450_s17 + $0x4] sm:$0x1] }
 0x417   : > { %5204 = vrcp.f32 %v3078_v9  ;;  %v6763_v9 = vld [vmem:[#allocation48_spill] sm:$0xff] }
 0x418   : > { %5206 = vrcp.f32 %v3085_v43 }
 0x420   : > { %v5203_v14 = vpop.eup %5202 }
 0x421   : > { %v5205_v40 = vpop.eup %5204  ;;  %v3089_v42 = vmul.f32 %v5203_v14, %v5201_v13 }
 0x422   : > { %v3088_v44 = vmul.f32 %v5205_v40, %v6101_v55  ;;  %v5207_v46 = vpop.eup %5206  ;;  %v6728_v55 = vld [vmem:[#allocation13_spill] sm:$0xff] }
 0x424   : > { %v6409_v45 = vadd.f32 %v3089_v42, %v3088_v44 }
 0x426   : > { %5208 = vtanh.f32 %v6409_v45 }
 0x430   : > { %v5209_v47 = vpop.eup %5208 }
 0x431   : > { %v3092_v48 = vmul.f32 %v5209_v47, %v5207_v46 }
 0x433   : > { %3095 = vst [vmem:[%s3094_s10] sm:$0x3] %v3092_v48  ;;  %v3097_v49 = vpack.c.bf16 %v3092_v48, %v3092_v48 }
 0x435   : > { %3323 = vmatmul.mubr.bf16.vlgmr.msra.gmra.mrb[12].mxu0 %v3097_v49  ;;  %3364 = vmatmul.mubr.bf16.vlgmr.msra.gmra.mrb[12].mxu1 %v3097_v49 }
 0x436   : > { %3571 = vmatpush1.bf16.msra.mxu0 %v6107_v16  ;;  %3612 = vmatpush1.bf16.msra.mxu1 %v6110_v17  ;;  %v6729_v16 = vld [vmem:[#allocation14_spill] sm:$0xff]  ;;  %v6730_v17 = vld [vmem:[#allocation15_spill] sm:$0xff] }
 0x437   : > { %3572 = vmatprep.subr.bf16.mxu0 %v6113_v18  ;;  %3613 = vmatprep.subr.bf16.mxu1 %v6116_v19  ;;  %v6731_v18 = vld [vmem:[#allocation16_spill] sm:$0xff]  ;;  %v6732_v19 = vld [vmem:[#allocation17_spill] sm:$0xff] }
 0x438   : > { %3602 = vmatprep.mubr.bf16.mxu0 %v6642_v3  ;;  %3643 = vmatprep.mubr.bf16.mxu1 %v6642_v3 }
 0x43a   : > { %3573 = vmatpush1.bf16.msra.mxu0 %v6121_v20  ;;  %3614 = vmatpush1.bf16.msra.mxu1 %v6124_v21  ;;  %v6733_v20 = vld [vmem:[#allocation18_spill] sm:$0xff]  ;;  %v6734_v21 = vld [vmem:[#allocation19_spill] sm:$0xff] }
 0x43b   : > { %3574 = vmatprep.subr.bf16.mxu0 %v6129_v22  ;;  %3615 = vmatprep.subr.bf16.mxu1 %v6132_v23  ;;  %v6735_v22 = vld [vmem:[#allocation20_spill] sm:$0xff]  ;;  %v6736_v23 = vld [vmem:[#allocation21_spill] sm:$0xff] }
 0x43e   : > { %3575 = vmatpush1.bf16.msra.mxu0 %v6139_v24  ;;  %3616 = vmatpush1.bf16.msra.mxu1 %v6142_v26  ;;  %v6737_v24 = vld [vmem:[#allocation22_spill] sm:$0xff]  ;;  %v6738_v26 = vld [vmem:[#allocation23_spill] sm:$0xff] }
 0x43f   : > { %3576 = vmatprep.subr.bf16.mxu0 %v6147_v27  ;;  %3617 = vmatprep.subr.bf16.mxu1 %v6150_v29  ;;  %v6739_v27 = vld [vmem:[#allocation24_spill] sm:$0xff]  ;;  %v3377_v29 = vld [vmem:[%s6450_s17] sm:$0x1] }
 0x442   : > { %3577 = vmatpush1.bf16.msra.mxu0 %v6155_v30  ;;  %3618 = vmatpush1.bf16.msra.mxu1 %v6158_v31  ;;  %v6740_v30 = vld [vmem:[#allocation25_spill] sm:$0xff]  ;;  %v6741_v31 = vld [vmem:[#allocation26_spill] sm:$0xff] }
 0x443   : > { %3578 = vmatprep.subr.bf16.mxu0 %v6163_v32  ;;  %3619 = vmatprep.subr.bf16.mxu1 %v6725_v50  ;;  %v6742_v32 = vld [vmem:[#allocation27_spill] sm:$0xff] }
 0x446   : > { %3579 = vmatpush1.bf16.msra.mxu0 %v6726_v51  ;;  %3620 = vmatpush1.bf16.msra.mxu1 %v6727_v52 }
 0x447   : > { %3580 = vmatprep.subr.bf16.mxu0 %v6728_v55  ;;  %3621 = vmatprep.subr.bf16.mxu1 %v6729_v16 }
 0x44a   : > { %3581 = vmatpush1.bf16.msra.mxu0 %v6730_v17  ;;  %3622 = vmatpush1.bf16.msra.mxu1 %v6731_v18 }
 0x44b   : > { %3582 = vmatprep.subr.bf16.mxu0 %v6732_v19  ;;  %3623 = vmatprep.subr.bf16.mxu1 %v6733_v20 }
 0x44e   : > { %3583 = vmatpush1.bf16.msra.mxu0 %v6734_v21  ;;  %3624 = vmatpush1.bf16.msra.mxu1 %v6735_v22 }
 0x44f   : > { %3584 = vmatprep.subr.bf16.mxu0 %v6736_v23  ;;  %3625 = vmatprep.subr.bf16.mxu1 %v6737_v24 }
 0x452   : > { %3585 = vmatpush1.bf16.msra.mxu0 %v6738_v26  ;;  %3626 = vmatpush1.bf16.msra.mxu1 %v6739_v27 }
 0x453   : > { %3851 = vmatprep.subr.bf16.mxu0 %v6740_v30  ;;  %3892 = vmatprep.subr.bf16.mxu1 %v6741_v31 }
 0x455   : > { %3603 = vmatmul.mubr.bf16.vlgmr.msra.gmra.mrb[12].mxu0 %v3377_v29  ;;  %3644 = vmatmul.mubr.bf16.vlgmr.msra.gmra.mrb[12].mxu1 %v3377_v29 }
 0x456   : > { %3852 = vmatpush1.bf16.msra.mxu0 %v6742_v32  ;;  %3893 = vmatpush1.bf16.msra.mxu1 %v6743_v8 }
 0x457   : > { %3853 = vmatprep.subr.bf16.mxu0 %v6744_v58  ;;  %3894 = vmatprep.subr.bf16.mxu1 %v6745_v60 }
 0x458   : > { %3883 = vmatprep.mubr.bf16.mxu0 %v6642_v3  ;;  %3924 = vmatprep.mubr.bf16.mxu1 %v6642_v3  ;;  %v6756_v3 = vld [vmem:[#allocation41_spill] sm:$0xff] }
 0x45a   : > { %3854 = vmatpush1.bf16.msra.mxu0 %v6746_v62  ;;  %3895 = vmatpush1.bf16.msra.mxu1 %v6747_v63 }
 0x45b   : > { %3855 = vmatprep.subr.bf16.mxu0 %v6748_v6  ;;  %3896 = vmatprep.subr.bf16.mxu1 %v6749_v0 }
 0x45e   : > { %3856 = vmatpush1.bf16.msra.mxu0 %v6750_v1  ;;  %3897 = vmatpush1.bf16.msra.mxu1 %v6751_v2 }
 0x45f   : > { %3857 = vmatprep.subr.bf16.mxu0 %v6752_v37  ;;  %3898 = vmatprep.subr.bf16.mxu1 %v6753_v41 }
 0x462   : > { %3858 = vmatpush1.bf16.msra.mxu0 %v6754_v35  ;;  %3899 = vmatpush1.bf16.msra.mxu1 %v6755_v36 }
 0x463   : > { %3859 = vmatprep.subr.bf16.mxu0 %v6756_v3  ;;  %3900 = vmatprep.subr.bf16.mxu1 %v6757_v38 }
 0x466   : > { %3860 = vmatpush1.bf16.msra.mxu0 %v6758_v39  ;;  %3901 = vmatpush1.bf16.msra.mxu1 %v6759_v61 }
 0x467   : > { %3861 = vmatprep.subr.bf16.mxu0 %v6760_v4  ;;  %3902 = vmatprep.subr.bf16.mxu1 %v6761_v5 }
 0x46a   : > { %3862 = vmatpush1.bf16.msra.mxu0 %v6762_v7  ;;  %3903 = vmatpush1.bf16.msra.mxu1 %v6329_v57 }
 0x46b   : > { %3863 = vmatprep.subr.bf16.mxu0 %v6334_v56  ;;  %3904 = vmatprep.subr.bf16.mxu1 %v6763_v9 }
 0x46e   : > { %3864 = vmatpush1.bf16.msra.mxu0 %v6342_v53  ;;  %3905 = vmatpush1.bf16.msra.mxu1 %v6345_v59 }
 0x46f   : > { %3865 = vmatprep.subr.bf16.mxu0 %v6350_v54  ;;  %3906 = vmatprep.subr.bf16.mxu1 %v6353_v33 }
 0x472   : > { %3866 = vmatpush1.bf16.msra.mxu0 %v6358_v15  ;;  %3907 = vmatpush1.bf16.msra.mxu1 %v6361_v34 }
 0x475   : > { %3884 = vmatmul.mubr.bf16.vlgmr.msra.gmra.mrb[12].mxu0 %v4661_v12  ;;  %3925 = vmatmul.mubr.bf16.vlgmr.msra.gmra.mrb[12].mxu1 %v4661_v12 }
 0x548   : > { %v3885_v57 = vpop.f32.mrb[12].mxu0  ;;  %v3926_v13 = vpop.f32.mrb[12].mxu1 }
 0x549   : > { %v4749_v56 = vadd.f32 %v3885_v57, %v5865_v10  ;;  %v3887_v14 = vpop.f32.mrb[13].mxu0  ;;  %v3928_v40 = vpop.f32.mrb[13].mxu1  ;;  %v4751_v46 = vadd.f32 %v3926_v13, %v5874_v28 }
 0x54a   : > { %v4750_v53 = vadd.f32 %v3887_v14, %v5867_v11  ;;  %v3889_v59 = vpop.f32.mrb[14].mxu0  ;;  %v3930_v42 = vpop.f32.mrb[14].mxu1  ;;  %v4752_v34 = vadd.f32 %v3928_v40, %v5871_v25 }
 0x54b   : > { %v4726_v54 = vmul.f32 -1.442695, %v4749_v56  ;;  %v3890_v43 = vpop.f32.mrb[15].mxu0  ;;  %v3931_v33 = vpop.f32.mrb[15].mxu1 }
 0x54c   : > { %v4727_v44 = vmul.f32 -1.442695, %v4750_v53  ;;  %v4728_v15 = vmul.f32 -1.442695, %v4752_v34 }
 0x54d   : > { %5210 = vpow2.f32 %v4726_v54 }
 0x54e   : > { %5212 = vpow2.f32 %v4727_v44 }
 0x54f   : > { %5214 = vpow2.f32 %v4728_v15 }
 0x550   : > { %5216 = vtanh.f32 %v4751_v46 }
 0x557   : > { %v5211_v47 = vpop.eup %5210 }
 0x558   : > { %v5213_v48 = vpop.eup %5212  ;;  %v3940_v10 = vadd.f32 1.0, %v5211_v47 }
 0x559   : > { %v3946_v11 = vadd.f32 1.0, %v5213_v48  ;;  %v5215_v49 = vpop.eup %5214 }
 0x55a   : > { %5218 = vrcp.f32 %v3940_v10  ;;  %v5217_v50 = vpop.eup %5216  ;;  %v3953_v55 = vadd.f32 1.0, %v5215_v49 }
 0x55b   : > { %5220 = vrcp.f32 %v3946_v11 }
 0x55c   : > { %5222 = vrcp.f32 %v3953_v55 }
 0x564   : > { %v5219_v51 = vpop.eup %5218 }
 0x565   : > { %v5221_v52 = vpop.eup %5220  ;;  %v3957_v25 = vmul.f32 %v5219_v51, %v5217_v50 }
 0x566   : > { %v3956_v28 = vmul.f32 %v5221_v52, %v6409_v45  ;;  %v5223_v17 = vpop.eup %5222 }
 0x568   : > { %v3958_v16 = vadd.f32 %v3957_v25, %v3956_v28 }
 0x56a   : > { %5224 = vtanh.f32 %v3958_v16  ;;  %3965 = vst [vmem:[#allocation3] sm:$0x3] %v3958_v16  ;;  %4730 = vst [vmem:[%s5413_s19 + $0x2] sm:$0x3] %v3958_v16 }
 0x574   : > { %v5225_v18 = vpop.eup %5224 }
 0x575   : > { %v3960_v19 = vmul.f32 %v5225_v18, %v5223_v17 }
 0x577   : > { %3963 = vst [vmem:[%s3962_s20] sm:$0x3] %v3960_v19  ;;  %3964 = vst [vmem:[#allocation2] sm:$0x3] %v3960_v19 }
 0x578   : > { %3966 = vst [vmem:[%s5413_s19] sm:$0x3] %v3960_v19 }
 0x579 PF: > { %s17_s27 = sadd.s32 1, %s5280_s27   ;;  %s6764_s30 = sld [smem:[#allocation9_spill]] }
 0x57a   : > { %p14_p0 = scmp.ge.s32.totalorder %s17_s27, 6   ;;  %s6765_s23 = sld [smem:[#allocation5_spill]] }
 0x57b   : > { %s6766_s24 = sld [smem:[#allocation6_spill]]  ;;  %s6767_s25 = sld [smem:[#allocation7_spill]] }
 0x57c   : > { %s6768_s26 = sld [smem:[#allocation8_spill]]  ;;  %s6769_s21 = smov %s5260_s22 }
 0x57d   :  { %16 = sbr.rel (!%p14_p0) target bundleno = 8 (0x8), region = 159 }
 0x57f   : > { %s6770_s22 = smov %s6764_s30 }

</bundles_post_ra>
